<compile_context>
chip_gen: v5e
topology: v5e:2x2
jax: 0.10.0
libtpu: 0.0.40
codegen_flags: <defaults>
</compile_context>

<pallas_src>
import functools
import math

import jax
import jax.numpy as jnp
from jax import lax
from jax.experimental import pallas as pl
from jax.experimental.pallas import tpu as pltpu


NEG_INF = -1e9
PAD8 = 8      # small contraction dims (muon_dim, tgt_size) zero-padded to one sublane tile
OUTW = 128    # output heads zero-padded to one full lane tile (unmasked stores)

_ACT_NAMES = ("src_base", "src_chg", "exit_muon", "tgt_base", "tgt_kin",
              "enc_bias", "dec_self_bias", "dec_cross_bias")
_W_NAMES = ("small_w", "glob",
            "e_wqkv", "e_wo", "e_f1w", "e_f2w", "e_bqkv", "e_bff", "e_pE",
            "d_sa_wqkv", "d_wEE", "d_ca_wkv", "d_f1w", "d_f2w",
            "d_sa_bqkv", "d_ca_bkv", "d_bff", "d_pE",
            "head_w", "head_b")


# ------------------------------------------------------------------ fused kernel

def _transformer_kernel(*refs, cfg):
    (src_base, src_chg, exit_muon, tgt_base, tgt_kin,
     enc_bias, dec_self_bias, dec_cross_bias,
     small_w, glob,
     e_wqkv, e_wo, e_f1w, e_f2w, e_bqkv, e_bff, e_pE,
     d_sa_wqkv, d_wEE, d_ca_wkv, d_f1w, d_f2w,
     d_sa_bqkv, d_ca_bkv, d_bff, d_pE,
     head_w, head_b,
     vertex_ref, out_ref) = refs

    E, H = cfg["emb_size"], cfg["num_head"]
    hd = E // H
    Le, Ld = cfg["num_encoder_layers"], cfg["num_decoder_layers"]

    def mm(x, w):
        # bf16 MXU operands, f32 accumulation; activations stay f32 elsewhere (v5e-safe).
        return jnp.dot(x.astype(w.dtype), w, preferred_element_type=jnp.float32)

    def layernorm(x, g, b):
        mu = jnp.mean(x, axis=-1, keepdims=True)
        xc = x - mu
        var = jnp.mean(xc * xc, axis=-1, keepdims=True)
        return xc * lax.rsqrt(var + 1e-5) * g + b

    def split_heads(x):
        # (Tq, E) -> (H, Tq, hd): cheap static lane slices + leading-dim stack.
        return jnp.stack([x[:, h * hd:(h + 1) * hd] for h in range(H)], axis=0)

    def attend(q, k, v, bias):
        # One batched MXU contraction per site (batched over heads).  1/sqrt(hd) is
        # already folded into the Q projections at init time; bias already contains
        # the attention mask + key-padding mask.
        q3, k3, v3 = split_heads(q), split_heads(k), split_heads(v)
        s = lax.dot_general(q3, k3, (((2,), (2,)), ((0,), (0,))),
                            preferred_element_type=jnp.float32)       # (H, Tq, Tk)
        s = s + bias[None, :, :]
        m = jnp.max(s, axis=-1, keepdims=True)
        p = jnp.exp(s - m)
        l_sum = jnp.sum(p, axis=-1, keepdims=True)
        o = lax.dot_general(p, v3, (((2,), (1,)), ((0,), (0,))),
                            preferred_element_type=jnp.float32)       # (H, Tq, hd)
        o = o * pl.reciprocal(l_sum, approx=True)
        return jnp.concatenate([o[h] for h in range(H)], axis=-1)     # (Tq, E)

    chg_w, chg_b = glob[0], glob[1]
    muon_b, tkin_b = glob[2], glob[3]
    enc_ng, enc_nb = glob[4], glob[5]
    dec_ng, dec_nb = glob[6], glob[7]

    # ---------------- source embedding (this batch element's S rows) ----------------
    muon = mm(exit_muon[0], small_w[0]) + muon_b                       # (1, E)
    x = src_base[...] + src_chg[...] * chg_w + chg_b + muon            # (S, E)

    # ---------------- encoder stack ----------------
    ebias = enc_bias[0]                                                # (S, S)
    # NOTE: static unroll is fine at 2+2 layers; switch to lax.fori_loop + dynamic
    # layer indexing for deeper stacks to bound vreg live ranges.
    for l in range(Le):
        qkv = mm(x, e_wqkv[l]) + e_bqkv[l]                             # (S, 3E)
        a = attend(qkv[:, :E], qkv[:, E:2 * E], qkv[:, 2 * E:], ebias)
        a = mm(a, e_wo[l]) + e_pE[0, l]
        x = layernorm(x + a, e_pE[2, l], e_pE[3, l])
        h = jnp.maximum(mm(x, e_f1w[l]) + e_bff[l], 0.0)               # (S, 4E)
        h = mm(h, e_f2w[l]) + e_pE[1, l]
        x = layernorm(x + h, e_pE[4, l], e_pE[5, l])

    mem = layernorm(x, enc_ng, enc_nb)                                 # (S, E)

    # vertex head from memory position 0 (128-lane padded -> unmasked store)
    vertex_ref[0] = (mm(mem[0:1, :], head_w[0]) + head_b[0]).astype(vertex_ref.dtype)

    # cross-attention K/V projection hoisted out of the decoder loop (mem invariant):
    # one lane-dense (S, Ld*2E) matmul instead of Ld narrow ones.
    kv_all = mm(mem, d_ca_wkv[...]) + d_ca_bkv[...]                    # (S, Ld*2E)

    # ---------------- target embedding ----------------
    y = mm(tgt_kin[...], small_w[1]) + tkin_b + tgt_base[...]          # (T, E)

    # ---------------- decoder stack ----------------
    sbias = dec_self_bias[0]                                           # (T, T)
    cbias = dec_cross_bias[0]                                          # (T, S)
    for l in range(Ld):
        # self-attention
        qkv = mm(y, d_sa_wqkv[l]) + d_sa_bqkv[l]
        a = attend(qkv[:, :E], qkv[:, E:2 * E], qkv[:, 2 * E:], sbias)
        a = mm(a, d_wEE[0, l]) + d_pE[0, l]
        y = layernorm(y + a, d_pE[4, l], d_pE[5, l])
        # cross-attention (keys/values precomputed from encoder memory)
        q = mm(y, d_wEE[1, l]) + d_pE[1, l]
        k = kv_all[:, 2 * E * l:2 * E * l + E]
        v = kv_all[:, 2 * E * l + E:2 * E * (l + 1)]
        c = attend(q, k, v, cbias)
        c = mm(c, d_wEE[2, l]) + d_pE[2, l]
        y = layernorm(y + c, d_pE[6, l], d_pE[7, l])
        # FFN
        h = jnp.maximum(mm(y, d_f1w[l]) + d_bff[l], 0.0)
        h = mm(h, d_f2w[l]) + d_pE[3, l]
        y = layernorm(y + h, d_pE[8, l], d_pE[9, l])

    outs = layernorm(y, dec_ng, dec_nb)                                # (T, E)
    # fused (kin | pid | keep) head, padded to 128 lanes -> unmasked lane-dense store
    out_ref[...] = (mm(outs, head_w[1]) + head_b[1]).astype(out_ref.dtype)


# ------------------------------------------------------------------ forward wrapper

def transformer_conf2_forward(params, src, exit_muon, tgt_kin, tgt_pid,
                              src_mask, tgt_mask, src_padding_mask, tgt_padding_mask,
                              cfg):
    E, TGT = cfg["emb_size"], cfg["tgt_size"]
    S, N, _ = src.shape

    # ---- plain-JAX glue: embedding gathers, first-token concat, batch-major layout ----
    src_idx = src[:, :, :3].astype(jnp.int32)
    idx_emb = params["idx_emb"]
    e = (jnp.take(idx_emb[0], src_idx[:, :, 0], axis=0)
         + jnp.take(idx_emb[1], src_idx[:, :, 1], axis=0)
         + jnp.take(idx_emb[2], src_idx[:, :, 2], axis=0))               # (S, N, E)
    src_base = e.transpose(1, 0, 2).reshape(N * S, E)
    src_chg = src[:, :, 3:4].transpose(1, 0, 2).reshape(N * S, 1)

    Tin = tgt_kin.shape[0]
    T = Tin + 1
    assert S % 8 == 0 and T % 8 == 0, "sequence lengths must be sublane multiples"

    first_kin = jnp.tile(params["first_token_kin"][None], (1, N, 1))      # (1, N, TGT)
    tgt_kin_full = jnp.concatenate([first_kin, tgt_kin], axis=0)          # (T, N, TGT)
    first_pid = jnp.full((1, N), 3, jnp.int32)
    tgt_pid_full = jnp.concatenate([first_pid, tgt_pid.astype(jnp.int32)], axis=0)

    tgt_base = (jnp.take(params["tgt_emb_pid"], tgt_pid_full, axis=0)
                + params["pe"][:T])                                       # (T, N, E)
    tgt_base = tgt_base.transpose(1, 0, 2).reshape(N * T, E)
    tgt_kin2 = tgt_kin_full.transpose(1, 0, 2).reshape(N * T, TGT)
    tgt_kin2 = jnp.pad(tgt_kin2, ((0, 0), (0, PAD8 - TGT)))               # (N*T, 8)
    muon = jnp.pad(exit_muon, ((0, 0), (0, PAD8 - exit_muon.shape[1])))
    muon = muon.reshape(N, 1, PAD8)

    # combined additive biases (attn mask + key-padding), built ONCE here
    src_kpm = jnp.where(src_padding_mask, NEG_INF, 0.0).astype(jnp.float32)   # (N, S)
    tgt_kpm = jnp.where(tgt_padding_mask, NEG_INF, 0.0).astype(jnp.float32)   # (N, T)
    enc_bias = src_mask.astype(jnp.float32)[None, :, :] + src_kpm[:, None, :]     # (N,S,S)
    dec_self_bias = tgt_mask.astype(jnp.float32)[None, :, :] + tgt_kpm[:, None, :]  # (N,T,T)
    dec_cross_bias = jnp.broadcast_to(src_kpm[:, None, :], (N, T, S))             # (N,T,S)

    acts = dict(src_base=src_base, src_chg=src_chg, exit_muon=muon,
                tgt_base=tgt_base, tgt_kin=tgt_kin2,
                enc_bias=enc_bias, dec_self_bias=dec_self_bias,
                dec_cross_bias=dec_cross_bias)
    act_specs = [
        pl.BlockSpec((S, E), lambda n: (n, 0)),            # src_base
        pl.BlockSpec((S, 1), lambda n: (n, 0)),            # src_chg
        pl.BlockSpec((1, 1, PAD8), lambda n: (n, 0, 0)),   # exit_muon
        pl.BlockSpec((T, E), lambda n: (n, 0)),            # tgt_base
        pl.BlockSpec((T, PAD8), lambda n: (n, 0)),         # tgt_kin
        pl.BlockSpec((1, S, S), lambda n: (n, 0, 0)),      # enc_bias
        pl.BlockSpec((1, T, T), lambda n: (n, 0, 0)),      # dec_self_bias
        pl.BlockSpec((1, T, S), lambda n: (n, 0, 0)),      # dec_cross_bias
    ]

    kp = params["kernel"]
    weight_args = [kp[name] for name in _W_NAMES]
    # weights: full block, constant block index (fetched once, kept VMEM-resident)
    weight_specs = [pl.BlockSpec(a.shape, lambda n, _z=(0,) * a.ndim: _z)
                    for a in weight_args]

    kcfg = dict(emb_size=E, num_head=cfg["num_head"],
                num_encoder_layers=cfg["num_encoder_layers"],
                num_decoder_layers=cfg["num_decoder_layers"])

    vertex, out_all = pl.pallas_call(
        functools.partial(_transformer_kernel, cfg=kcfg),
        out_shape=(jax.ShapeDtypeStruct((N, 1, OUTW), jnp.float32),
                   jax.ShapeDtypeStruct((N * T, OUTW), jnp.float32)),
        grid=(N,),
        in_specs=act_specs + weight_specs,
        out_specs=(pl.BlockSpec((1, 1, OUTW), lambda n: (n, 0, 0)),
                   pl.BlockSpec((T, OUTW), lambda n: (n, 0))),
        compiler_params=pltpu.CompilerParams(
            dimension_semantics=("parallel",),   # both TensorCores on v7x; serial on v5e/v6e
            vmem_limit_bytes=32 * 1024 * 1024),
    )(*[acts[name] for name in _ACT_NAMES], *weight_args)

    vertex_pos = vertex[:, 0, :3]                                          # (N, 3)
    out_all = out_all.reshape(N, T, OUTW).transpose(1, 0, 2)               # (T, N, 128)
    out_kin = out_all[:, :, :TGT]
    out_pid = out_all[:, :, TGT:TGT + 3]
    keep = out_all[:, :, TGT + 3:TGT + 5]
    return vertex_pos, out_kin, out_pid, keep


# ------------------------------------------------------------------ params

def sinusoidal_pe(max_len, emb):
    pos = jnp.arange(max_len, dtype=jnp.float32)[:, None]
    div = jnp.exp(-math.log(10000.0) * jnp.arange(0, emb, 2, dtype=jnp.float32) / emb)
    pe = jnp.zeros((max_len, emb), jnp.float32)
    pe = pe.at[:, 0::2].set(jnp.sin(pos * div))
    pe = pe.at[:, 1::2].set(jnp.cos(pos * div))
    return pe[:, None, :]   # (max_len, 1, emb)


class KeyGen:
    def __init__(self, key):
        self.key = key

    def __call__(self):
        self.key, sub = jax.random.split(self.key)
        return sub


def init_params(seed, cfg):
    kg = KeyGen(jax.random.PRNGKey(seed))
    E, TGT, MU = cfg["emb_size"], cfg["tgt_size"], cfg["muon_dim"]
    H = cfg["num_head"]
    FF = 4 * E
    Le, Ld = cfg["num_encoder_layers"], cfg["num_decoder_layers"]
    scale = 1.0 / math.sqrt(E // H)
    WDT = jnp.bfloat16   # matmul-operand dtype (MXU); all math / accum stays f32

    def wf(shape):
        return 0.02 * jax.random.normal(kg(), shape, jnp.float32)

    def z(shape):
        return jnp.zeros(shape, jnp.float32)

    def ones(shape):
        return jnp.ones(shape, jnp.float32)

    # attention Q projections pre-scaled by 1/sqrt(hd)  (init-time weight fold)
    e_wqkv = wf((Le, E, 3 * E)).at[:, :, :E].multiply(scale)
    d_sa_wqkv = wf((Ld, E, 3 * E)).at[:, :, :E].multiply(scale)
    d_ca_wq = wf((Ld, E, E)) * scale

    # muon / target-kin embeddings padded to an 8-row contraction and stacked
    muon_w = z((PAD8, E)).at[:MU].set(wf((MU, E)))
    tkin_w = z((PAD8, E)).at[:TGT].set(wf((TGT, E)))
    small_w = jnp.stack([muon_w, tkin_w]).astype(WDT)                    # (2, 8, E)

    # globals: [chg_w, chg_b, muon_b, tkin_b, enc_norm_g, enc_norm_b, dec_norm_g, dec_norm_b]
    glob = jnp.stack([wf((1, E)), z((1, E)), z((1, E)), z((1, E)),
                      ones((1, E)), z((1, E)), ones((1, E)), z((1, E))])  # (8, 1, E)

    # vertex head + fused (kin|pid|keep) head, zero-padded to 128 output lanes
    m2v_w = z((E, OUTW)).at[:, :3].set(wf((E, 3)))
    ohead = z((E, OUTW))
    ohead = ohead.at[:, :TGT].set(wf((E, TGT)))
    ohead = ohead.at[:, TGT:TGT + 3].set(wf((E, 3)))
    ohead = ohead.at[:, TGT + 3:TGT + 5].set(wf((E, 2)))
    head_w = jnp.stack([m2v_w, ohead]).astype(WDT)                       # (2, E, 128)
    head_b = z((2, 1, OUTW))

    # encoder packed (Le,1,E) params: [bo, f2b, n1g, n1b, n2g, n2b]
    e_pE = jnp.stack([z((Le, 1, E)), z((Le, 1, E)),
                      ones((Le, 1, E)), z((Le, 1, E)),
                      ones((Le, 1, E)), z((Le, 1, E))])

    # decoder: (E,E) weights packed [sa_wo, ca_wq, ca_wo]; cross-attn K/V weights
    # concatenated over layers along the output axis for the hoisted matmul
    d_wEE = jnp.stack([wf((Ld, E, E)), d_ca_wq, wf((Ld, E, E))]).astype(WDT)
    d_ca_wkv = wf((Ld, E, 2 * E)).transpose(1, 0, 2).reshape(E, Ld * 2 * E)
    # packed (Ld,1,E) params: [sa_bo, ca_bq, ca_bo, f2b, n1g, n1b, n2g, n2b, n3g, n3b]
    d_pE = jnp.stack([z((Ld, 1, E)), z((Ld, 1, E)), z((Ld, 1, E)), z((Ld, 1, E)),
                      ones((Ld, 1, E)), z((Ld, 1, E)),
                      ones((Ld, 1, E)), z((Ld, 1, E)),
                      ones((Ld, 1, E)), z((Ld, 1, E))])

    kernel = dict(
        small_w=small_w, glob=glob,
        e_wqkv=e_wqkv.astype(WDT), e_wo=wf((Le, E, E)).astype(WDT),
        e_f1w=wf((Le, E, FF)).astype(WDT), e_f2w=wf((Le, FF, E)).astype(WDT),
        e_bqkv=z((Le, 1, 3 * E)), e_bff=z((Le, 1, FF)), e_pE=e_pE,
        d_sa_wqkv=d_sa_wqkv.astype(WDT), d_wEE=d_wEE,
        d_ca_wkv=d_ca_wkv.astype(WDT),
        d_f1w=wf((Ld, E, FF)).astype(WDT), d_f2w=wf((Ld, FF, E)).astype(WDT),
        d_sa_bqkv=z((Ld, 1, 3 * E)), d_ca_bkv=z((1, Ld * 2 * E)),
        d_bff=z((Ld, 1, FF)), d_pE=d_pE,
        head_w=head_w, head_b=head_b,
    )

    return dict(
        kernel=kernel,
        idx_emb=wf((3, cfg["img_size"], E)),
        tgt_emb_pid=wf((4, E)),
        first_token_kin=jax.random.normal(kg(), (1, TGT), jnp.float32),
        pe=sinusoidal_pe(cfg["max_len"], E),
    )


# ------------------------------------------------------------------ main

if __name__ == "__main__":
    cfg = dict(num_encoder_layers=2, num_decoder_layers=2, emb_size=32, num_head=2,
               img_size=16, tgt_size=4, max_len=10, muon_dim=6)
    S, N, Tin = 8, 2, 7
    T = Tin + 1

    key = jax.random.PRNGKey(0)
    k1, k2, k3, k4, k5 = jax.random.split(key, 5)
    idx = jax.random.randint(k1, (S, N, 3), 0, cfg["img_size"]).astype(jnp.float32)
    chg = jax.random.normal(k2, (S, N, 1), jnp.float32)
    src = jnp.concatenate([idx, chg], axis=-1)                      # (S, N, 4)
    exit_muon = jax.random.normal(k3, (N, cfg["muon_dim"]), jnp.float32)
    tgt_kin = jax.random.normal(k4, (Tin, N, cfg["tgt_size"]), jnp.float32)
    tgt_pid = jax.random.randint(k5, (Tin, N), 0, 3)

    src_mask = jnp.zeros((S, S), jnp.float32)
    tgt_mask = jnp.where(jnp.triu(jnp.ones((T, T), bool), k=1), NEG_INF, 0.0
                         ).astype(jnp.float32)
    src_padding_mask = jnp.zeros((N, S), bool)
    tgt_padding_mask = jnp.zeros((N, T), bool)

    params = init_params(0, cfg)
    outs = transformer_conf2_forward(params, src, exit_muon, tgt_kin, tgt_pid,
                                     src_mask, tgt_mask, src_padding_mask,
                                     tgt_padding_mask, cfg)
    jax.block_until_ready(outs)
    vertex_pos, out_kin, out_pid, keep_iter = outs
    assert vertex_pos.shape == (N, 3)
    assert out_kin.shape == (T, N, cfg["tgt_size"])
    assert out_pid.shape == (T, N, 3)
    assert keep_iter.shape == (T, N, 2)
    print("KERNEL_OK")
</pallas_src>

<mosaic_0001>
module attributes {stable_mosaic.version = 11 : i64} {
  func.func @_transformer_kernel(%arg0: i32, %arg1: memref<8x32xf32, #tpu.memory_space<vmem>>, %arg2: memref<8x1xf32, #tpu.memory_space<vmem>>, %arg3: memref<1x1x8xf32, #tpu.memory_space<vmem>>, %arg4: memref<8x32xf32, #tpu.memory_space<vmem>>, %arg5: memref<8x8xf32, #tpu.memory_space<vmem>>, %arg6: memref<1x8x8xf32, #tpu.memory_space<vmem>>, %arg7: memref<1x8x8xf32, #tpu.memory_space<vmem>>, %arg8: memref<1x8x8xf32, #tpu.memory_space<vmem>>, %arg9: memref<2x8x32xbf16, #tpu.memory_space<vmem>>, %arg10: memref<8x1x32xf32, #tpu.memory_space<vmem>>, %arg11: memref<2x32x96xbf16, #tpu.memory_space<vmem>>, %arg12: memref<2x32x32xbf16, #tpu.memory_space<vmem>>, %arg13: memref<2x32x128xbf16, #tpu.memory_space<vmem>>, %arg14: memref<2x128x32xbf16, #tpu.memory_space<vmem>>, %arg15: memref<2x1x96xf32, #tpu.memory_space<vmem>>, %arg16: memref<2x1x128xf32, #tpu.memory_space<vmem>>, %arg17: memref<6x2x1x32xf32, #tpu.memory_space<vmem>>, %arg18: memref<2x32x96xbf16, #tpu.memory_space<vmem>>, %arg19: memref<3x2x32x32xbf16, #tpu.memory_space<vmem>>, %arg20: memref<32x128xbf16, #tpu.memory_space<vmem>>, %arg21: memref<2x32x128xbf16, #tpu.memory_space<vmem>>, %arg22: memref<2x128x32xbf16, #tpu.memory_space<vmem>>, %arg23: memref<2x1x96xf32, #tpu.memory_space<vmem>>, %arg24: memref<1x128xf32, #tpu.memory_space<vmem>>, %arg25: memref<2x1x128xf32, #tpu.memory_space<vmem>>, %arg26: memref<10x2x1x32xf32, #tpu.memory_space<vmem>>, %arg27: memref<2x32x128xbf16, #tpu.memory_space<vmem>>, %arg28: memref<2x1x128xf32, #tpu.memory_space<vmem>>, %arg29: memref<1x1x128xf32, #tpu.memory_space<vmem>>, %arg30: memref<8x128xf32, #tpu.memory_space<vmem>>) attributes {dimension_semantics = [#tpu.dimension_semantics<parallel>], iteration_bounds = array<i64: 2>, scalar_prefetch = 0 : i64, scratch_operands = 0 : i64, tpu.core_type = #tpu.core_type<tc>, window_params = [{transform_indices = @transform_0, window_bounds = array<i64: 8, 32>}, {transform_indices = @transform_1, window_bounds = array<i64: 8, 1>}, {transform_indices = @transform_2, window_bounds = array<i64: 1, 1, 8>}, {transform_indices = @transform_3, window_bounds = array<i64: 8, 32>}, {transform_indices = @transform_4, window_bounds = array<i64: 8, 8>}, {transform_indices = @transform_5, window_bounds = array<i64: 1, 8, 8>}, {transform_indices = @transform_6, window_bounds = array<i64: 1, 8, 8>}, {transform_indices = @transform_7, window_bounds = array<i64: 1, 8, 8>}, {pipeline_mode = #tpu.pipeline_mode<synchronous>, transform_indices = @transform_8, window_bounds = array<i64: 2, 8, 32>}, {pipeline_mode = #tpu.pipeline_mode<synchronous>, transform_indices = @transform_9, window_bounds = array<i64: 8, 1, 32>}, {pipeline_mode = #tpu.pipeline_mode<synchronous>, transform_indices = @transform_10, window_bounds = array<i64: 2, 32, 96>}, {pipeline_mode = #tpu.pipeline_mode<synchronous>, transform_indices = @transform_11, window_bounds = array<i64: 2, 32, 32>}, {pipeline_mode = #tpu.pipeline_mode<synchronous>, transform_indices = @transform_12, window_bounds = array<i64: 2, 32, 128>}, {pipeline_mode = #tpu.pipeline_mode<synchronous>, transform_indices = @transform_13, window_bounds = array<i64: 2, 128, 32>}, {pipeline_mode = #tpu.pipeline_mode<synchronous>, transform_indices = @transform_14, window_bounds = array<i64: 2, 1, 96>}, {pipeline_mode = #tpu.pipeline_mode<synchronous>, transform_indices = @transform_15, window_bounds = array<i64: 2, 1, 128>}, {pipeline_mode = #tpu.pipeline_mode<synchronous>, transform_indices = @transform_16, window_bounds = array<i64: 6, 2, 1, 32>}, {pipeline_mode = #tpu.pipeline_mode<synchronous>, transform_indices = @transform_17, window_bounds = array<i64: 2, 32, 96>}, {pipeline_mode = #tpu.pipeline_mode<synchronous>, transform_indices = @transform_18, window_bounds = array<i64: 3, 2, 32, 32>}, {pipeline_mode = #tpu.pipeline_mode<synchronous>, transform_indices = @transform_19, window_bounds = array<i64: 32, 128>}, {pipeline_mode = #tpu.pipeline_mode<synchronous>, transform_indices = @transform_20, window_bounds = array<i64: 2, 32, 128>}, {pipeline_mode = #tpu.pipeline_mode<synchronous>, transform_indices = @transform_21, window_bounds = array<i64: 2, 128, 32>}, {pipeline_mode = #tpu.pipeline_mode<synchronous>, transform_indices = @transform_22, window_bounds = array<i64: 2, 1, 96>}, {pipeline_mode = #tpu.pipeline_mode<synchronous>, transform_indices = @transform_23, window_bounds = array<i64: 1, 128>}, {pipeline_mode = #tpu.pipeline_mode<synchronous>, transform_indices = @transform_24, window_bounds = array<i64: 2, 1, 128>}, {pipeline_mode = #tpu.pipeline_mode<synchronous>, transform_indices = @transform_25, window_bounds = array<i64: 10, 2, 1, 32>}, {pipeline_mode = #tpu.pipeline_mode<synchronous>, transform_indices = @transform_26, window_bounds = array<i64: 2, 32, 128>}, {pipeline_mode = #tpu.pipeline_mode<synchronous>, transform_indices = @transform_27, window_bounds = array<i64: 2, 1, 128>}, {transform_indices = @transform_28, window_bounds = array<i64: 1, 1, 128>}, {transform_indices = @transform_29, window_bounds = array<i64: 8, 128>}]} {
    %c0 = arith.constant 0 : index
    %c0_0 = arith.constant 0 : index
    %c0_1 = arith.constant 0 : index
    %0 = vector.load %arg10[%c0, %c0_0, %c0_1] : memref<8x1x32xf32, #tpu.memory_space<vmem>>, vector<1x1x32xf32>
    %1 = vector.shape_cast %0 : vector<1x1x32xf32> to vector<1x32xf32>
    %c1 = arith.constant 1 : index
    %c0_2 = arith.constant 0 : index
    %c0_3 = arith.constant 0 : index
    %2 = vector.load %arg10[%c1, %c0_2, %c0_3] : memref<8x1x32xf32, #tpu.memory_space<vmem>>, vector<1x1x32xf32>
    %3 = vector.shape_cast %2 : vector<1x1x32xf32> to vector<1x32xf32>
    %c2 = arith.constant 2 : index
    %c0_4 = arith.constant 0 : index
    %c0_5 = arith.constant 0 : index
    %4 = vector.load %arg10[%c2, %c0_4, %c0_5] : memref<8x1x32xf32, #tpu.memory_space<vmem>>, vector<1x1x32xf32>
    %5 = vector.shape_cast %4 : vector<1x1x32xf32> to vector<1x32xf32>
    %c3 = arith.constant 3 : index
    %c0_6 = arith.constant 0 : index
    %c0_7 = arith.constant 0 : index
    %6 = vector.load %arg10[%c3, %c0_6, %c0_7] : memref<8x1x32xf32, #tpu.memory_space<vmem>>, vector<1x1x32xf32>
    %7 = vector.shape_cast %6 : vector<1x1x32xf32> to vector<1x32xf32>
    %c4 = arith.constant 4 : index
    %c0_8 = arith.constant 0 : index
    %c0_9 = arith.constant 0 : index
    %8 = vector.load %arg10[%c4, %c0_8, %c0_9] : memref<8x1x32xf32, #tpu.memory_space<vmem>>, vector<1x1x32xf32>
    %9 = vector.shape_cast %8 : vector<1x1x32xf32> to vector<1x32xf32>
    %c5 = arith.constant 5 : index
    %c0_10 = arith.constant 0 : index
    %c0_11 = arith.constant 0 : index
    %10 = vector.load %arg10[%c5, %c0_10, %c0_11] : memref<8x1x32xf32, #tpu.memory_space<vmem>>, vector<1x1x32xf32>
    %11 = vector.shape_cast %10 : vector<1x1x32xf32> to vector<1x32xf32>
    %c6 = arith.constant 6 : index
    %c0_12 = arith.constant 0 : index
    %c0_13 = arith.constant 0 : index
    %12 = vector.load %arg10[%c6, %c0_12, %c0_13] : memref<8x1x32xf32, #tpu.memory_space<vmem>>, vector<1x1x32xf32>
    %13 = vector.shape_cast %12 : vector<1x1x32xf32> to vector<1x32xf32>
    %c7 = arith.constant 7 : index
    %c0_14 = arith.constant 0 : index
    %c0_15 = arith.constant 0 : index
    %14 = vector.load %arg10[%c7, %c0_14, %c0_15] : memref<8x1x32xf32, #tpu.memory_space<vmem>>, vector<1x1x32xf32>
    %15 = vector.shape_cast %14 : vector<1x1x32xf32> to vector<1x32xf32>
    %c0_16 = arith.constant 0 : index
    %c0_17 = arith.constant 0 : index
    %c0_18 = arith.constant 0 : index
    %16 = vector.load %arg3[%c0_16, %c0_17, %c0_18] : memref<1x1x8xf32, #tpu.memory_space<vmem>>, vector<1x1x8xf32>
    %17 = vector.shape_cast %16 : vector<1x1x8xf32> to vector<1x8xf32>
    %c0_19 = arith.constant 0 : index
    %c0_20 = arith.constant 0 : index
    %c0_21 = arith.constant 0 : index
    %18 = vector.load %arg9[%c0_19, %c0_20, %c0_21] : memref<2x8x32xbf16, #tpu.memory_space<vmem>>, vector<1x8x32xbf16>
    %19 = vector.shape_cast %18 : vector<1x8x32xbf16> to vector<8x32xbf16>
    %20 = arith.truncf %17 : vector<1x8xf32> to vector<1x8xbf16>
    %cst = arith.constant dense<0.000000e+00> : vector<1x32xf32>
    %21 = tpu.matmul %20, %19, %cst {dimension_numbers = #tpu.dot_dimension_numbers<[1], [0], [0], [1], [0, 0, 1, 1], [], []>} : vector<1x8xbf16>, vector<8x32xbf16>, vector<1x32xf32> -> vector<1x32xf32>
    %22 = arith.addf %21, %5 : vector<1x32xf32>
    %c0_22 = arith.constant 0 : index
    %c0_23 = arith.constant 0 : index
    %23 = vector.load %arg1[%c0_22, %c0_23] : memref<8x32xf32, #tpu.memory_space<vmem>>, vector<8x32xf32>
    %c0_24 = arith.constant 0 : index
    %c0_25 = arith.constant 0 : index
    %24 = vector.load %arg2[%c0_24, %c0_25] : memref<8x1xf32, #tpu.memory_space<vmem>>, vector<8x1xf32>
    %25 = vector.broadcast %24 : vector<8x1xf32> to vector<8x32xf32>
    %26 = vector.broadcast %1 : vector<1x32xf32> to vector<8x32xf32>
    %27 = arith.mulf %25, %26 : vector<8x32xf32>
    %28 = arith.addf %23, %27 : vector<8x32xf32>
    %29 = vector.broadcast %3 : vector<1x32xf32> to vector<8x32xf32>
    %30 = arith.addf %28, %29 : vector<8x32xf32>
    %31 = vector.broadcast %22 : vector<1x32xf32> to vector<8x32xf32>
    %32 = arith.addf %30, %31 : vector<8x32xf32>
    %c0_26 = arith.constant 0 : index
    %c0_27 = arith.constant 0 : index
    %c0_28 = arith.constant 0 : index
    %33 = vector.load %arg6[%c0_26, %c0_27, %c0_28] : memref<1x8x8xf32, #tpu.memory_space<vmem>>, vector<1x8x8xf32>
    %34 = vector.shape_cast %33 : vector<1x8x8xf32> to vector<8x8xf32>
    %c0_29 = arith.constant 0 : index
    %c0_30 = arith.constant 0 : index
    %c0_31 = arith.constant 0 : index
    %35 = vector.load %arg11[%c0_29, %c0_30, %c0_31] : memref<2x32x96xbf16, #tpu.memory_space<vmem>>, vector<1x32x96xbf16>
    %36 = vector.shape_cast %35 : vector<1x32x96xbf16> to vector<32x96xbf16>
    %37 = arith.truncf %32 : vector<8x32xf32> to vector<8x32xbf16>
    %cst_32 = arith.constant dense<0.000000e+00> : vector<8x96xf32>
    %38 = tpu.matmul %37, %36, %cst_32 {dimension_numbers = #tpu.dot_dimension_numbers<[1], [0], [0], [1], [0, 0, 1, 1], [], []>} : vector<8x32xbf16>, vector<32x96xbf16>, vector<8x96xf32> -> vector<8x96xf32>
    %c0_33 = arith.constant 0 : index
    %c0_34 = arith.constant 0 : index
    %c0_35 = arith.constant 0 : index
    %39 = vector.load %arg15[%c0_33, %c0_34, %c0_35] : memref<2x1x96xf32, #tpu.memory_space<vmem>>, vector<1x1x96xf32>
    %40 = vector.shape_cast %39 : vector<1x1x96xf32> to vector<1x96xf32>
    %41 = vector.broadcast %40 : vector<1x96xf32> to vector<8x96xf32>
    %42 = arith.addf %38, %41 : vector<8x96xf32>
    %43 = vector.extract_strided_slice %42 {offsets = [0, 0], sizes = [8, 32], strides = [1, 1]} : vector<8x96xf32> to vector<8x32xf32>
    %44 = vector.extract_strided_slice %42 {offsets = [0, 32], sizes = [8, 32], strides = [1, 1]} : vector<8x96xf32> to vector<8x32xf32>
    %45 = vector.extract_strided_slice %42 {offsets = [0, 64], sizes = [8, 32], strides = [1, 1]} : vector<8x96xf32> to vector<8x32xf32>
    %46 = vector.extract_strided_slice %43 {offsets = [0, 0], sizes = [8, 16], strides = [1, 1]} : vector<8x32xf32> to vector<8x16xf32>
    %47 = vector.extract_strided_slice %43 {offsets = [0, 16], sizes = [8, 16], strides = [1, 1]} : vector<8x32xf32> to vector<8x16xf32>
    %48 = vector.shape_cast %46 : vector<8x16xf32> to vector<1x8x16xf32>
    %49 = vector.shape_cast %47 : vector<8x16xf32> to vector<1x8x16xf32>
    %50 = tpu.concatenate %48, %49 in 0 : vector<1x8x16xf32>, vector<1x8x16xf32> -> vector<2x8x16xf32>
    %51 = vector.extract_strided_slice %44 {offsets = [0, 0], sizes = [8, 16], strides = [1, 1]} : vector<8x32xf32> to vector<8x16xf32>
    %52 = vector.extract_strided_slice %44 {offsets = [0, 16], sizes = [8, 16], strides = [1, 1]} : vector<8x32xf32> to vector<8x16xf32>
    %53 = vector.shape_cast %51 : vector<8x16xf32> to vector<1x8x16xf32>
    %54 = vector.shape_cast %52 : vector<8x16xf32> to vector<1x8x16xf32>
    %55 = tpu.concatenate %53, %54 in 0 : vector<1x8x16xf32>, vector<1x8x16xf32> -> vector<2x8x16xf32>
    %56 = vector.extract_strided_slice %45 {offsets = [0, 0], sizes = [8, 16], strides = [1, 1]} : vector<8x32xf32> to vector<8x16xf32>
    %57 = vector.extract_strided_slice %45 {offsets = [0, 16], sizes = [8, 16], strides = [1, 1]} : vector<8x32xf32> to vector<8x16xf32>
    %58 = vector.shape_cast %56 : vector<8x16xf32> to vector<1x8x16xf32>
    %59 = vector.shape_cast %57 : vector<8x16xf32> to vector<1x8x16xf32>
    %60 = tpu.concatenate %58, %59 in 0 : vector<1x8x16xf32>, vector<1x8x16xf32> -> vector<2x8x16xf32>
    %cst_36 = arith.constant dense<0.000000e+00> : vector<2x8x8xf32>
    %61 = tpu.matmul %50, %55, %cst_36 {dimension_numbers = #tpu.dot_dimension_numbers<[2], [2], [1], [1], [0, 0, 0, 1, 1, 1], [0], [0]>} : vector<2x8x16xf32>, vector<2x8x16xf32>, vector<2x8x8xf32> -> vector<2x8x8xf32>
    %62 = vector.shape_cast %34 : vector<8x8xf32> to vector<1x8x8xf32>
    %63 = vector.broadcast %62 : vector<1x8x8xf32> to vector<2x8x8xf32>
    %64 = arith.addf %61, %63 : vector<2x8x8xf32>
    %cst_37 = arith.constant dense<0xFF800000> : vector<2x8xf32>
    %65 = vector.multi_reduction <maximumf>, %64, %cst_37 [2] : vector<2x8x8xf32> to vector<2x8xf32>
    %66 = vector.shape_cast %65 : vector<2x8xf32> to vector<2x8x1xf32>
    %67 = vector.broadcast %66 : vector<2x8x1xf32> to vector<2x8x8xf32>
    %68 = arith.subf %64, %67 : vector<2x8x8xf32>
    %69 = math.exp %68 : vector<2x8x8xf32>
    %cst_38 = arith.constant dense<0.000000e+00> : vector<2x8xf32>
    %70 = vector.multi_reduction <add>, %69, %cst_38 [2] : vector<2x8x8xf32> to vector<2x8xf32>
    %71 = vector.shape_cast %70 : vector<2x8xf32> to vector<2x8x1xf32>
    %cst_39 = arith.constant dense<0.000000e+00> : vector<2x8x16xf32>
    %72 = tpu.matmul %69, %60, %cst_39 {dimension_numbers = #tpu.dot_dimension_numbers<[2], [1], [1], [2], [0, 0, 0, 1, 1, 2], [0], [0]>} : vector<2x8x8xf32>, vector<2x8x16xf32>, vector<2x8x16xf32> -> vector<2x8x16xf32>
    %73 = tpu.reciprocal %71 {approx = true} : vector<2x8x1xf32> -> vector<2x8x1xf32>
    %74 = vector.broadcast %73 : vector<2x8x1xf32> to vector<2x8x16xf32>
    %75 = arith.mulf %72, %74 : vector<2x8x16xf32>
    %76 = vector.extract_strided_slice %75 {offsets = [0, 0, 0], sizes = [1, 8, 16], strides = [1, 1, 1]} : vector<2x8x16xf32> to vector<1x8x16xf32>
    %77 = vector.shape_cast %76 : vector<1x8x16xf32> to vector<8x16xf32>
    %78 = vector.extract_strided_slice %75 {offsets = [1, 0, 0], sizes = [1, 8, 16], strides = [1, 1, 1]} : vector<2x8x16xf32> to vector<1x8x16xf32>
    %79 = vector.shape_cast %78 : vector<1x8x16xf32> to vector<8x16xf32>
    %80 = tpu.concatenate %77, %79 in 1 : vector<8x16xf32>, vector<8x16xf32> -> vector<8x32xf32>
    %c0_40 = arith.constant 0 : index
    %c0_41 = arith.constant 0 : index
    %c0_42 = arith.constant 0 : index
    %81 = vector.load %arg12[%c0_40, %c0_41, %c0_42] : memref<2x32x32xbf16, #tpu.memory_space<vmem>>, vector<1x32x32xbf16>
    %82 = vector.shape_cast %81 : vector<1x32x32xbf16> to vector<32x32xbf16>
    %83 = arith.truncf %80 : vector<8x32xf32> to vector<8x32xbf16>
    %cst_43 = arith.constant dense<0.000000e+00> : vector<8x32xf32>
    %84 = tpu.matmul %83, %82, %cst_43 {dimension_numbers = #tpu.dot_dimension_numbers<[1], [0], [0], [1], [0, 0, 1, 1], [], []>} : vector<8x32xbf16>, vector<32x32xbf16>, vector<8x32xf32> -> vector<8x32xf32>
    %c0_44 = arith.constant 0 : index
    %c0_45 = arith.constant 0 : index
    %c0_46 = arith.constant 0 : index
    %c0_47 = arith.constant 0 : index
    %85 = vector.load %arg17[%c0_44, %c0_45, %c0_46, %c0_47] : memref<6x2x1x32xf32, #tpu.memory_space<vmem>>, vector<1x1x1x32xf32>
    %86 = vector.shape_cast %85 : vector<1x1x1x32xf32> to vector<1x32xf32>
    %87 = vector.broadcast %86 : vector<1x32xf32> to vector<8x32xf32>
    %88 = arith.addf %84, %87 : vector<8x32xf32>
    %89 = arith.addf %32, %88 : vector<8x32xf32>
    %c2_48 = arith.constant 2 : index
    %c0_49 = arith.constant 0 : index
    %c0_50 = arith.constant 0 : index
    %c0_51 = arith.constant 0 : index
    %90 = vector.load %arg17[%c2_48, %c0_49, %c0_50, %c0_51] : memref<6x2x1x32xf32, #tpu.memory_space<vmem>>, vector<1x1x1x32xf32>
    %91 = vector.shape_cast %90 : vector<1x1x1x32xf32> to vector<1x32xf32>
    %c3_52 = arith.constant 3 : index
    %c0_53 = arith.constant 0 : index
    %c0_54 = arith.constant 0 : index
    %c0_55 = arith.constant 0 : index
    %92 = vector.load %arg17[%c3_52, %c0_53, %c0_54, %c0_55] : memref<6x2x1x32xf32, #tpu.memory_space<vmem>>, vector<1x1x1x32xf32>
    %93 = vector.shape_cast %92 : vector<1x1x1x32xf32> to vector<1x32xf32>
    %cst_56 = arith.constant dense<0.000000e+00> : vector<8xf32>
    %94 = vector.multi_reduction <add>, %89, %cst_56 [1] : vector<8x32xf32> to vector<8xf32>
    %95 = vector.shape_cast %94 : vector<8xf32> to vector<8x1xf32>
    %cst_57 = arith.constant 3.200000e+01 : f32
    %96 = vector.broadcast %cst_57 : f32 to vector<8x1xf32>
    %97 = arith.divf %95, %96 : vector<8x1xf32>
    %98 = vector.broadcast %97 : vector<8x1xf32> to vector<8x32xf32>
    %99 = arith.subf %89, %98 : vector<8x32xf32>
    %100 = arith.mulf %99, %99 : vector<8x32xf32>
    %cst_58 = arith.constant dense<0.000000e+00> : vector<8xf32>
    %101 = vector.multi_reduction <add>, %100, %cst_58 [1] : vector<8x32xf32> to vector<8xf32>
    %102 = vector.shape_cast %101 : vector<8xf32> to vector<8x1xf32>
    %cst_59 = arith.constant 3.200000e+01 : f32
    %103 = vector.broadcast %cst_59 : f32 to vector<8x1xf32>
    %104 = arith.divf %102, %103 : vector<8x1xf32>
    %cst_60 = arith.constant 9.99999974E-6 : f32
    %105 = vector.broadcast %cst_60 : f32 to vector<8x1xf32>
    %106 = arith.addf %104, %105 : vector<8x1xf32>
    %107 = math.rsqrt %106 : vector<8x1xf32>
    %108 = vector.broadcast %107 : vector<8x1xf32> to vector<8x32xf32>
    %109 = arith.mulf %99, %108 : vector<8x32xf32>
    %110 = vector.broadcast %91 : vector<1x32xf32> to vector<8x32xf32>
    %111 = arith.mulf %109, %110 : vector<8x32xf32>
    %112 = vector.broadcast %93 : vector<1x32xf32> to vector<8x32xf32>
    %113 = arith.addf %111, %112 : vector<8x32xf32>
    %c0_61 = arith.constant 0 : index
    %c0_62 = arith.constant 0 : index
    %c0_63 = arith.constant 0 : index
    %114 = vector.load %arg13[%c0_61, %c0_62, %c0_63] : memref<2x32x128xbf16, #tpu.memory_space<vmem>>, vector<1x32x128xbf16>
    %115 = vector.shape_cast %114 : vector<1x32x128xbf16> to vector<32x128xbf16>
    %116 = arith.truncf %113 : vector<8x32xf32> to vector<8x32xbf16>
    %cst_64 = arith.constant dense<0.000000e+00> : vector<8x128xf32>
    %117 = tpu.matmul %116, %115, %cst_64 {dimension_numbers = #tpu.dot_dimension_numbers<[1], [0], [0], [1], [0, 0, 1, 1], [], []>} : vector<8x32xbf16>, vector<32x128xbf16>, vector<8x128xf32> -> vector<8x128xf32>
    %c0_65 = arith.constant 0 : index
    %c0_66 = arith.constant 0 : index
    %c0_67 = arith.constant 0 : index
    %118 = vector.load %arg16[%c0_65, %c0_66, %c0_67] : memref<2x1x128xf32, #tpu.memory_space<vmem>>, vector<1x1x128xf32>
    %119 = vector.shape_cast %118 : vector<1x1x128xf32> to vector<1x128xf32>
    %120 = vector.broadcast %119 : vector<1x128xf32> to vector<8x128xf32>
    %121 = arith.addf %117, %120 : vector<8x128xf32>
    %cst_68 = arith.constant 0.000000e+00 : f32
    %122 = vector.broadcast %cst_68 : f32 to vector<8x128xf32>
    %123 = arith.maximumf %121, %122 : vector<8x128xf32>
    %c0_69 = arith.constant 0 : index
    %c0_70 = arith.constant 0 : index
    %c0_71 = arith.constant 0 : index
    %124 = vector.load %arg14[%c0_69, %c0_70, %c0_71] : memref<2x128x32xbf16, #tpu.memory_space<vmem>>, vector<1x128x32xbf16>
    %125 = vector.shape_cast %124 : vector<1x128x32xbf16> to vector<128x32xbf16>
    %126 = arith.truncf %123 : vector<8x128xf32> to vector<8x128xbf16>
    %cst_72 = arith.constant dense<0.000000e+00> : vector<8x32xf32>
    %127 = tpu.matmul %126, %125, %cst_72 {dimension_numbers = #tpu.dot_dimension_numbers<[1], [0], [0], [1], [0, 0, 1, 1], [], []>} : vector<8x128xbf16>, vector<128x32xbf16>, vector<8x32xf32> -> vector<8x32xf32>
    %c1_73 = arith.constant 1 : index
    %c0_74 = arith.constant 0 : index
    %c0_75 = arith.constant 0 : index
    %c0_76 = arith.constant 0 : index
    %128 = vector.load %arg17[%c1_73, %c0_74, %c0_75, %c0_76] : memref<6x2x1x32xf32, #tpu.memory_space<vmem>>, vector<1x1x1x32xf32>
    %129 = vector.shape_cast %128 : vector<1x1x1x32xf32> to vector<1x32xf32>
    %130 = vector.broadcast %129 : vector<1x32xf32> to vector<8x32xf32>
    %131 = arith.addf %127, %130 : vector<8x32xf32>
    %132 = arith.addf %113, %131 : vector<8x32xf32>
    %c4_77 = arith.constant 4 : index
    %c0_78 = arith.constant 0 : index
    %c0_79 = arith.constant 0 : index
    %c0_80 = arith.constant 0 : index
    %133 = vector.load %arg17[%c4_77, %c0_78, %c0_79, %c0_80] : memref<6x2x1x32xf32, #tpu.memory_space<vmem>>, vector<1x1x1x32xf32>
    %134 = vector.shape_cast %133 : vector<1x1x1x32xf32> to vector<1x32xf32>
    %c5_81 = arith.constant 5 : index
    %c0_82 = arith.constant 0 : index
    %c0_83 = arith.constant 0 : index
    %c0_84 = arith.constant 0 : index
    %135 = vector.load %arg17[%c5_81, %c0_82, %c0_83, %c0_84] : memref<6x2x1x32xf32, #tpu.memory_space<vmem>>, vector<1x1x1x32xf32>
    %136 = vector.shape_cast %135 : vector<1x1x1x32xf32> to vector<1x32xf32>
    %cst_85 = arith.constant dense<0.000000e+00> : vector<8xf32>
    %137 = vector.multi_reduction <add>, %132, %cst_85 [1] : vector<8x32xf32> to vector<8xf32>
    %138 = vector.shape_cast %137 : vector<8xf32> to vector<8x1xf32>
    %cst_86 = arith.constant 3.200000e+01 : f32
    %139 = vector.broadcast %cst_86 : f32 to vector<8x1xf32>
    %140 = arith.divf %138, %139 : vector<8x1xf32>
    %141 = vector.broadcast %140 : vector<8x1xf32> to vector<8x32xf32>
    %142 = arith.subf %132, %141 : vector<8x32xf32>
    %143 = arith.mulf %142, %142 : vector<8x32xf32>
    %cst_87 = arith.constant dense<0.000000e+00> : vector<8xf32>
    %144 = vector.multi_reduction <add>, %143, %cst_87 [1] : vector<8x32xf32> to vector<8xf32>
    %145 = vector.shape_cast %144 : vector<8xf32> to vector<8x1xf32>
    %cst_88 = arith.constant 3.200000e+01 : f32
    %146 = vector.broadcast %cst_88 : f32 to vector<8x1xf32>
    %147 = arith.divf %145, %146 : vector<8x1xf32>
    %cst_89 = arith.constant 9.99999974E-6 : f32
    %148 = vector.broadcast %cst_89 : f32 to vector<8x1xf32>
    %149 = arith.addf %147, %148 : vector<8x1xf32>
    %150 = math.rsqrt %149 : vector<8x1xf32>
    %151 = vector.broadcast %150 : vector<8x1xf32> to vector<8x32xf32>
    %152 = arith.mulf %142, %151 : vector<8x32xf32>
    %153 = vector.broadcast %134 : vector<1x32xf32> to vector<8x32xf32>
    %154 = arith.mulf %152, %153 : vector<8x32xf32>
    %155 = vector.broadcast %136 : vector<1x32xf32> to vector<8x32xf32>
    %156 = arith.addf %154, %155 : vector<8x32xf32>
    %c1_90 = arith.constant 1 : index
    %c0_91 = arith.constant 0 : index
    %c0_92 = arith.constant 0 : index
    %157 = vector.load %arg11[%c1_90, %c0_91, %c0_92] : memref<2x32x96xbf16, #tpu.memory_space<vmem>>, vector<1x32x96xbf16>
    %158 = vector.shape_cast %157 : vector<1x32x96xbf16> to vector<32x96xbf16>
    %159 = arith.truncf %156 : vector<8x32xf32> to vector<8x32xbf16>
    %cst_93 = arith.constant dense<0.000000e+00> : vector<8x96xf32>
    %160 = tpu.matmul %159, %158, %cst_93 {dimension_numbers = #tpu.dot_dimension_numbers<[1], [0], [0], [1], [0, 0, 1, 1], [], []>} : vector<8x32xbf16>, vector<32x96xbf16>, vector<8x96xf32> -> vector<8x96xf32>
    %c1_94 = arith.constant 1 : index
    %c0_95 = arith.constant 0 : index
    %c0_96 = arith.constant 0 : index
    %161 = vector.load %arg15[%c1_94, %c0_95, %c0_96] : memref<2x1x96xf32, #tpu.memory_space<vmem>>, vector<1x1x96xf32>
    %162 = vector.shape_cast %161 : vector<1x1x96xf32> to vector<1x96xf32>
    %163 = vector.broadcast %162 : vector<1x96xf32> to vector<8x96xf32>
    %164 = arith.addf %160, %163 : vector<8x96xf32>
    %165 = vector.extract_strided_slice %164 {offsets = [0, 0], sizes = [8, 32], strides = [1, 1]} : vector<8x96xf32> to vector<8x32xf32>
    %166 = vector.extract_strided_slice %164 {offsets = [0, 32], sizes = [8, 32], strides = [1, 1]} : vector<8x96xf32> to vector<8x32xf32>
    %167 = vector.extract_strided_slice %164 {offsets = [0, 64], sizes = [8, 32], strides = [1, 1]} : vector<8x96xf32> to vector<8x32xf32>
    %168 = vector.extract_strided_slice %165 {offsets = [0, 0], sizes = [8, 16], strides = [1, 1]} : vector<8x32xf32> to vector<8x16xf32>
    %169 = vector.extract_strided_slice %165 {offsets = [0, 16], sizes = [8, 16], strides = [1, 1]} : vector<8x32xf32> to vector<8x16xf32>
    %170 = vector.shape_cast %168 : vector<8x16xf32> to vector<1x8x16xf32>
    %171 = vector.shape_cast %169 : vector<8x16xf32> to vector<1x8x16xf32>
    %172 = tpu.concatenate %170, %171 in 0 : vector<1x8x16xf32>, vector<1x8x16xf32> -> vector<2x8x16xf32>
    %173 = vector.extract_strided_slice %166 {offsets = [0, 0], sizes = [8, 16], strides = [1, 1]} : vector<8x32xf32> to vector<8x16xf32>
    %174 = vector.extract_strided_slice %166 {offsets = [0, 16], sizes = [8, 16], strides = [1, 1]} : vector<8x32xf32> to vector<8x16xf32>
    %175 = vector.shape_cast %173 : vector<8x16xf32> to vector<1x8x16xf32>
    %176 = vector.shape_cast %174 : vector<8x16xf32> to vector<1x8x16xf32>
    %177 = tpu.concatenate %175, %176 in 0 : vector<1x8x16xf32>, vector<1x8x16xf32> -> vector<2x8x16xf32>
    %178 = vector.extract_strided_slice %167 {offsets = [0, 0], sizes = [8, 16], strides = [1, 1]} : vector<8x32xf32> to vector<8x16xf32>
    %179 = vector.extract_strided_slice %167 {offsets = [0, 16], sizes = [8, 16], strides = [1, 1]} : vector<8x32xf32> to vector<8x16xf32>
    %180 = vector.shape_cast %178 : vector<8x16xf32> to vector<1x8x16xf32>
    %181 = vector.shape_cast %179 : vector<8x16xf32> to vector<1x8x16xf32>
    %182 = tpu.concatenate %180, %181 in 0 : vector<1x8x16xf32>, vector<1x8x16xf32> -> vector<2x8x16xf32>
    %cst_97 = arith.constant dense<0.000000e+00> : vector<2x8x8xf32>
    %183 = tpu.matmul %172, %177, %cst_97 {dimension_numbers = #tpu.dot_dimension_numbers<[2], [2], [1], [1], [0, 0, 0, 1, 1, 1], [0], [0]>} : vector<2x8x16xf32>, vector<2x8x16xf32>, vector<2x8x8xf32> -> vector<2x8x8xf32>
    %184 = vector.shape_cast %34 : vector<8x8xf32> to vector<1x8x8xf32>
    %185 = vector.broadcast %184 : vector<1x8x8xf32> to vector<2x8x8xf32>
    %186 = arith.addf %183, %185 : vector<2x8x8xf32>
    %cst_98 = arith.constant dense<0xFF800000> : vector<2x8xf32>
    %187 = vector.multi_reduction <maximumf>, %186, %cst_98 [2] : vector<2x8x8xf32> to vector<2x8xf32>
    %188 = vector.shape_cast %187 : vector<2x8xf32> to vector<2x8x1xf32>
    %189 = vector.broadcast %188 : vector<2x8x1xf32> to vector<2x8x8xf32>
    %190 = arith.subf %186, %189 : vector<2x8x8xf32>
    %191 = math.exp %190 : vector<2x8x8xf32>
    %cst_99 = arith.constant dense<0.000000e+00> : vector<2x8xf32>
    %192 = vector.multi_reduction <add>, %191, %cst_99 [2] : vector<2x8x8xf32> to vector<2x8xf32>
    %193 = vector.shape_cast %192 : vector<2x8xf32> to vector<2x8x1xf32>
    %cst_100 = arith.constant dense<0.000000e+00> : vector<2x8x16xf32>
    %194 = tpu.matmul %191, %182, %cst_100 {dimension_numbers = #tpu.dot_dimension_numbers<[2], [1], [1], [2], [0, 0, 0, 1, 1, 2], [0], [0]>} : vector<2x8x8xf32>, vector<2x8x16xf32>, vector<2x8x16xf32> -> vector<2x8x16xf32>
    %195 = tpu.reciprocal %193 {approx = true} : vector<2x8x1xf32> -> vector<2x8x1xf32>
    %196 = vector.broadcast %195 : vector<2x8x1xf32> to vector<2x8x16xf32>
    %197 = arith.mulf %194, %196 : vector<2x8x16xf32>
    %198 = vector.extract_strided_slice %197 {offsets = [0, 0, 0], sizes = [1, 8, 16], strides = [1, 1, 1]} : vector<2x8x16xf32> to vector<1x8x16xf32>
    %199 = vector.shape_cast %198 : vector<1x8x16xf32> to vector<8x16xf32>
    %200 = vector.extract_strided_slice %197 {offsets = [1, 0, 0], sizes = [1, 8, 16], strides = [1, 1, 1]} : vector<2x8x16xf32> to vector<1x8x16xf32>
    %201 = vector.shape_cast %200 : vector<1x8x16xf32> to vector<8x16xf32>
    %202 = tpu.concatenate %199, %201 in 1 : vector<8x16xf32>, vector<8x16xf32> -> vector<8x32xf32>
    %c1_101 = arith.constant 1 : index
    %c0_102 = arith.constant 0 : index
    %c0_103 = arith.constant 0 : index
    %203 = vector.load %arg12[%c1_101, %c0_102, %c0_103] : memref<2x32x32xbf16, #tpu.memory_space<vmem>>, vector<1x32x32xbf16>
    %204 = vector.shape_cast %203 : vector<1x32x32xbf16> to vector<32x32xbf16>
    %205 = arith.truncf %202 : vector<8x32xf32> to vector<8x32xbf16>
    %cst_104 = arith.constant dense<0.000000e+00> : vector<8x32xf32>
    %206 = tpu.matmul %205, %204, %cst_104 {dimension_numbers = #tpu.dot_dimension_numbers<[1], [0], [0], [1], [0, 0, 1, 1], [], []>} : vector<8x32xbf16>, vector<32x32xbf16>, vector<8x32xf32> -> vector<8x32xf32>
    %c0_105 = arith.constant 0 : index
    %c1_106 = arith.constant 1 : index
    %c0_107 = arith.constant 0 : index
    %c0_108 = arith.constant 0 : index
    %207 = vector.load %arg17[%c0_105, %c1_106, %c0_107, %c0_108] : memref<6x2x1x32xf32, #tpu.memory_space<vmem>>, vector<1x1x1x32xf32>
    %208 = vector.shape_cast %207 : vector<1x1x1x32xf32> to vector<1x32xf32>
    %209 = vector.broadcast %208 : vector<1x32xf32> to vector<8x32xf32>
    %210 = arith.addf %206, %209 : vector<8x32xf32>
    %211 = arith.addf %156, %210 : vector<8x32xf32>
    %c2_109 = arith.constant 2 : index
    %c1_110 = arith.constant 1 : index
    %c0_111 = arith.constant 0 : index
    %c0_112 = arith.constant 0 : index
    %212 = vector.load %arg17[%c2_109, %c1_110, %c0_111, %c0_112] : memref<6x2x1x32xf32, #tpu.memory_space<vmem>>, vector<1x1x1x32xf32>
    %213 = vector.shape_cast %212 : vector<1x1x1x32xf32> to vector<1x32xf32>
    %c3_113 = arith.constant 3 : index
    %c1_114 = arith.constant 1 : index
    %c0_115 = arith.constant 0 : index
    %c0_116 = arith.constant 0 : index
    %214 = vector.load %arg17[%c3_113, %c1_114, %c0_115, %c0_116] : memref<6x2x1x32xf32, #tpu.memory_space<vmem>>, vector<1x1x1x32xf32>
    %215 = vector.shape_cast %214 : vector<1x1x1x32xf32> to vector<1x32xf32>
    %cst_117 = arith.constant dense<0.000000e+00> : vector<8xf32>
    %216 = vector.multi_reduction <add>, %211, %cst_117 [1] : vector<8x32xf32> to vector<8xf32>
    %217 = vector.shape_cast %216 : vector<8xf32> to vector<8x1xf32>
    %cst_118 = arith.constant 3.200000e+01 : f32
    %218 = vector.broadcast %cst_118 : f32 to vector<8x1xf32>
    %219 = arith.divf %217, %218 : vector<8x1xf32>
    %220 = vector.broadcast %219 : vector<8x1xf32> to vector<8x32xf32>
    %221 = arith.subf %211, %220 : vector<8x32xf32>
    %222 = arith.mulf %221, %221 : vector<8x32xf32>
    %cst_119 = arith.constant dense<0.000000e+00> : vector<8xf32>
    %223 = vector.multi_reduction <add>, %222, %cst_119 [1] : vector<8x32xf32> to vector<8xf32>
    %224 = vector.shape_cast %223 : vector<8xf32> to vector<8x1xf32>
    %cst_120 = arith.constant 3.200000e+01 : f32
    %225 = vector.broadcast %cst_120 : f32 to vector<8x1xf32>
    %226 = arith.divf %224, %225 : vector<8x1xf32>
    %cst_121 = arith.constant 9.99999974E-6 : f32
    %227 = vector.broadcast %cst_121 : f32 to vector<8x1xf32>
    %228 = arith.addf %226, %227 : vector<8x1xf32>
    %229 = math.rsqrt %228 : vector<8x1xf32>
    %230 = vector.broadcast %229 : vector<8x1xf32> to vector<8x32xf32>
    %231 = arith.mulf %221, %230 : vector<8x32xf32>
    %232 = vector.broadcast %213 : vector<1x32xf32> to vector<8x32xf32>
    %233 = arith.mulf %231, %232 : vector<8x32xf32>
    %234 = vector.broadcast %215 : vector<1x32xf32> to vector<8x32xf32>
    %235 = arith.addf %233, %234 : vector<8x32xf32>
    %c1_122 = arith.constant 1 : index
    %c0_123 = arith.constant 0 : index
    %c0_124 = arith.constant 0 : index
    %236 = vector.load %arg13[%c1_122, %c0_123, %c0_124] : memref<2x32x128xbf16, #tpu.memory_space<vmem>>, vector<1x32x128xbf16>
    %237 = vector.shape_cast %236 : vector<1x32x128xbf16> to vector<32x128xbf16>
    %238 = arith.truncf %235 : vector<8x32xf32> to vector<8x32xbf16>
    %cst_125 = arith.constant dense<0.000000e+00> : vector<8x128xf32>
    %239 = tpu.matmul %238, %237, %cst_125 {dimension_numbers = #tpu.dot_dimension_numbers<[1], [0], [0], [1], [0, 0, 1, 1], [], []>} : vector<8x32xbf16>, vector<32x128xbf16>, vector<8x128xf32> -> vector<8x128xf32>
    %c1_126 = arith.constant 1 : index
    %c0_127 = arith.constant 0 : index
    %c0_128 = arith.constant 0 : index
    %240 = vector.load %arg16[%c1_126, %c0_127, %c0_128] : memref<2x1x128xf32, #tpu.memory_space<vmem>>, vector<1x1x128xf32>
    %241 = vector.shape_cast %240 : vector<1x1x128xf32> to vector<1x128xf32>
    %242 = vector.broadcast %241 : vector<1x128xf32> to vector<8x128xf32>
    %243 = arith.addf %239, %242 : vector<8x128xf32>
    %cst_129 = arith.constant 0.000000e+00 : f32
    %244 = vector.broadcast %cst_129 : f32 to vector<8x128xf32>
    %245 = arith.maximumf %243, %244 : vector<8x128xf32>
    %c1_130 = arith.constant 1 : index
    %c0_131 = arith.constant 0 : index
    %c0_132 = arith.constant 0 : index
    %246 = vector.load %arg14[%c1_130, %c0_131, %c0_132] : memref<2x128x32xbf16, #tpu.memory_space<vmem>>, vector<1x128x32xbf16>
    %247 = vector.shape_cast %246 : vector<1x128x32xbf16> to vector<128x32xbf16>
    %248 = arith.truncf %245 : vector<8x128xf32> to vector<8x128xbf16>
    %cst_133 = arith.constant dense<0.000000e+00> : vector<8x32xf32>
    %249 = tpu.matmul %248, %247, %cst_133 {dimension_numbers = #tpu.dot_dimension_numbers<[1], [0], [0], [1], [0, 0, 1, 1], [], []>} : vector<8x128xbf16>, vector<128x32xbf16>, vector<8x32xf32> -> vector<8x32xf32>
    %c1_134 = arith.constant 1 : index
    %c1_135 = arith.constant 1 : index
    %c0_136 = arith.constant 0 : index
    %c0_137 = arith.constant 0 : index
    %250 = vector.load %arg17[%c1_134, %c1_135, %c0_136, %c0_137] : memref<6x2x1x32xf32, #tpu.memory_space<vmem>>, vector<1x1x1x32xf32>
    %251 = vector.shape_cast %250 : vector<1x1x1x32xf32> to vector<1x32xf32>
    %252 = vector.broadcast %251 : vector<1x32xf32> to vector<8x32xf32>
    %253 = arith.addf %249, %252 : vector<8x32xf32>
    %254 = arith.addf %235, %253 : vector<8x32xf32>
    %c4_138 = arith.constant 4 : index
    %c1_139 = arith.constant 1 : index
    %c0_140 = arith.constant 0 : index
    %c0_141 = arith.constant 0 : index
    %255 = vector.load %arg17[%c4_138, %c1_139, %c0_140, %c0_141] : memref<6x2x1x32xf32, #tpu.memory_space<vmem>>, vector<1x1x1x32xf32>
    %256 = vector.shape_cast %255 : vector<1x1x1x32xf32> to vector<1x32xf32>
    %c5_142 = arith.constant 5 : index
    %c1_143 = arith.constant 1 : index
    %c0_144 = arith.constant 0 : index
    %c0_145 = arith.constant 0 : index
    %257 = vector.load %arg17[%c5_142, %c1_143, %c0_144, %c0_145] : memref<6x2x1x32xf32, #tpu.memory_space<vmem>>, vector<1x1x1x32xf32>
    %258 = vector.shape_cast %257 : vector<1x1x1x32xf32> to vector<1x32xf32>
    %cst_146 = arith.constant dense<0.000000e+00> : vector<8xf32>
    %259 = vector.multi_reduction <add>, %254, %cst_146 [1] : vector<8x32xf32> to vector<8xf32>
    %260 = vector.shape_cast %259 : vector<8xf32> to vector<8x1xf32>
    %cst_147 = arith.constant 3.200000e+01 : f32
    %261 = vector.broadcast %cst_147 : f32 to vector<8x1xf32>
    %262 = arith.divf %260, %261 : vector<8x1xf32>
    %263 = vector.broadcast %262 : vector<8x1xf32> to vector<8x32xf32>
    %264 = arith.subf %254, %263 : vector<8x32xf32>
    %265 = arith.mulf %264, %264 : vector<8x32xf32>
    %cst_148 = arith.constant dense<0.000000e+00> : vector<8xf32>
    %266 = vector.multi_reduction <add>, %265, %cst_148 [1] : vector<8x32xf32> to vector<8xf32>
    %267 = vector.shape_cast %266 : vector<8xf32> to vector<8x1xf32>
    %cst_149 = arith.constant 3.200000e+01 : f32
    %268 = vector.broadcast %cst_149 : f32 to vector<8x1xf32>
    %269 = arith.divf %267, %268 : vector<8x1xf32>
    %cst_150 = arith.constant 9.99999974E-6 : f32
    %270 = vector.broadcast %cst_150 : f32 to vector<8x1xf32>
    %271 = arith.addf %269, %270 : vector<8x1xf32>
    %272 = math.rsqrt %271 : vector<8x1xf32>
    %273 = vector.broadcast %272 : vector<8x1xf32> to vector<8x32xf32>
    %274 = arith.mulf %264, %273 : vector<8x32xf32>
    %275 = vector.broadcast %256 : vector<1x32xf32> to vector<8x32xf32>
    %276 = arith.mulf %274, %275 : vector<8x32xf32>
    %277 = vector.broadcast %258 : vector<1x32xf32> to vector<8x32xf32>
    %278 = arith.addf %276, %277 : vector<8x32xf32>
    %cst_151 = arith.constant dense<0.000000e+00> : vector<8xf32>
    %279 = vector.multi_reduction <add>, %278, %cst_151 [1] : vector<8x32xf32> to vector<8xf32>
    %280 = vector.shape_cast %279 : vector<8xf32> to vector<8x1xf32>
    %cst_152 = arith.constant 3.200000e+01 : f32
    %281 = vector.broadcast %cst_152 : f32 to vector<8x1xf32>
    %282 = arith.divf %280, %281 : vector<8x1xf32>
    %283 = vector.broadcast %282 : vector<8x1xf32> to vector<8x32xf32>
    %284 = arith.subf %278, %283 : vector<8x32xf32>
    %285 = arith.mulf %284, %284 : vector<8x32xf32>
    %cst_153 = arith.constant dense<0.000000e+00> : vector<8xf32>
    %286 = vector.multi_reduction <add>, %285, %cst_153 [1] : vector<8x32xf32> to vector<8xf32>
    %287 = vector.shape_cast %286 : vector<8xf32> to vector<8x1xf32>
    %cst_154 = arith.constant 3.200000e+01 : f32
    %288 = vector.broadcast %cst_154 : f32 to vector<8x1xf32>
    %289 = arith.divf %287, %288 : vector<8x1xf32>
    %cst_155 = arith.constant 9.99999974E-6 : f32
    %290 = vector.broadcast %cst_155 : f32 to vector<8x1xf32>
    %291 = arith.addf %289, %290 : vector<8x1xf32>
    %292 = math.rsqrt %291 : vector<8x1xf32>
    %293 = vector.broadcast %292 : vector<8x1xf32> to vector<8x32xf32>
    %294 = arith.mulf %284, %293 : vector<8x32xf32>
    %295 = vector.broadcast %9 : vector<1x32xf32> to vector<8x32xf32>
    %296 = arith.mulf %294, %295 : vector<8x32xf32>
    %297 = vector.broadcast %11 : vector<1x32xf32> to vector<8x32xf32>
    %298 = arith.addf %296, %297 : vector<8x32xf32>
    %299 = vector.extract_strided_slice %298 {offsets = [0, 0], sizes = [1, 32], strides = [1, 1]} : vector<8x32xf32> to vector<1x32xf32>
    %c0_156 = arith.constant 0 : index
    %c0_157 = arith.constant 0 : index
    %c0_158 = arith.constant 0 : index
    %300 = vector.load %arg27[%c0_156, %c0_157, %c0_158] : memref<2x32x128xbf16, #tpu.memory_space<vmem>>, vector<1x32x128xbf16>
    %301 = vector.shape_cast %300 : vector<1x32x128xbf16> to vector<32x128xbf16>
    %302 = arith.truncf %299 : vector<1x32xf32> to vector<1x32xbf16>
    %cst_159 = arith.constant dense<0.000000e+00> : vector<1x128xf32>
    %303 = tpu.matmul %302, %301, %cst_159 {dimension_numbers = #tpu.dot_dimension_numbers<[1], [0], [0], [1], [0, 0, 1, 1], [], []>} : vector<1x32xbf16>, vector<32x128xbf16>, vector<1x128xf32> -> vector<1x128xf32>
    %c0_160 = arith.constant 0 : index
    %c0_161 = arith.constant 0 : index
    %c0_162 = arith.constant 0 : index
    %304 = vector.load %arg28[%c0_160, %c0_161, %c0_162] : memref<2x1x128xf32, #tpu.memory_space<vmem>>, vector<1x1x128xf32>
    %305 = vector.shape_cast %304 : vector<1x1x128xf32> to vector<1x128xf32>
    %306 = arith.addf %303, %305 : vector<1x128xf32>
    %c0_163 = arith.constant 0 : index
    %c0_164 = arith.constant 0 : index
    %c0_165 = arith.constant 0 : index
    %307 = vector.load %arg29[%c0_163, %c0_164, %c0_165] : memref<1x1x128xf32, #tpu.memory_space<vmem>>, vector<1x1x128xf32>
    %308 = vector.shape_cast %307 : vector<1x1x128xf32> to vector<1x128xf32>
    %309 = vector.shape_cast %306 : vector<1x128xf32> to vector<1x1x128xf32>
    tpu.vector_store %arg29[%c0_163, %c0_164, %c0_165], %309 {strides = array<i32>} : memref<1x1x128xf32, #tpu.memory_space<vmem>>, vector<1x1x128xf32>,
    %c0_166 = arith.constant 0 : index
    %c0_167 = arith.constant 0 : index
    %310 = vector.load %arg20[%c0_166, %c0_167] : memref<32x128xbf16, #tpu.memory_space<vmem>>, vector<32x128xbf16>
    %311 = arith.truncf %298 : vector<8x32xf32> to vector<8x32xbf16>
    %cst_168 = arith.constant dense<0.000000e+00> : vector<8x128xf32>
    %312 = tpu.matmul %311, %310, %cst_168 {dimension_numbers = #tpu.dot_dimension_numbers<[1], [0], [0], [1], [0, 0, 1, 1], [], []>} : vector<8x32xbf16>, vector<32x128xbf16>, vector<8x128xf32> -> vector<8x128xf32>
    %c0_169 = arith.constant 0 : index
    %c0_170 = arith.constant 0 : index
    %313 = vector.load %arg24[%c0_169, %c0_170] : memref<1x128xf32, #tpu.memory_space<vmem>>, vector<1x128xf32>
    %314 = vector.broadcast %313 : vector<1x128xf32> to vector<8x128xf32>
    %315 = arith.addf %312, %314 : vector<8x128xf32>
    %c0_171 = arith.constant 0 : index
    %c0_172 = arith.constant 0 : index
    %316 = vector.load %arg5[%c0_171, %c0_172] : memref<8x8xf32, #tpu.memory_space<vmem>>, vector<8x8xf32>
    %c1_173 = arith.constant 1 : index
    %c0_174 = arith.constant 0 : index
    %c0_175 = arith.constant 0 : index
    %317 = vector.load %arg9[%c1_173, %c0_174, %c0_175] : memref<2x8x32xbf16, #tpu.memory_space<vmem>>, vector<1x8x32xbf16>
    %318 = vector.shape_cast %317 : vector<1x8x32xbf16> to vector<8x32xbf16>
    %319 = arith.truncf %316 : vector<8x8xf32> to vector<8x8xbf16>
    %cst_176 = arith.constant dense<0.000000e+00> : vector<8x32xf32>
    %320 = tpu.matmul %319, %318, %cst_176 {dimension_numbers = #tpu.dot_dimension_numbers<[1], [0], [0], [1], [0, 0, 1, 1], [], []>} : vector<8x8xbf16>, vector<8x32xbf16>, vector<8x32xf32> -> vector<8x32xf32>
    %321 = vector.broadcast %7 : vector<1x32xf32> to vector<8x32xf32>
    %322 = arith.addf %320, %321 : vector<8x32xf32>
    %c0_177 = arith.constant 0 : index
    %c0_178 = arith.constant 0 : index
    %323 = vector.load %arg4[%c0_177, %c0_178] : memref<8x32xf32, #tpu.memory_space<vmem>>, vector<8x32xf32>
    %324 = arith.addf %322, %323 : vector<8x32xf32>
    %c0_179 = arith.constant 0 : index
    %c0_180 = arith.constant 0 : index
    %c0_181 = arith.constant 0 : index
    %325 = vector.load %arg7[%c0_179, %c0_180, %c0_181] : memref<1x8x8xf32, #tpu.memory_space<vmem>>, vector<1x8x8xf32>
    %326 = vector.shape_cast %325 : vector<1x8x8xf32> to vector<8x8xf32>
    %c0_182 = arith.constant 0 : index
    %c0_183 = arith.constant 0 : index
    %c0_184 = arith.constant 0 : index
    %327 = vector.load %arg8[%c0_182, %c0_183, %c0_184] : memref<1x8x8xf32, #tpu.memory_space<vmem>>, vector<1x8x8xf32>
    %328 = vector.shape_cast %327 : vector<1x8x8xf32> to vector<8x8xf32>
    %c0_185 = arith.constant 0 : index
    %c0_186 = arith.constant 0 : index
    %c0_187 = arith.constant 0 : index
    %329 = vector.load %arg18[%c0_185, %c0_186, %c0_187] : memref<2x32x96xbf16, #tpu.memory_space<vmem>>, vector<1x32x96xbf16>
    %330 = vector.shape_cast %329 : vector<1x32x96xbf16> to vector<32x96xbf16>
    %331 = arith.truncf %324 : vector<8x32xf32> to vector<8x32xbf16>
    %cst_188 = arith.constant dense<0.000000e+00> : vector<8x96xf32>
    %332 = tpu.matmul %331, %330, %cst_188 {dimension_numbers = #tpu.dot_dimension_numbers<[1], [0], [0], [1], [0, 0, 1, 1], [], []>} : vector<8x32xbf16>, vector<32x96xbf16>, vector<8x96xf32> -> vector<8x96xf32>
    %c0_189 = arith.constant 0 : index
    %c0_190 = arith.constant 0 : index
    %c0_191 = arith.constant 0 : index
    %333 = vector.load %arg23[%c0_189, %c0_190, %c0_191] : memref<2x1x96xf32, #tpu.memory_space<vmem>>, vector<1x1x96xf32>
    %334 = vector.shape_cast %333 : vector<1x1x96xf32> to vector<1x96xf32>
    %335 = vector.broadcast %334 : vector<1x96xf32> to vector<8x96xf32>
    %336 = arith.addf %332, %335 : vector<8x96xf32>
    %337 = vector.extract_strided_slice %336 {offsets = [0, 0], sizes = [8, 32], strides = [1, 1]} : vector<8x96xf32> to vector<8x32xf32>
    %338 = vector.extract_strided_slice %336 {offsets = [0, 32], sizes = [8, 32], strides = [1, 1]} : vector<8x96xf32> to vector<8x32xf32>
    %339 = vector.extract_strided_slice %336 {offsets = [0, 64], sizes = [8, 32], strides = [1, 1]} : vector<8x96xf32> to vector<8x32xf32>
    %340 = vector.extract_strided_slice %337 {offsets = [0, 0], sizes = [8, 16], strides = [1, 1]} : vector<8x32xf32> to vector<8x16xf32>
    %341 = vector.extract_strided_slice %337 {offsets = [0, 16], sizes = [8, 16], strides = [1, 1]} : vector<8x32xf32> to vector<8x16xf32>
    %342 = vector.shape_cast %340 : vector<8x16xf32> to vector<1x8x16xf32>
    %343 = vector.shape_cast %341 : vector<8x16xf32> to vector<1x8x16xf32>
    %344 = tpu.concatenate %342, %343 in 0 : vector<1x8x16xf32>, vector<1x8x16xf32> -> vector<2x8x16xf32>
    %345 = vector.extract_strided_slice %338 {offsets = [0, 0], sizes = [8, 16], strides = [1, 1]} : vector<8x32xf32> to vector<8x16xf32>
    %346 = vector.extract_strided_slice %338 {offsets = [0, 16], sizes = [8, 16], strides = [1, 1]} : vector<8x32xf32> to vector<8x16xf32>
    %347 = vector.shape_cast %345 : vector<8x16xf32> to vector<1x8x16xf32>
    %348 = vector.shape_cast %346 : vector<8x16xf32> to vector<1x8x16xf32>
    %349 = tpu.concatenate %347, %348 in 0 : vector<1x8x16xf32>, vector<1x8x16xf32> -> vector<2x8x16xf32>
    %350 = vector.extract_strided_slice %339 {offsets = [0, 0], sizes = [8, 16], strides = [1, 1]} : vector<8x32xf32> to vector<8x16xf32>
    %351 = vector.extract_strided_slice %339 {offsets = [0, 16], sizes = [8, 16], strides = [1, 1]} : vector<8x32xf32> to vector<8x16xf32>
    %352 = vector.shape_cast %350 : vector<8x16xf32> to vector<1x8x16xf32>
    %353 = vector.shape_cast %351 : vector<8x16xf32> to vector<1x8x16xf32>
    %354 = tpu.concatenate %352, %353 in 0 : vector<1x8x16xf32>, vector<1x8x16xf32> -> vector<2x8x16xf32>
    %cst_192 = arith.constant dense<0.000000e+00> : vector<2x8x8xf32>
    %355 = tpu.matmul %344, %349, %cst_192 {dimension_numbers = #tpu.dot_dimension_numbers<[2], [2], [1], [1], [0, 0, 0, 1, 1, 1], [0], [0]>} : vector<2x8x16xf32>, vector<2x8x16xf32>, vector<2x8x8xf32> -> vector<2x8x8xf32>
    %356 = vector.shape_cast %326 : vector<8x8xf32> to vector<1x8x8xf32>
    %357 = vector.broadcast %356 : vector<1x8x8xf32> to vector<2x8x8xf32>
    %358 = arith.addf %355, %357 : vector<2x8x8xf32>
    %cst_193 = arith.constant dense<0xFF800000> : vector<2x8xf32>
    %359 = vector.multi_reduction <maximumf>, %358, %cst_193 [2] : vector<2x8x8xf32> to vector<2x8xf32>
    %360 = vector.shape_cast %359 : vector<2x8xf32> to vector<2x8x1xf32>
    %361 = vector.broadcast %360 : vector<2x8x1xf32> to vector<2x8x8xf32>
    %362 = arith.subf %358, %361 : vector<2x8x8xf32>
    %363 = math.exp %362 : vector<2x8x8xf32>
    %cst_194 = arith.constant dense<0.000000e+00> : vector<2x8xf32>
    %364 = vector.multi_reduction <add>, %363, %cst_194 [2] : vector<2x8x8xf32> to vector<2x8xf32>
    %365 = vector.shape_cast %364 : vector<2x8xf32> to vector<2x8x1xf32>
    %cst_195 = arith.constant dense<0.000000e+00> : vector<2x8x16xf32>
    %366 = tpu.matmul %363, %354, %cst_195 {dimension_numbers = #tpu.dot_dimension_numbers<[2], [1], [1], [2], [0, 0, 0, 1, 1, 2], [0], [0]>} : vector<2x8x8xf32>, vector<2x8x16xf32>, vector<2x8x16xf32> -> vector<2x8x16xf32>
    %367 = tpu.reciprocal %365 {approx = true} : vector<2x8x1xf32> -> vector<2x8x1xf32>
    %368 = vector.broadcast %367 : vector<2x8x1xf32> to vector<2x8x16xf32>
    %369 = arith.mulf %366, %368 : vector<2x8x16xf32>
    %370 = vector.extract_strided_slice %369 {offsets = [0, 0, 0], sizes = [1, 8, 16], strides = [1, 1, 1]} : vector<2x8x16xf32> to vector<1x8x16xf32>
    %371 = vector.shape_cast %370 : vector<1x8x16xf32> to vector<8x16xf32>
    %372 = vector.extract_strided_slice %369 {offsets = [1, 0, 0], sizes = [1, 8, 16], strides = [1, 1, 1]} : vector<2x8x16xf32> to vector<1x8x16xf32>
    %373 = vector.shape_cast %372 : vector<1x8x16xf32> to vector<8x16xf32>
    %374 = tpu.concatenate %371, %373 in 1 : vector<8x16xf32>, vector<8x16xf32> -> vector<8x32xf32>
    %c0_196 = arith.constant 0 : index
    %c0_197 = arith.constant 0 : index
    %c0_198 = arith.constant 0 : index
    %c0_199 = arith.constant 0 : index
    %375 = vector.load %arg19[%c0_196, %c0_197, %c0_198, %c0_199] : memref<3x2x32x32xbf16, #tpu.memory_space<vmem>>, vector<1x1x32x32xbf16>
    %376 = vector.shape_cast %375 : vector<1x1x32x32xbf16> to vector<32x32xbf16>
    %377 = arith.truncf %374 : vector<8x32xf32> to vector<8x32xbf16>
    %cst_200 = arith.constant dense<0.000000e+00> : vector<8x32xf32>
    %378 = tpu.matmul %377, %376, %cst_200 {dimension_numbers = #tpu.dot_dimension_numbers<[1], [0], [0], [1], [0, 0, 1, 1], [], []>} : vector<8x32xbf16>, vector<32x32xbf16>, vector<8x32xf32> -> vector<8x32xf32>
    %c0_201 = arith.constant 0 : index
    %c0_202 = arith.constant 0 : index
    %c0_203 = arith.constant 0 : index
    %c0_204 = arith.constant 0 : index
    %379 = vector.load %arg26[%c0_201, %c0_202, %c0_203, %c0_204] : memref<10x2x1x32xf32, #tpu.memory_space<vmem>>, vector<1x1x1x32xf32>
    %380 = vector.shape_cast %379 : vector<1x1x1x32xf32> to vector<1x32xf32>
    %381 = vector.broadcast %380 : vector<1x32xf32> to vector<8x32xf32>
    %382 = arith.addf %378, %381 : vector<8x32xf32>
    %383 = arith.addf %324, %382 : vector<8x32xf32>
    %c4_205 = arith.constant 4 : index
    %c0_206 = arith.constant 0 : index
    %c0_207 = arith.constant 0 : index
    %c0_208 = arith.constant 0 : index
    %384 = vector.load %arg26[%c4_205, %c0_206, %c0_207, %c0_208] : memref<10x2x1x32xf32, #tpu.memory_space<vmem>>, vector<1x1x1x32xf32>
    %385 = vector.shape_cast %384 : vector<1x1x1x32xf32> to vector<1x32xf32>
    %c5_209 = arith.constant 5 : index
    %c0_210 = arith.constant 0 : index
    %c0_211 = arith.constant 0 : index
    %c0_212 = arith.constant 0 : index
    %386 = vector.load %arg26[%c5_209, %c0_210, %c0_211, %c0_212] : memref<10x2x1x32xf32, #tpu.memory_space<vmem>>, vector<1x1x1x32xf32>
    %387 = vector.shape_cast %386 : vector<1x1x1x32xf32> to vector<1x32xf32>
    %cst_213 = arith.constant dense<0.000000e+00> : vector<8xf32>
    %388 = vector.multi_reduction <add>, %383, %cst_213 [1] : vector<8x32xf32> to vector<8xf32>
    %389 = vector.shape_cast %388 : vector<8xf32> to vector<8x1xf32>
    %cst_214 = arith.constant 3.200000e+01 : f32
    %390 = vector.broadcast %cst_214 : f32 to vector<8x1xf32>
    %391 = arith.divf %389, %390 : vector<8x1xf32>
    %392 = vector.broadcast %391 : vector<8x1xf32> to vector<8x32xf32>
    %393 = arith.subf %383, %392 : vector<8x32xf32>
    %394 = arith.mulf %393, %393 : vector<8x32xf32>
    %cst_215 = arith.constant dense<0.000000e+00> : vector<8xf32>
    %395 = vector.multi_reduction <add>, %394, %cst_215 [1] : vector<8x32xf32> to vector<8xf32>
    %396 = vector.shape_cast %395 : vector<8xf32> to vector<8x1xf32>
    %cst_216 = arith.constant 3.200000e+01 : f32
    %397 = vector.broadcast %cst_216 : f32 to vector<8x1xf32>
    %398 = arith.divf %396, %397 : vector<8x1xf32>
    %cst_217 = arith.constant 9.99999974E-6 : f32
    %399 = vector.broadcast %cst_217 : f32 to vector<8x1xf32>
    %400 = arith.addf %398, %399 : vector<8x1xf32>
    %401 = math.rsqrt %400 : vector<8x1xf32>
    %402 = vector.broadcast %401 : vector<8x1xf32> to vector<8x32xf32>
    %403 = arith.mulf %393, %402 : vector<8x32xf32>
    %404 = vector.broadcast %385 : vector<1x32xf32> to vector<8x32xf32>
    %405 = arith.mulf %403, %404 : vector<8x32xf32>
    %406 = vector.broadcast %387 : vector<1x32xf32> to vector<8x32xf32>
    %407 = arith.addf %405, %406 : vector<8x32xf32>
    %c1_218 = arith.constant 1 : index
    %c0_219 = arith.constant 0 : index
    %c0_220 = arith.constant 0 : index
    %c0_221 = arith.constant 0 : index
    %408 = vector.load %arg19[%c1_218, %c0_219, %c0_220, %c0_221] : memref<3x2x32x32xbf16, #tpu.memory_space<vmem>>, vector<1x1x32x32xbf16>
    %409 = vector.shape_cast %408 : vector<1x1x32x32xbf16> to vector<32x32xbf16>
    %410 = arith.truncf %407 : vector<8x32xf32> to vector<8x32xbf16>
    %cst_222 = arith.constant dense<0.000000e+00> : vector<8x32xf32>
    %411 = tpu.matmul %410, %409, %cst_222 {dimension_numbers = #tpu.dot_dimension_numbers<[1], [0], [0], [1], [0, 0, 1, 1], [], []>} : vector<8x32xbf16>, vector<32x32xbf16>, vector<8x32xf32> -> vector<8x32xf32>
    %c1_223 = arith.constant 1 : index
    %c0_224 = arith.constant 0 : index
    %c0_225 = arith.constant 0 : index
    %c0_226 = arith.constant 0 : index
    %412 = vector.load %arg26[%c1_223, %c0_224, %c0_225, %c0_226] : memref<10x2x1x32xf32, #tpu.memory_space<vmem>>, vector<1x1x1x32xf32>
    %413 = vector.shape_cast %412 : vector<1x1x1x32xf32> to vector<1x32xf32>
    %414 = vector.broadcast %413 : vector<1x32xf32> to vector<8x32xf32>
    %415 = arith.addf %411, %414 : vector<8x32xf32>
    %416 = vector.extract_strided_slice %315 {offsets = [0, 0], sizes = [8, 32], strides = [1, 1]} : vector<8x128xf32> to vector<8x32xf32>
    %417 = vector.extract_strided_slice %315 {offsets = [0, 32], sizes = [8, 32], strides = [1, 1]} : vector<8x128xf32> to vector<8x32xf32>
    %418 = vector.extract_strided_slice %415 {offsets = [0, 0], sizes = [8, 16], strides = [1, 1]} : vector<8x32xf32> to vector<8x16xf32>
    %419 = vector.extract_strided_slice %415 {offsets = [0, 16], sizes = [8, 16], strides = [1, 1]} : vector<8x32xf32> to vector<8x16xf32>
    %420 = vector.shape_cast %418 : vector<8x16xf32> to vector<1x8x16xf32>
    %421 = vector.shape_cast %419 : vector<8x16xf32> to vector<1x8x16xf32>
    %422 = tpu.concatenate %420, %421 in 0 : vector<1x8x16xf32>, vector<1x8x16xf32> -> vector<2x8x16xf32>
    %423 = vector.extract_strided_slice %416 {offsets = [0, 0], sizes = [8, 16], strides = [1, 1]} : vector<8x32xf32> to vector<8x16xf32>
    %424 = vector.extract_strided_slice %416 {offsets = [0, 16], sizes = [8, 16], strides = [1, 1]} : vector<8x32xf32> to vector<8x16xf32>
    %425 = vector.shape_cast %423 : vector<8x16xf32> to vector<1x8x16xf32>
    %426 = vector.shape_cast %424 : vector<8x16xf32> to vector<1x8x16xf32>
    %427 = tpu.concatenate %425, %426 in 0 : vector<1x8x16xf32>, vector<1x8x16xf32> -> vector<2x8x16xf32>
    %428 = vector.extract_strided_slice %417 {offsets = [0, 0], sizes = [8, 16], strides = [1, 1]} : vector<8x32xf32> to vector<8x16xf32>
    %429 = vector.extract_strided_slice %417 {offsets = [0, 16], sizes = [8, 16], strides = [1, 1]} : vector<8x32xf32> to vector<8x16xf32>
    %430 = vector.shape_cast %428 : vector<8x16xf32> to vector<1x8x16xf32>
    %431 = vector.shape_cast %429 : vector<8x16xf32> to vector<1x8x16xf32>
    %432 = tpu.concatenate %430, %431 in 0 : vector<1x8x16xf32>, vector<1x8x16xf32> -> vector<2x8x16xf32>
    %cst_227 = arith.constant dense<0.000000e+00> : vector<2x8x8xf32>
    %433 = tpu.matmul %422, %427, %cst_227 {dimension_numbers = #tpu.dot_dimension_numbers<[2], [2], [1], [1], [0, 0, 0, 1, 1, 1], [0], [0]>} : vector<2x8x16xf32>, vector<2x8x16xf32>, vector<2x8x8xf32> -> vector<2x8x8xf32>
    %434 = vector.shape_cast %328 : vector<8x8xf32> to vector<1x8x8xf32>
    %435 = vector.broadcast %434 : vector<1x8x8xf32> to vector<2x8x8xf32>
    %436 = arith.addf %433, %435 : vector<2x8x8xf32>
    %cst_228 = arith.constant dense<0xFF800000> : vector<2x8xf32>
    %437 = vector.multi_reduction <maximumf>, %436, %cst_228 [2] : vector<2x8x8xf32> to vector<2x8xf32>
    %438 = vector.shape_cast %437 : vector<2x8xf32> to vector<2x8x1xf32>
    %439 = vector.broadcast %438 : vector<2x8x1xf32> to vector<2x8x8xf32>
    %440 = arith.subf %436, %439 : vector<2x8x8xf32>
    %441 = math.exp %440 : vector<2x8x8xf32>
    %cst_229 = arith.constant dense<0.000000e+00> : vector<2x8xf32>
    %442 = vector.multi_reduction <add>, %441, %cst_229 [2] : vector<2x8x8xf32> to vector<2x8xf32>
    %443 = vector.shape_cast %442 : vector<2x8xf32> to vector<2x8x1xf32>
    %cst_230 = arith.constant dense<0.000000e+00> : vector<2x8x16xf32>
    %444 = tpu.matmul %441, %432, %cst_230 {dimension_numbers = #tpu.dot_dimension_numbers<[2], [1], [1], [2], [0, 0, 0, 1, 1, 2], [0], [0]>} : vector<2x8x8xf32>, vector<2x8x16xf32>, vector<2x8x16xf32> -> vector<2x8x16xf32>
    %445 = tpu.reciprocal %443 {approx = true} : vector<2x8x1xf32> -> vector<2x8x1xf32>
    %446 = vector.broadcast %445 : vector<2x8x1xf32> to vector<2x8x16xf32>
    %447 = arith.mulf %444, %446 : vector<2x8x16xf32>
    %448 = vector.extract_strided_slice %447 {offsets = [0, 0, 0], sizes = [1, 8, 16], strides = [1, 1, 1]} : vector<2x8x16xf32> to vector<1x8x16xf32>
    %449 = vector.shape_cast %448 : vector<1x8x16xf32> to vector<8x16xf32>
    %450 = vector.extract_strided_slice %447 {offsets = [1, 0, 0], sizes = [1, 8, 16], strides = [1, 1, 1]} : vector<2x8x16xf32> to vector<1x8x16xf32>
    %451 = vector.shape_cast %450 : vector<1x8x16xf32> to vector<8x16xf32>
    %452 = tpu.concatenate %449, %451 in 1 : vector<8x16xf32>, vector<8x16xf32> -> vector<8x32xf32>
    %c2_231 = arith.constant 2 : index
    %c0_232 = arith.constant 0 : index
    %c0_233 = arith.constant 0 : index
    %c0_234 = arith.constant 0 : index
    %453 = vector.load %arg19[%c2_231, %c0_232, %c0_233, %c0_234] : memref<3x2x32x32xbf16, #tpu.memory_space<vmem>>, vector<1x1x32x32xbf16>
    %454 = vector.shape_cast %453 : vector<1x1x32x32xbf16> to vector<32x32xbf16>
    %455 = arith.truncf %452 : vector<8x32xf32> to vector<8x32xbf16>
    %cst_235 = arith.constant dense<0.000000e+00> : vector<8x32xf32>
    %456 = tpu.matmul %455, %454, %cst_235 {dimension_numbers = #tpu.dot_dimension_numbers<[1], [0], [0], [1], [0, 0, 1, 1], [], []>} : vector<8x32xbf16>, vector<32x32xbf16>, vector<8x32xf32> -> vector<8x32xf32>
    %c2_236 = arith.constant 2 : index
    %c0_237 = arith.constant 0 : index
    %c0_238 = arith.constant 0 : index
    %c0_239 = arith.constant 0 : index
    %457 = vector.load %arg26[%c2_236, %c0_237, %c0_238, %c0_239] : memref<10x2x1x32xf32, #tpu.memory_space<vmem>>, vector<1x1x1x32xf32>
    %458 = vector.shape_cast %457 : vector<1x1x1x32xf32> to vector<1x32xf32>
    %459 = vector.broadcast %458 : vector<1x32xf32> to vector<8x32xf32>
    %460 = arith.addf %456, %459 : vector<8x32xf32>
    %461 = arith.addf %407, %460 : vector<8x32xf32>
    %c6_240 = arith.constant 6 : index
    %c0_241 = arith.constant 0 : index
    %c0_242 = arith.constant 0 : index
    %c0_243 = arith.constant 0 : index
    %462 = vector.load %arg26[%c6_240, %c0_241, %c0_242, %c0_243] : memref<10x2x1x32xf32, #tpu.memory_space<vmem>>, vector<1x1x1x32xf32>
    %463 = vector.shape_cast %462 : vector<1x1x1x32xf32> to vector<1x32xf32>
    %c7_244 = arith.constant 7 : index
    %c0_245 = arith.constant 0 : index
    %c0_246 = arith.constant 0 : index
    %c0_247 = arith.constant 0 : index
    %464 = vector.load %arg26[%c7_244, %c0_245, %c0_246, %c0_247] : memref<10x2x1x32xf32, #tpu.memory_space<vmem>>, vector<1x1x1x32xf32>
    %465 = vector.shape_cast %464 : vector<1x1x1x32xf32> to vector<1x32xf32>
    %cst_248 = arith.constant dense<0.000000e+00> : vector<8xf32>
    %466 = vector.multi_reduction <add>, %461, %cst_248 [1] : vector<8x32xf32> to vector<8xf32>
    %467 = vector.shape_cast %466 : vector<8xf32> to vector<8x1xf32>
    %cst_249 = arith.constant 3.200000e+01 : f32
    %468 = vector.broadcast %cst_249 : f32 to vector<8x1xf32>
    %469 = arith.divf %467, %468 : vector<8x1xf32>
    %470 = vector.broadcast %469 : vector<8x1xf32> to vector<8x32xf32>
    %471 = arith.subf %461, %470 : vector<8x32xf32>
    %472 = arith.mulf %471, %471 : vector<8x32xf32>
    %cst_250 = arith.constant dense<0.000000e+00> : vector<8xf32>
    %473 = vector.multi_reduction <add>, %472, %cst_250 [1] : vector<8x32xf32> to vector<8xf32>
    %474 = vector.shape_cast %473 : vector<8xf32> to vector<8x1xf32>
    %cst_251 = arith.constant 3.200000e+01 : f32
    %475 = vector.broadcast %cst_251 : f32 to vector<8x1xf32>
    %476 = arith.divf %474, %475 : vector<8x1xf32>
    %cst_252 = arith.constant 9.99999974E-6 : f32
    %477 = vector.broadcast %cst_252 : f32 to vector<8x1xf32>
    %478 = arith.addf %476, %477 : vector<8x1xf32>
    %479 = math.rsqrt %478 : vector<8x1xf32>
    %480 = vector.broadcast %479 : vector<8x1xf32> to vector<8x32xf32>
    %481 = arith.mulf %471, %480 : vector<8x32xf32>
    %482 = vector.broadcast %463 : vector<1x32xf32> to vector<8x32xf32>
    %483 = arith.mulf %481, %482 : vector<8x32xf32>
    %484 = vector.broadcast %465 : vector<1x32xf32> to vector<8x32xf32>
    %485 = arith.addf %483, %484 : vector<8x32xf32>
    %c0_253 = arith.constant 0 : index
    %c0_254 = arith.constant 0 : index
    %c0_255 = arith.constant 0 : index
    %486 = vector.load %arg21[%c0_253, %c0_254, %c0_255] : memref<2x32x128xbf16, #tpu.memory_space<vmem>>, vector<1x32x128xbf16>
    %487 = vector.shape_cast %486 : vector<1x32x128xbf16> to vector<32x128xbf16>
    %488 = arith.truncf %485 : vector<8x32xf32> to vector<8x32xbf16>
    %cst_256 = arith.constant dense<0.000000e+00> : vector<8x128xf32>
    %489 = tpu.matmul %488, %487, %cst_256 {dimension_numbers = #tpu.dot_dimension_numbers<[1], [0], [0], [1], [0, 0, 1, 1], [], []>} : vector<8x32xbf16>, vector<32x128xbf16>, vector<8x128xf32> -> vector<8x128xf32>
    %c0_257 = arith.constant 0 : index
    %c0_258 = arith.constant 0 : index
    %c0_259 = arith.constant 0 : index
    %490 = vector.load %arg25[%c0_257, %c0_258, %c0_259] : memref<2x1x128xf32, #tpu.memory_space<vmem>>, vector<1x1x128xf32>
    %491 = vector.shape_cast %490 : vector<1x1x128xf32> to vector<1x128xf32>
    %492 = vector.broadcast %491 : vector<1x128xf32> to vector<8x128xf32>
    %493 = arith.addf %489, %492 : vector<8x128xf32>
    %cst_260 = arith.constant 0.000000e+00 : f32
    %494 = vector.broadcast %cst_260 : f32 to vector<8x128xf32>
    %495 = arith.maximumf %493, %494 : vector<8x128xf32>
    %c0_261 = arith.constant 0 : index
    %c0_262 = arith.constant 0 : index
    %c0_263 = arith.constant 0 : index
    %496 = vector.load %arg22[%c0_261, %c0_262, %c0_263] : memref<2x128x32xbf16, #tpu.memory_space<vmem>>, vector<1x128x32xbf16>
    %497 = vector.shape_cast %496 : vector<1x128x32xbf16> to vector<128x32xbf16>
    %498 = arith.truncf %495 : vector<8x128xf32> to vector<8x128xbf16>
    %cst_264 = arith.constant dense<0.000000e+00> : vector<8x32xf32>
    %499 = tpu.matmul %498, %497, %cst_264 {dimension_numbers = #tpu.dot_dimension_numbers<[1], [0], [0], [1], [0, 0, 1, 1], [], []>} : vector<8x128xbf16>, vector<128x32xbf16>, vector<8x32xf32> -> vector<8x32xf32>
    %c3_265 = arith.constant 3 : index
    %c0_266 = arith.constant 0 : index
    %c0_267 = arith.constant 0 : index
    %c0_268 = arith.constant 0 : index
    %500 = vector.load %arg26[%c3_265, %c0_266, %c0_267, %c0_268] : memref<10x2x1x32xf32, #tpu.memory_space<vmem>>, vector<1x1x1x32xf32>
    %501 = vector.shape_cast %500 : vector<1x1x1x32xf32> to vector<1x32xf32>
    %502 = vector.broadcast %501 : vector<1x32xf32> to vector<8x32xf32>
    %503 = arith.addf %499, %502 : vector<8x32xf32>
    %504 = arith.addf %485, %503 : vector<8x32xf32>
    %c8 = arith.constant 8 : index
    %c0_269 = arith.constant 0 : index
    %c0_270 = arith.constant 0 : index
    %c0_271 = arith.constant 0 : index
    %505 = vector.load %arg26[%c8, %c0_269, %c0_270, %c0_271] : memref<10x2x1x32xf32, #tpu.memory_space<vmem>>, vector<1x1x1x32xf32>
    %506 = vector.shape_cast %505 : vector<1x1x1x32xf32> to vector<1x32xf32>
    %c9 = arith.constant 9 : index
    %c0_272 = arith.constant 0 : index
    %c0_273 = arith.constant 0 : index
    %c0_274 = arith.constant 0 : index
    %507 = vector.load %arg26[%c9, %c0_272, %c0_273, %c0_274] : memref<10x2x1x32xf32, #tpu.memory_space<vmem>>, vector<1x1x1x32xf32>
    %508 = vector.shape_cast %507 : vector<1x1x1x32xf32> to vector<1x32xf32>
    %cst_275 = arith.constant dense<0.000000e+00> : vector<8xf32>
    %509 = vector.multi_reduction <add>, %504, %cst_275 [1] : vector<8x32xf32> to vector<8xf32>
    %510 = vector.shape_cast %509 : vector<8xf32> to vector<8x1xf32>
    %cst_276 = arith.constant 3.200000e+01 : f32
    %511 = vector.broadcast %cst_276 : f32 to vector<8x1xf32>
    %512 = arith.divf %510, %511 : vector<8x1xf32>
    %513 = vector.broadcast %512 : vector<8x1xf32> to vector<8x32xf32>
    %514 = arith.subf %504, %513 : vector<8x32xf32>
    %515 = arith.mulf %514, %514 : vector<8x32xf32>
    %cst_277 = arith.constant dense<0.000000e+00> : vector<8xf32>
    %516 = vector.multi_reduction <add>, %515, %cst_277 [1] : vector<8x32xf32> to vector<8xf32>
    %517 = vector.shape_cast %516 : vector<8xf32> to vector<8x1xf32>
    %cst_278 = arith.constant 3.200000e+01 : f32
    %518 = vector.broadcast %cst_278 : f32 to vector<8x1xf32>
    %519 = arith.divf %517, %518 : vector<8x1xf32>
    %cst_279 = arith.constant 9.99999974E-6 : f32
    %520 = vector.broadcast %cst_279 : f32 to vector<8x1xf32>
    %521 = arith.addf %519, %520 : vector<8x1xf32>
    %522 = math.rsqrt %521 : vector<8x1xf32>
    %523 = vector.broadcast %522 : vector<8x1xf32> to vector<8x32xf32>
    %524 = arith.mulf %514, %523 : vector<8x32xf32>
    %525 = vector.broadcast %506 : vector<1x32xf32> to vector<8x32xf32>
    %526 = arith.mulf %524, %525 : vector<8x32xf32>
    %527 = vector.broadcast %508 : vector<1x32xf32> to vector<8x32xf32>
    %528 = arith.addf %526, %527 : vector<8x32xf32>
    %c1_280 = arith.constant 1 : index
    %c0_281 = arith.constant 0 : index
    %c0_282 = arith.constant 0 : index
    %529 = vector.load %arg18[%c1_280, %c0_281, %c0_282] : memref<2x32x96xbf16, #tpu.memory_space<vmem>>, vector<1x32x96xbf16>
    %530 = vector.shape_cast %529 : vector<1x32x96xbf16> to vector<32x96xbf16>
    %531 = arith.truncf %528 : vector<8x32xf32> to vector<8x32xbf16>
    %cst_283 = arith.constant dense<0.000000e+00> : vector<8x96xf32>
    %532 = tpu.matmul %531, %530, %cst_283 {dimension_numbers = #tpu.dot_dimension_numbers<[1], [0], [0], [1], [0, 0, 1, 1], [], []>} : vector<8x32xbf16>, vector<32x96xbf16>, vector<8x96xf32> -> vector<8x96xf32>
    %c1_284 = arith.constant 1 : index
    %c0_285 = arith.constant 0 : index
    %c0_286 = arith.constant 0 : index
    %533 = vector.load %arg23[%c1_284, %c0_285, %c0_286] : memref<2x1x96xf32, #tpu.memory_space<vmem>>, vector<1x1x96xf32>
    %534 = vector.shape_cast %533 : vector<1x1x96xf32> to vector<1x96xf32>
    %535 = vector.broadcast %534 : vector<1x96xf32> to vector<8x96xf32>
    %536 = arith.addf %532, %535 : vector<8x96xf32>
    %537 = vector.extract_strided_slice %536 {offsets = [0, 0], sizes = [8, 32], strides = [1, 1]} : vector<8x96xf32> to vector<8x32xf32>
    %538 = vector.extract_strided_slice %536 {offsets = [0, 32], sizes = [8, 32], strides = [1, 1]} : vector<8x96xf32> to vector<8x32xf32>
    %539 = vector.extract_strided_slice %536 {offsets = [0, 64], sizes = [8, 32], strides = [1, 1]} : vector<8x96xf32> to vector<8x32xf32>
    %540 = vector.extract_strided_slice %537 {offsets = [0, 0], sizes = [8, 16], strides = [1, 1]} : vector<8x32xf32> to vector<8x16xf32>
    %541 = vector.extract_strided_slice %537 {offsets = [0, 16], sizes = [8, 16], strides = [1, 1]} : vector<8x32xf32> to vector<8x16xf32>
    %542 = vector.shape_cast %540 : vector<8x16xf32> to vector<1x8x16xf32>
    %543 = vector.shape_cast %541 : vector<8x16xf32> to vector<1x8x16xf32>
    %544 = tpu.concatenate %542, %543 in 0 : vector<1x8x16xf32>, vector<1x8x16xf32> -> vector<2x8x16xf32>
    %545 = vector.extract_strided_slice %538 {offsets = [0, 0], sizes = [8, 16], strides = [1, 1]} : vector<8x32xf32> to vector<8x16xf32>
    %546 = vector.extract_strided_slice %538 {offsets = [0, 16], sizes = [8, 16], strides = [1, 1]} : vector<8x32xf32> to vector<8x16xf32>
    %547 = vector.shape_cast %545 : vector<8x16xf32> to vector<1x8x16xf32>
    %548 = vector.shape_cast %546 : vector<8x16xf32> to vector<1x8x16xf32>
    %549 = tpu.concatenate %547, %548 in 0 : vector<1x8x16xf32>, vector<1x8x16xf32> -> vector<2x8x16xf32>
    %550 = vector.extract_strided_slice %539 {offsets = [0, 0], sizes = [8, 16], strides = [1, 1]} : vector<8x32xf32> to vector<8x16xf32>
    %551 = vector.extract_strided_slice %539 {offsets = [0, 16], sizes = [8, 16], strides = [1, 1]} : vector<8x32xf32> to vector<8x16xf32>
    %552 = vector.shape_cast %550 : vector<8x16xf32> to vector<1x8x16xf32>
    %553 = vector.shape_cast %551 : vector<8x16xf32> to vector<1x8x16xf32>
    %554 = tpu.concatenate %552, %553 in 0 : vector<1x8x16xf32>, vector<1x8x16xf32> -> vector<2x8x16xf32>
    %cst_287 = arith.constant dense<0.000000e+00> : vector<2x8x8xf32>
    %555 = tpu.matmul %544, %549, %cst_287 {dimension_numbers = #tpu.dot_dimension_numbers<[2], [2], [1], [1], [0, 0, 0, 1, 1, 1], [0], [0]>} : vector<2x8x16xf32>, vector<2x8x16xf32>, vector<2x8x8xf32> -> vector<2x8x8xf32>
    %556 = vector.shape_cast %326 : vector<8x8xf32> to vector<1x8x8xf32>
    %557 = vector.broadcast %556 : vector<1x8x8xf32> to vector<2x8x8xf32>
    %558 = arith.addf %555, %557 : vector<2x8x8xf32>
    %cst_288 = arith.constant dense<0xFF800000> : vector<2x8xf32>
    %559 = vector.multi_reduction <maximumf>, %558, %cst_288 [2] : vector<2x8x8xf32> to vector<2x8xf32>
    %560 = vector.shape_cast %559 : vector<2x8xf32> to vector<2x8x1xf32>
    %561 = vector.broadcast %560 : vector<2x8x1xf32> to vector<2x8x8xf32>
    %562 = arith.subf %558, %561 : vector<2x8x8xf32>
    %563 = math.exp %562 : vector<2x8x8xf32>
    %cst_289 = arith.constant dense<0.000000e+00> : vector<2x8xf32>
    %564 = vector.multi_reduction <add>, %563, %cst_289 [2] : vector<2x8x8xf32> to vector<2x8xf32>
    %565 = vector.shape_cast %564 : vector<2x8xf32> to vector<2x8x1xf32>
    %cst_290 = arith.constant dense<0.000000e+00> : vector<2x8x16xf32>
    %566 = tpu.matmul %563, %554, %cst_290 {dimension_numbers = #tpu.dot_dimension_numbers<[2], [1], [1], [2], [0, 0, 0, 1, 1, 2], [0], [0]>} : vector<2x8x8xf32>, vector<2x8x16xf32>, vector<2x8x16xf32> -> vector<2x8x16xf32>
    %567 = tpu.reciprocal %565 {approx = true} : vector<2x8x1xf32> -> vector<2x8x1xf32>
    %568 = vector.broadcast %567 : vector<2x8x1xf32> to vector<2x8x16xf32>
    %569 = arith.mulf %566, %568 : vector<2x8x16xf32>
    %570 = vector.extract_strided_slice %569 {offsets = [0, 0, 0], sizes = [1, 8, 16], strides = [1, 1, 1]} : vector<2x8x16xf32> to vector<1x8x16xf32>
    %571 = vector.shape_cast %570 : vector<1x8x16xf32> to vector<8x16xf32>
    %572 = vector.extract_strided_slice %569 {offsets = [1, 0, 0], sizes = [1, 8, 16], strides = [1, 1, 1]} : vector<2x8x16xf32> to vector<1x8x16xf32>
    %573 = vector.shape_cast %572 : vector<1x8x16xf32> to vector<8x16xf32>
    %574 = tpu.concatenate %571, %573 in 1 : vector<8x16xf32>, vector<8x16xf32> -> vector<8x32xf32>
    %c0_291 = arith.constant 0 : index
    %c1_292 = arith.constant 1 : index
    %c0_293 = arith.constant 0 : index
    %c0_294 = arith.constant 0 : index
    %575 = vector.load %arg19[%c0_291, %c1_292, %c0_293, %c0_294] : memref<3x2x32x32xbf16, #tpu.memory_space<vmem>>, vector<1x1x32x32xbf16>
    %576 = vector.shape_cast %575 : vector<1x1x32x32xbf16> to vector<32x32xbf16>
    %577 = arith.truncf %574 : vector<8x32xf32> to vector<8x32xbf16>
    %cst_295 = arith.constant dense<0.000000e+00> : vector<8x32xf32>
    %578 = tpu.matmul %577, %576, %cst_295 {dimension_numbers = #tpu.dot_dimension_numbers<[1], [0], [0], [1], [0, 0, 1, 1], [], []>} : vector<8x32xbf16>, vector<32x32xbf16>, vector<8x32xf32> -> vector<8x32xf32>
    %c0_296 = arith.constant 0 : index
    %c1_297 = arith.constant 1 : index
    %c0_298 = arith.constant 0 : index
    %c0_299 = arith.constant 0 : index
    %579 = vector.load %arg26[%c0_296, %c1_297, %c0_298, %c0_299] : memref<10x2x1x32xf32, #tpu.memory_space<vmem>>, vector<1x1x1x32xf32>
    %580 = vector.shape_cast %579 : vector<1x1x1x32xf32> to vector<1x32xf32>
    %581 = vector.broadcast %580 : vector<1x32xf32> to vector<8x32xf32>
    %582 = arith.addf %578, %581 : vector<8x32xf32>
    %583 = arith.addf %528, %582 : vector<8x32xf32>
    %c4_300 = arith.constant 4 : index
    %c1_301 = arith.constant 1 : index
    %c0_302 = arith.constant 0 : index
    %c0_303 = arith.constant 0 : index
    %584 = vector.load %arg26[%c4_300, %c1_301, %c0_302, %c0_303] : memref<10x2x1x32xf32, #tpu.memory_space<vmem>>, vector<1x1x1x32xf32>
    %585 = vector.shape_cast %584 : vector<1x1x1x32xf32> to vector<1x32xf32>
    %c5_304 = arith.constant 5 : index
    %c1_305 = arith.constant 1 : index
    %c0_306 = arith.constant 0 : index
    %c0_307 = arith.constant 0 : index
    %586 = vector.load %arg26[%c5_304, %c1_305, %c0_306, %c0_307] : memref<10x2x1x32xf32, #tpu.memory_space<vmem>>, vector<1x1x1x32xf32>
    %587 = vector.shape_cast %586 : vector<1x1x1x32xf32> to vector<1x32xf32>
    %cst_308 = arith.constant dense<0.000000e+00> : vector<8xf32>
    %588 = vector.multi_reduction <add>, %583, %cst_308 [1] : vector<8x32xf32> to vector<8xf32>
    %589 = vector.shape_cast %588 : vector<8xf32> to vector<8x1xf32>
    %cst_309 = arith.constant 3.200000e+01 : f32
    %590 = vector.broadcast %cst_309 : f32 to vector<8x1xf32>
    %591 = arith.divf %589, %590 : vector<8x1xf32>
    %592 = vector.broadcast %591 : vector<8x1xf32> to vector<8x32xf32>
    %593 = arith.subf %583, %592 : vector<8x32xf32>
    %594 = arith.mulf %593, %593 : vector<8x32xf32>
    %cst_310 = arith.constant dense<0.000000e+00> : vector<8xf32>
    %595 = vector.multi_reduction <add>, %594, %cst_310 [1] : vector<8x32xf32> to vector<8xf32>
    %596 = vector.shape_cast %595 : vector<8xf32> to vector<8x1xf32>
    %cst_311 = arith.constant 3.200000e+01 : f32
    %597 = vector.broadcast %cst_311 : f32 to vector<8x1xf32>
    %598 = arith.divf %596, %597 : vector<8x1xf32>
    %cst_312 = arith.constant 9.99999974E-6 : f32
    %599 = vector.broadcast %cst_312 : f32 to vector<8x1xf32>
    %600 = arith.addf %598, %599 : vector<8x1xf32>
    %601 = math.rsqrt %600 : vector<8x1xf32>
    %602 = vector.broadcast %601 : vector<8x1xf32> to vector<8x32xf32>
    %603 = arith.mulf %593, %602 : vector<8x32xf32>
    %604 = vector.broadcast %585 : vector<1x32xf32> to vector<8x32xf32>
    %605 = arith.mulf %603, %604 : vector<8x32xf32>
    %606 = vector.broadcast %587 : vector<1x32xf32> to vector<8x32xf32>
    %607 = arith.addf %605, %606 : vector<8x32xf32>
    %c1_313 = arith.constant 1 : index
    %c1_314 = arith.constant 1 : index
    %c0_315 = arith.constant 0 : index
    %c0_316 = arith.constant 0 : index
    %608 = vector.load %arg19[%c1_313, %c1_314, %c0_315, %c0_316] : memref<3x2x32x32xbf16, #tpu.memory_space<vmem>>, vector<1x1x32x32xbf16>
    %609 = vector.shape_cast %608 : vector<1x1x32x32xbf16> to vector<32x32xbf16>
    %610 = arith.truncf %607 : vector<8x32xf32> to vector<8x32xbf16>
    %cst_317 = arith.constant dense<0.000000e+00> : vector<8x32xf32>
    %611 = tpu.matmul %610, %609, %cst_317 {dimension_numbers = #tpu.dot_dimension_numbers<[1], [0], [0], [1], [0, 0, 1, 1], [], []>} : vector<8x32xbf16>, vector<32x32xbf16>, vector<8x32xf32> -> vector<8x32xf32>
    %c1_318 = arith.constant 1 : index
    %c1_319 = arith.constant 1 : index
    %c0_320 = arith.constant 0 : index
    %c0_321 = arith.constant 0 : index
    %612 = vector.load %arg26[%c1_318, %c1_319, %c0_320, %c0_321] : memref<10x2x1x32xf32, #tpu.memory_space<vmem>>, vector<1x1x1x32xf32>
    %613 = vector.shape_cast %612 : vector<1x1x1x32xf32> to vector<1x32xf32>
    %614 = vector.broadcast %613 : vector<1x32xf32> to vector<8x32xf32>
    %615 = arith.addf %611, %614 : vector<8x32xf32>
    %616 = vector.extract_strided_slice %315 {offsets = [0, 64], sizes = [8, 32], strides = [1, 1]} : vector<8x128xf32> to vector<8x32xf32>
    %617 = vector.extract_strided_slice %315 {offsets = [0, 96], sizes = [8, 32], strides = [1, 1]} : vector<8x128xf32> to vector<8x32xf32>
    %618 = vector.extract_strided_slice %615 {offsets = [0, 0], sizes = [8, 16], strides = [1, 1]} : vector<8x32xf32> to vector<8x16xf32>
    %619 = vector.extract_strided_slice %615 {offsets = [0, 16], sizes = [8, 16], strides = [1, 1]} : vector<8x32xf32> to vector<8x16xf32>
    %620 = vector.shape_cast %618 : vector<8x16xf32> to vector<1x8x16xf32>
    %621 = vector.shape_cast %619 : vector<8x16xf32> to vector<1x8x16xf32>
    %622 = tpu.concatenate %620, %621 in 0 : vector<1x8x16xf32>, vector<1x8x16xf32> -> vector<2x8x16xf32>
    %623 = vector.extract_strided_slice %616 {offsets = [0, 0], sizes = [8, 16], strides = [1, 1]} : vector<8x32xf32> to vector<8x16xf32>
    %624 = vector.extract_strided_slice %616 {offsets = [0, 16], sizes = [8, 16], strides = [1, 1]} : vector<8x32xf32> to vector<8x16xf32>
    %625 = vector.shape_cast %623 : vector<8x16xf32> to vector<1x8x16xf32>
    %626 = vector.shape_cast %624 : vector<8x16xf32> to vector<1x8x16xf32>
    %627 = tpu.concatenate %625, %626 in 0 : vector<1x8x16xf32>, vector<1x8x16xf32> -> vector<2x8x16xf32>
    %628 = vector.extract_strided_slice %617 {offsets = [0, 0], sizes = [8, 16], strides = [1, 1]} : vector<8x32xf32> to vector<8x16xf32>
    %629 = vector.extract_strided_slice %617 {offsets = [0, 16], sizes = [8, 16], strides = [1, 1]} : vector<8x32xf32> to vector<8x16xf32>
    %630 = vector.shape_cast %628 : vector<8x16xf32> to vector<1x8x16xf32>
    %631 = vector.shape_cast %629 : vector<8x16xf32> to vector<1x8x16xf32>
    %632 = tpu.concatenate %630, %631 in 0 : vector<1x8x16xf32>, vector<1x8x16xf32> -> vector<2x8x16xf32>
    %cst_322 = arith.constant dense<0.000000e+00> : vector<2x8x8xf32>
    %633 = tpu.matmul %622, %627, %cst_322 {dimension_numbers = #tpu.dot_dimension_numbers<[2], [2], [1], [1], [0, 0, 0, 1, 1, 1], [0], [0]>} : vector<2x8x16xf32>, vector<2x8x16xf32>, vector<2x8x8xf32> -> vector<2x8x8xf32>
    %634 = vector.shape_cast %328 : vector<8x8xf32> to vector<1x8x8xf32>
    %635 = vector.broadcast %634 : vector<1x8x8xf32> to vector<2x8x8xf32>
    %636 = arith.addf %633, %635 : vector<2x8x8xf32>
    %cst_323 = arith.constant dense<0xFF800000> : vector<2x8xf32>
    %637 = vector.multi_reduction <maximumf>, %636, %cst_323 [2] : vector<2x8x8xf32> to vector<2x8xf32>
    %638 = vector.shape_cast %637 : vector<2x8xf32> to vector<2x8x1xf32>
    %639 = vector.broadcast %638 : vector<2x8x1xf32> to vector<2x8x8xf32>
    %640 = arith.subf %636, %639 : vector<2x8x8xf32>
    %641 = math.exp %640 : vector<2x8x8xf32>
    %cst_324 = arith.constant dense<0.000000e+00> : vector<2x8xf32>
    %642 = vector.multi_reduction <add>, %641, %cst_324 [2] : vector<2x8x8xf32> to vector<2x8xf32>
    %643 = vector.shape_cast %642 : vector<2x8xf32> to vector<2x8x1xf32>
    %cst_325 = arith.constant dense<0.000000e+00> : vector<2x8x16xf32>
    %644 = tpu.matmul %641, %632, %cst_325 {dimension_numbers = #tpu.dot_dimension_numbers<[2], [1], [1], [2], [0, 0, 0, 1, 1, 2], [0], [0]>} : vector<2x8x8xf32>, vector<2x8x16xf32>, vector<2x8x16xf32> -> vector<2x8x16xf32>
    %645 = tpu.reciprocal %643 {approx = true} : vector<2x8x1xf32> -> vector<2x8x1xf32>
    %646 = vector.broadcast %645 : vector<2x8x1xf32> to vector<2x8x16xf32>
    %647 = arith.mulf %644, %646 : vector<2x8x16xf32>
    %648 = vector.extract_strided_slice %647 {offsets = [0, 0, 0], sizes = [1, 8, 16], strides = [1, 1, 1]} : vector<2x8x16xf32> to vector<1x8x16xf32>
    %649 = vector.shape_cast %648 : vector<1x8x16xf32> to vector<8x16xf32>
    %650 = vector.extract_strided_slice %647 {offsets = [1, 0, 0], sizes = [1, 8, 16], strides = [1, 1, 1]} : vector<2x8x16xf32> to vector<1x8x16xf32>
    %651 = vector.shape_cast %650 : vector<1x8x16xf32> to vector<8x16xf32>
    %652 = tpu.concatenate %649, %651 in 1 : vector<8x16xf32>, vector<8x16xf32> -> vector<8x32xf32>
    %c2_326 = arith.constant 2 : index
    %c1_327 = arith.constant 1 : index
    %c0_328 = arith.constant 0 : index
    %c0_329 = arith.constant 0 : index
    %653 = vector.load %arg19[%c2_326, %c1_327, %c0_328, %c0_329] : memref<3x2x32x32xbf16, #tpu.memory_space<vmem>>, vector<1x1x32x32xbf16>
    %654 = vector.shape_cast %653 : vector<1x1x32x32xbf16> to vector<32x32xbf16>
    %655 = arith.truncf %652 : vector<8x32xf32> to vector<8x32xbf16>
    %cst_330 = arith.constant dense<0.000000e+00> : vector<8x32xf32>
    %656 = tpu.matmul %655, %654, %cst_330 {dimension_numbers = #tpu.dot_dimension_numbers<[1], [0], [0], [1], [0, 0, 1, 1], [], []>} : vector<8x32xbf16>, vector<32x32xbf16>, vector<8x32xf32> -> vector<8x32xf32>
    %c2_331 = arith.constant 2 : index
    %c1_332 = arith.constant 1 : index
    %c0_333 = arith.constant 0 : index
    %c0_334 = arith.constant 0 : index
    %657 = vector.load %arg26[%c2_331, %c1_332, %c0_333, %c0_334] : memref<10x2x1x32xf32, #tpu.memory_space<vmem>>, vector<1x1x1x32xf32>
    %658 = vector.shape_cast %657 : vector<1x1x1x32xf32> to vector<1x32xf32>
    %659 = vector.broadcast %658 : vector<1x32xf32> to vector<8x32xf32>
    %660 = arith.addf %656, %659 : vector<8x32xf32>
    %661 = arith.addf %607, %660 : vector<8x32xf32>
    %c6_335 = arith.constant 6 : index
    %c1_336 = arith.constant 1 : index
    %c0_337 = arith.constant 0 : index
    %c0_338 = arith.constant 0 : index
    %662 = vector.load %arg26[%c6_335, %c1_336, %c0_337, %c0_338] : memref<10x2x1x32xf32, #tpu.memory_space<vmem>>, vector<1x1x1x32xf32>
    %663 = vector.shape_cast %662 : vector<1x1x1x32xf32> to vector<1x32xf32>
    %c7_339 = arith.constant 7 : index
    %c1_340 = arith.constant 1 : index
    %c0_341 = arith.constant 0 : index
    %c0_342 = arith.constant 0 : index
    %664 = vector.load %arg26[%c7_339, %c1_340, %c0_341, %c0_342] : memref<10x2x1x32xf32, #tpu.memory_space<vmem>>, vector<1x1x1x32xf32>
    %665 = vector.shape_cast %664 : vector<1x1x1x32xf32> to vector<1x32xf32>
    %cst_343 = arith.constant dense<0.000000e+00> : vector<8xf32>
    %666 = vector.multi_reduction <add>, %661, %cst_343 [1] : vector<8x32xf32> to vector<8xf32>
    %667 = vector.shape_cast %666 : vector<8xf32> to vector<8x1xf32>
    %cst_344 = arith.constant 3.200000e+01 : f32
    %668 = vector.broadcast %cst_344 : f32 to vector<8x1xf32>
    %669 = arith.divf %667, %668 : vector<8x1xf32>
    %670 = vector.broadcast %669 : vector<8x1xf32> to vector<8x32xf32>
    %671 = arith.subf %661, %670 : vector<8x32xf32>
    %672 = arith.mulf %671, %671 : vector<8x32xf32>
    %cst_345 = arith.constant dense<0.000000e+00> : vector<8xf32>
    %673 = vector.multi_reduction <add>, %672, %cst_345 [1] : vector<8x32xf32> to vector<8xf32>
    %674 = vector.shape_cast %673 : vector<8xf32> to vector<8x1xf32>
    %cst_346 = arith.constant 3.200000e+01 : f32
    %675 = vector.broadcast %cst_346 : f32 to vector<8x1xf32>
    %676 = arith.divf %674, %675 : vector<8x1xf32>
    %cst_347 = arith.constant 9.99999974E-6 : f32
    %677 = vector.broadcast %cst_347 : f32 to vector<8x1xf32>
    %678 = arith.addf %676, %677 : vector<8x1xf32>
    %679 = math.rsqrt %678 : vector<8x1xf32>
    %680 = vector.broadcast %679 : vector<8x1xf32> to vector<8x32xf32>
    %681 = arith.mulf %671, %680 : vector<8x32xf32>
    %682 = vector.broadcast %663 : vector<1x32xf32> to vector<8x32xf32>
    %683 = arith.mulf %681, %682 : vector<8x32xf32>
    %684 = vector.broadcast %665 : vector<1x32xf32> to vector<8x32xf32>
    %685 = arith.addf %683, %684 : vector<8x32xf32>
    %c1_348 = arith.constant 1 : index
    %c0_349 = arith.constant 0 : index
    %c0_350 = arith.constant 0 : index
    %686 = vector.load %arg21[%c1_348, %c0_349, %c0_350] : memref<2x32x128xbf16, #tpu.memory_space<vmem>>, vector<1x32x128xbf16>
    %687 = vector.shape_cast %686 : vector<1x32x128xbf16> to vector<32x128xbf16>
    %688 = arith.truncf %685 : vector<8x32xf32> to vector<8x32xbf16>
    %cst_351 = arith.constant dense<0.000000e+00> : vector<8x128xf32>
    %689 = tpu.matmul %688, %687, %cst_351 {dimension_numbers = #tpu.dot_dimension_numbers<[1], [0], [0], [1], [0, 0, 1, 1], [], []>} : vector<8x32xbf16>, vector<32x128xbf16>, vector<8x128xf32> -> vector<8x128xf32>
    %c1_352 = arith.constant 1 : index
    %c0_353 = arith.constant 0 : index
    %c0_354 = arith.constant 0 : index
    %690 = vector.load %arg25[%c1_352, %c0_353, %c0_354] : memref<2x1x128xf32, #tpu.memory_space<vmem>>, vector<1x1x128xf32>
    %691 = vector.shape_cast %690 : vector<1x1x128xf32> to vector<1x128xf32>
    %692 = vector.broadcast %691 : vector<1x128xf32> to vector<8x128xf32>
    %693 = arith.addf %689, %692 : vector<8x128xf32>
    %cst_355 = arith.constant 0.000000e+00 : f32
    %694 = vector.broadcast %cst_355 : f32 to vector<8x128xf32>
    %695 = arith.maximumf %693, %694 : vector<8x128xf32>
    %c1_356 = arith.constant 1 : index
    %c0_357 = arith.constant 0 : index
    %c0_358 = arith.constant 0 : index
    %696 = vector.load %arg22[%c1_356, %c0_357, %c0_358] : memref<2x128x32xbf16, #tpu.memory_space<vmem>>, vector<1x128x32xbf16>
    %697 = vector.shape_cast %696 : vector<1x128x32xbf16> to vector<128x32xbf16>
    %698 = arith.truncf %695 : vector<8x128xf32> to vector<8x128xbf16>
    %cst_359 = arith.constant dense<0.000000e+00> : vector<8x32xf32>
    %699 = tpu.matmul %698, %697, %cst_359 {dimension_numbers = #tpu.dot_dimension_numbers<[1], [0], [0], [1], [0, 0, 1, 1], [], []>} : vector<8x128xbf16>, vector<128x32xbf16>, vector<8x32xf32> -> vector<8x32xf32>
    %c3_360 = arith.constant 3 : index
    %c1_361 = arith.constant 1 : index
    %c0_362 = arith.constant 0 : index
    %c0_363 = arith.constant 0 : index
    %700 = vector.load %arg26[%c3_360, %c1_361, %c0_362, %c0_363] : memref<10x2x1x32xf32, #tpu.memory_space<vmem>>, vector<1x1x1x32xf32>
    %701 = vector.shape_cast %700 : vector<1x1x1x32xf32> to vector<1x32xf32>
    %702 = vector.broadcast %701 : vector<1x32xf32> to vector<8x32xf32>
    %703 = arith.addf %699, %702 : vector<8x32xf32>
    %704 = arith.addf %685, %703 : vector<8x32xf32>
    %c8_364 = arith.constant 8 : index
    %c1_365 = arith.constant 1 : index
    %c0_366 = arith.constant 0 : index
    %c0_367 = arith.constant 0 : index
    %705 = vector.load %arg26[%c8_364, %c1_365, %c0_366, %c0_367] : memref<10x2x1x32xf32, #tpu.memory_space<vmem>>, vector<1x1x1x32xf32>
    %706 = vector.shape_cast %705 : vector<1x1x1x32xf32> to vector<1x32xf32>
    %c9_368 = arith.constant 9 : index
    %c1_369 = arith.constant 1 : index
    %c0_370 = arith.constant 0 : index
    %c0_371 = arith.constant 0 : index
    %707 = vector.load %arg26[%c9_368, %c1_369, %c0_370, %c0_371] : memref<10x2x1x32xf32, #tpu.memory_space<vmem>>, vector<1x1x1x32xf32>
    %708 = vector.shape_cast %707 : vector<1x1x1x32xf32> to vector<1x32xf32>
    %cst_372 = arith.constant dense<0.000000e+00> : vector<8xf32>
    %709 = vector.multi_reduction <add>, %704, %cst_372 [1] : vector<8x32xf32> to vector<8xf32>
    %710 = vector.shape_cast %709 : vector<8xf32> to vector<8x1xf32>
    %cst_373 = arith.constant 3.200000e+01 : f32
    %711 = vector.broadcast %cst_373 : f32 to vector<8x1xf32>
    %712 = arith.divf %710, %711 : vector<8x1xf32>
    %713 = vector.broadcast %712 : vector<8x1xf32> to vector<8x32xf32>
    %714 = arith.subf %704, %713 : vector<8x32xf32>
    %715 = arith.mulf %714, %714 : vector<8x32xf32>
    %cst_374 = arith.constant dense<0.000000e+00> : vector<8xf32>
    %716 = vector.multi_reduction <add>, %715, %cst_374 [1] : vector<8x32xf32> to vector<8xf32>
    %717 = vector.shape_cast %716 : vector<8xf32> to vector<8x1xf32>
    %cst_375 = arith.constant 3.200000e+01 : f32
    %718 = vector.broadcast %cst_375 : f32 to vector<8x1xf32>
    %719 = arith.divf %717, %718 : vector<8x1xf32>
    %cst_376 = arith.constant 9.99999974E-6 : f32
    %720 = vector.broadcast %cst_376 : f32 to vector<8x1xf32>
    %721 = arith.addf %719, %720 : vector<8x1xf32>
    %722 = math.rsqrt %721 : vector<8x1xf32>
    %723 = vector.broadcast %722 : vector<8x1xf32> to vector<8x32xf32>
    %724 = arith.mulf %714, %723 : vector<8x32xf32>
    %725 = vector.broadcast %706 : vector<1x32xf32> to vector<8x32xf32>
    %726 = arith.mulf %724, %725 : vector<8x32xf32>
    %727 = vector.broadcast %708 : vector<1x32xf32> to vector<8x32xf32>
    %728 = arith.addf %726, %727 : vector<8x32xf32>
    %cst_377 = arith.constant dense<0.000000e+00> : vector<8xf32>
    %729 = vector.multi_reduction <add>, %728, %cst_377 [1] : vector<8x32xf32> to vector<8xf32>
    %730 = vector.shape_cast %729 : vector<8xf32> to vector<8x1xf32>
    %cst_378 = arith.constant 3.200000e+01 : f32
    %731 = vector.broadcast %cst_378 : f32 to vector<8x1xf32>
    %732 = arith.divf %730, %731 : vector<8x1xf32>
    %733 = vector.broadcast %732 : vector<8x1xf32> to vector<8x32xf32>
    %734 = arith.subf %728, %733 : vector<8x32xf32>
    %735 = arith.mulf %734, %734 : vector<8x32xf32>
    %cst_379 = arith.constant dense<0.000000e+00> : vector<8xf32>
    %736 = vector.multi_reduction <add>, %735, %cst_379 [1] : vector<8x32xf32> to vector<8xf32>
    %737 = vector.shape_cast %736 : vector<8xf32> to vector<8x1xf32>
    %cst_380 = arith.constant 3.200000e+01 : f32
    %738 = vector.broadcast %cst_380 : f32 to vector<8x1xf32>
    %739 = arith.divf %737, %738 : vector<8x1xf32>
    %cst_381 = arith.constant 9.99999974E-6 : f32
    %740 = vector.broadcast %cst_381 : f32 to vector<8x1xf32>
    %741 = arith.addf %739, %740 : vector<8x1xf32>
    %742 = math.rsqrt %741 : vector<8x1xf32>
    %743 = vector.broadcast %742 : vector<8x1xf32> to vector<8x32xf32>
    %744 = arith.mulf %734, %743 : vector<8x32xf32>
    %745 = vector.broadcast %13 : vector<1x32xf32> to vector<8x32xf32>
    %746 = arith.mulf %744, %745 : vector<8x32xf32>
    %747 = vector.broadcast %15 : vector<1x32xf32> to vector<8x32xf32>
    %748 = arith.addf %746, %747 : vector<8x32xf32>
    %c1_382 = arith.constant 1 : index
    %c0_383 = arith.constant 0 : index
    %c0_384 = arith.constant 0 : index
    %749 = vector.load %arg27[%c1_382, %c0_383, %c0_384] : memref<2x32x128xbf16, #tpu.memory_space<vmem>>, vector<1x32x128xbf16>
    %750 = vector.shape_cast %749 : vector<1x32x128xbf16> to vector<32x128xbf16>
    %751 = arith.truncf %748 : vector<8x32xf32> to vector<8x32xbf16>
    %cst_385 = arith.constant dense<0.000000e+00> : vector<8x128xf32>
    %752 = tpu.matmul %751, %750, %cst_385 {dimension_numbers = #tpu.dot_dimension_numbers<[1], [0], [0], [1], [0, 0, 1, 1], [], []>} : vector<8x32xbf16>, vector<32x128xbf16>, vector<8x128xf32> -> vector<8x128xf32>
    %c1_386 = arith.constant 1 : index
    %c0_387 = arith.constant 0 : index
    %c0_388 = arith.constant 0 : index
    %753 = vector.load %arg28[%c1_386, %c0_387, %c0_388] : memref<2x1x128xf32, #tpu.memory_space<vmem>>, vector<1x1x128xf32>
    %754 = vector.shape_cast %753 : vector<1x1x128xf32> to vector<1x128xf32>
    %755 = vector.broadcast %754 : vector<1x128xf32> to vector<8x128xf32>
    %756 = arith.addf %752, %755 : vector<8x128xf32>
    %c0_389 = arith.constant 0 : index
    %c0_390 = arith.constant 0 : index
    %757 = vector.load %arg30[%c0_389, %c0_390] : memref<8x128xf32, #tpu.memory_space<vmem>>, vector<8x128xf32>
    tpu.vector_store %arg30[%c0_389, %c0_390], %756 {strides = array<i32>} : memref<8x128xf32, #tpu.memory_space<vmem>>, vector<8x128xf32>,
    return
  }
  func.func @transform_0(%arg0: i32) -> (i32, i32) {
    %c0_i32 = arith.constant 0 : i32
    %c0_i32_0 = arith.constant 0 : i32
    return %arg0, %c0_i32 : i32, i32
  }
  func.func @transform_1(%arg0: i32) -> (i32, i32) {
    %c0_i32 = arith.constant 0 : i32
    %c0_i32_0 = arith.constant 0 : i32
    return %arg0, %c0_i32 : i32, i32
  }
  func.func @transform_2(%arg0: i32) -> (i32, i32, i32) {
    %c0_i32 = arith.constant 0 : i32
    %c0_i32_0 = arith.constant 0 : i32
    %c0_i32_1 = arith.constant 0 : i32
    return %arg0, %c0_i32, %c0_i32_0 : i32, i32, i32
  }
  func.func @transform_3(%arg0: i32) -> (i32, i32) {
    %c0_i32 = arith.constant 0 : i32
    %c0_i32_0 = arith.constant 0 : i32
    return %arg0, %c0_i32 : i32, i32
  }
  func.func @transform_4(%arg0: i32) -> (i32, i32) {
    %c0_i32 = arith.constant 0 : i32
    %c0_i32_0 = arith.constant 0 : i32
    return %arg0, %c0_i32 : i32, i32
  }
  func.func @transform_5(%arg0: i32) -> (i32, i32, i32) {
    %c0_i32 = arith.constant 0 : i32
    %c0_i32_0 = arith.constant 0 : i32
    %c0_i32_1 = arith.constant 0 : i32
    return %arg0, %c0_i32, %c0_i32_0 : i32, i32, i32
  }
  func.func @transform_6(%arg0: i32) -> (i32, i32, i32) {
    %c0_i32 = arith.constant 0 : i32
    %c0_i32_0 = arith.constant 0 : i32
    %c0_i32_1 = arith.constant 0 : i32
    return %arg0, %c0_i32, %c0_i32_0 : i32, i32, i32
  }
  func.func @transform_7(%arg0: i32) -> (i32, i32, i32) {
    %c0_i32 = arith.constant 0 : i32
    %c0_i32_0 = arith.constant 0 : i32
    %c0_i32_1 = arith.constant 0 : i32
    return %arg0, %c0_i32, %c0_i32_0 : i32, i32, i32
  }
  func.func @transform_8(%arg0: i32) -> (i32, i32, i32) {
    %c0_i32 = arith.constant 0 : i32
    %c0_i32_0 = arith.constant 0 : i32
    %c0_i32_1 = arith.constant 0 : i32
    %c0_i32_2 = arith.constant 0 : i32
    return %c0_i32, %c0_i32_0, %c0_i32_1 : i32, i32, i32
  }
  func.func @transform_9(%arg0: i32) -> (i32, i32, i32) {
    %c0_i32 = arith.constant 0 : i32
    %c0_i32_0 = arith.constant 0 : i32
    %c0_i32_1 = arith.constant 0 : i32
    %c0_i32_2 = arith.constant 0 : i32
    return %c0_i32, %c0_i32_0, %c0_i32_1 : i32, i32, i32
  }
  func.func @transform_10(%arg0: i32) -> (i32, i32, i32) {
    %c0_i32 = arith.constant 0 : i32
    %c0_i32_0 = arith.constant 0 : i32
    %c0_i32_1 = arith.constant 0 : i32
    %c0_i32_2 = arith.constant 0 : i32
    return %c0_i32, %c0_i32_0, %c0_i32_1 : i32, i32, i32
  }
  func.func @transform_11(%arg0: i32) -> (i32, i32, i32) {
    %c0_i32 = arith.constant 0 : i32
    %c0_i32_0 = arith.constant 0 : i32
    %c0_i32_1 = arith.constant 0 : i32
    %c0_i32_2 = arith.constant 0 : i32
    return %c0_i32, %c0_i32_0, %c0_i32_1 : i32, i32, i32
  }
  func.func @transform_12(%arg0: i32) -> (i32, i32, i32) {
    %c0_i32 = arith.constant 0 : i32
    %c0_i32_0 = arith.constant 0 : i32
    %c0_i32_1 = arith.constant 0 : i32
    %c0_i32_2 = arith.constant 0 : i32
    return %c0_i32, %c0_i32_0, %c0_i32_1 : i32, i32, i32
  }
  func.func @transform_13(%arg0: i32) -> (i32, i32, i32) {
    %c0_i32 = arith.constant 0 : i32
    %c0_i32_0 = arith.constant 0 : i32
    %c0_i32_1 = arith.constant 0 : i32
    %c0_i32_2 = arith.constant 0 : i32
    return %c0_i32, %c0_i32_0, %c0_i32_1 : i32, i32, i32
  }
  func.func @transform_14(%arg0: i32) -> (i32, i32, i32) {
    %c0_i32 = arith.constant 0 : i32
    %c0_i32_0 = arith.constant 0 : i32
    %c0_i32_1 = arith.constant 0 : i32
    %c0_i32_2 = arith.constant 0 : i32
    return %c0_i32, %c0_i32_0, %c0_i32_1 : i32, i32, i32
  }
  func.func @transform_15(%arg0: i32) -> (i32, i32, i32) {
    %c0_i32 = arith.constant 0 : i32
    %c0_i32_0 = arith.constant 0 : i32
    %c0_i32_1 = arith.constant 0 : i32
    %c0_i32_2 = arith.constant 0 : i32
    return %c0_i32, %c0_i32_0, %c0_i32_1 : i32, i32, i32
  }
  func.func @transform_16(%arg0: i32) -> (i32, i32, i32, i32) {
    %c0_i32 = arith.constant 0 : i32
    %c0_i32_0 = arith.constant 0 : i32
    %c0_i32_1 = arith.constant 0 : i32
    %c0_i32_2 = arith.constant 0 : i32
    %c0_i32_3 = arith.constant 0 : i32
    return %c0_i32, %c0_i32_0, %c0_i32_1, %c0_i32_2 : i32, i32, i32, i32
  }
  func.func @transform_17(%arg0: i32) -> (i32, i32, i32) {
    %c0_i32 = arith.constant 0 : i32
    %c0_i32_0 = arith.constant 0 : i32
    %c0_i32_1 = arith.constant 0 : i32
    %c0_i32_2 = arith.constant 0 : i32
    return %c0_i32, %c0_i32_0, %c0_i32_1 : i32, i32, i32
  }
  func.func @transform_18(%arg0: i32) -> (i32, i32, i32, i32) {
    %c0_i32 = arith.constant 0 : i32
    %c0_i32_0 = arith.constant 0 : i32
    %c0_i32_1 = arith.constant 0 : i32
    %c0_i32_2 = arith.constant 0 : i32
    %c0_i32_3 = arith.constant 0 : i32
    return %c0_i32, %c0_i32_0, %c0_i32_1, %c0_i32_2 : i32, i32, i32, i32
  }
  func.func @transform_19(%arg0: i32) -> (i32, i32) {
    %c0_i32 = arith.constant 0 : i32
    %c0_i32_0 = arith.constant 0 : i32
    %c0_i32_1 = arith.constant 0 : i32
    return %c0_i32, %c0_i32_0 : i32, i32
  }
  func.func @transform_20(%arg0: i32) -> (i32, i32, i32) {
    %c0_i32 = arith.constant 0 : i32
    %c0_i32_0 = arith.constant 0 : i32
    %c0_i32_1 = arith.constant 0 : i32
    %c0_i32_2 = arith.constant 0 : i32
    return %c0_i32, %c0_i32_0, %c0_i32_1 : i32, i32, i32
  }
  func.func @transform_21(%arg0: i32) -> (i32, i32, i32) {
    %c0_i32 = arith.constant 0 : i32
    %c0_i32_0 = arith.constant 0 : i32
    %c0_i32_1 = arith.constant 0 : i32
    %c0_i32_2 = arith.constant 0 : i32
    return %c0_i32, %c0_i32_0, %c0_i32_1 : i32, i32, i32
  }
  func.func @transform_22(%arg0: i32) -> (i32, i32, i32) {
    %c0_i32 = arith.constant 0 : i32
    %c0_i32_0 = arith.constant 0 : i32
    %c0_i32_1 = arith.constant 0 : i32
    %c0_i32_2 = arith.constant 0 : i32
    return %c0_i32, %c0_i32_0, %c0_i32_1 : i32, i32, i32
  }
  func.func @transform_23(%arg0: i32) -> (i32, i32) {
    %c0_i32 = arith.constant 0 : i32
    %c0_i32_0 = arith.constant 0 : i32
    %c0_i32_1 = arith.constant 0 : i32
    return %c0_i32, %c0_i32_0 : i32, i32
  }
  func.func @transform_24(%arg0: i32) -> (i32, i32, i32) {
    %c0_i32 = arith.constant 0 : i32
    %c0_i32_0 = arith.constant 0 : i32
    %c0_i32_1 = arith.constant 0 : i32
    %c0_i32_2 = arith.constant 0 : i32
    return %c0_i32, %c0_i32_0, %c0_i32_1 : i32, i32, i32
  }
  func.func @transform_25(%arg0: i32) -> (i32, i32, i32, i32) {
    %c0_i32 = arith.constant 0 : i32
    %c0_i32_0 = arith.constant 0 : i32
    %c0_i32_1 = arith.constant 0 : i32
    %c0_i32_2 = arith.constant 0 : i32
    %c0_i32_3 = arith.constant 0 : i32
    return %c0_i32, %c0_i32_0, %c0_i32_1, %c0_i32_2 : i32, i32, i32, i32
  }
  func.func @transform_26(%arg0: i32) -> (i32, i32, i32) {
    %c0_i32 = arith.constant 0 : i32
    %c0_i32_0 = arith.constant 0 : i32
    %c0_i32_1 = arith.constant 0 : i32
    %c0_i32_2 = arith.constant 0 : i32
    return %c0_i32, %c0_i32_0, %c0_i32_1 : i32, i32, i32
  }
  func.func @transform_27(%arg0: i32) -> (i32, i32, i32) {
    %c0_i32 = arith.constant 0 : i32
    %c0_i32_0 = arith.constant 0 : i32
    %c0_i32_1 = arith.constant 0 : i32
    %c0_i32_2 = arith.constant 0 : i32
    return %c0_i32, %c0_i32_0, %c0_i32_1 : i32, i32, i32
  }
  func.func @transform_28(%arg0: i32) -> (i32, i32, i32) {
    %c0_i32 = arith.constant 0 : i32
    %c0_i32_0 = arith.constant 0 : i32
    %c0_i32_1 = arith.constant 0 : i32
    return %arg0, %c0_i32, %c0_i32_0 : i32, i32, i32
  }
  func.func @transform_29(%arg0: i32) -> (i32, i32) {
    %c0_i32 = arith.constant 0 : i32
    %c0_i32_0 = arith.constant 0 : i32
    return %arg0, %c0_i32 : i32, i32
  }
}

</mosaic_0001>

<bundles_post_ra>
// kernel: tpu_custom_call.1
= control target key start
LH: loop header
LB: loop body
LE: loop exit
PB: predicated region body
PF: predicated region fallthrough
CT: control target
= control target key end

     0   :  { %s5295_s6 = smov 1   ;;  %s5296_s10 = smov 2   ;;  %s6169_s0 = inlined_call_operand.smem [shape: u32[30], index: -1, kind: input, shape index: {}] }
   0x1   :  { %s5349_s5 = sld [smem:[%s6169_s0]]   ;;  %s5297_s14 = smov 3  }
   0x2   :  { %s5354_s9 = sld [smem:[%s6169_s0 + %s5295_s6]]   ;;  %s5298_s18 = smov 4  }
   0x3   :  { %s5359_s13 = sld [smem:[%s6169_s0 + %s5296_s10]]   ;;  %s5299_s22 = smov 5  }
   0x4   :  { %s5364_s17 = sld [smem:[%s6169_s0 + %s5297_s14]]   ;;  %s5300_s26 = smov 6  }
   0x5   :  { %s5369_s21 = sld [smem:[%s6169_s0 + %s5298_s18]]   ;;  %s5301_s30 = smov 7  }
   0x6   :  { %s5374_s25 = sld [smem:[%s6169_s0 + %s5299_s22]]   ;;  %s5302_s4 = smov 8  }
   0x7   :  { %6218 = sst [smem:[#allocation35_spill]] %s5349_s5  ;;  %s5303_s10 = smov 9  }
   0x8   :  { %6219 = sst [smem:[#allocation36_spill]] %s5354_s9  ;;  %s5304_s15 = smov 10  }
   0x9   :  { %6220 = sst [smem:[#allocation37_spill]] %s5359_s13  ;;  %s5305_s20 = smov 11  }
   0xa   :  { %6221 = sst [smem:[#allocation38_spill]] %s5364_s17  ;;  %s5307_s1 = smov 13  }
   0xb   :  { %6222 = sst [smem:[#allocation39_spill]] %s5369_s21  ;;  %s5308_s7 = smov 14  }
   0xc   :  { %s5379_s29 = sld [smem:[%s6169_s0 + %s5300_s26]]   ;;  %s5306_s26 = smov 12  }
   0xd   :  { %s5384_s3 = sld [smem:[%s6169_s0 + %s5301_s30]]   ;;  %s5310_s22 = smov 16  }
   0xe   :  { %s5389_s8 = sld [smem:[%s6169_s0 + %s5302_s4]]   ;;  %s5311_s28 = smov 17  }
   0xf   :  { %s5394_s14 = sld [smem:[%s6169_s0 + %s5303_s10]]  }
  0x10   :  { %s5399_s19 = sld [smem:[%s6169_s0 + %s5304_s15]]   ;;  %s5309_s15 = smov 15  }
  0x11   :  { %s5404_s24 = sld [smem:[%s6169_s0 + %s5305_s20]]  }
  0x12   :  { %s5409_s30 = sld [smem:[%s6169_s0 + %s5306_s26]]  }
  0x13   :  { %6223 = sst [smem:[#allocation40_spill]] %s5384_s3 }
  0x14   :  { %6224 = sst [smem:[#allocation41_spill]] %s5389_s8 }
  0x15   :  { %6225 = sst [smem:[#allocation42_spill]] %s5394_s14 }
  0x16   :  { %6226 = sst [smem:[#allocation43_spill]] %s5399_s19 }
  0x17   :  { %6227 = sst [smem:[#allocation44_spill]] %s5404_s24 }
  0x18   :  { %6228 = sst [smem:[#allocation45_spill]] %s5409_s30 }
  0x19   :  { %s5414_s6 = sld [smem:[%s6169_s0 + %s5307_s1]]  }
  0x1a   :  { %s5419_s12 = sld [smem:[%s6169_s0 + %s5308_s7]]   ;;  %s5312_s7 = smov 18  }
  0x1b   :  { %s5424_s20 = sld [smem:[%s6169_s0 + %s5309_s15]]   ;;  %s5313_s15 = smov 19  }
  0x1c   :  { %s5429_s27 = sld [smem:[%s6169_s0 + %s5310_s22]]   ;;  %s5314_s22 = smov 20  }
  0x1d   :  { %s5434_s4 = sld [smem:[%s6169_s0 + %s5311_s28]]   ;;  %s5315_s28 = smov 21  }
  0x1e   :  { %s5439_s21 = sld [smem:[%s6169_s0 + %s5312_s7]]   ;;  %s5316_s7 = smov 22  }
  0x1f   :  { %6229 = sst [smem:[#allocation46_spill]] %s5414_s6 }
  0x20   :  { %6230 = sst [smem:[#allocation47_spill]] %s5419_s12 }
  0x21   :  { %6231 = sst [smem:[#allocation48_spill]] %s5424_s20 }
  0x22   :  { %s5444_s6 = sld [smem:[%s6169_s0 + %s5313_s15]]   ;;  %s5317_s15 = smov 23  }
  0x23   :  { %6232 = sst [smem:[#allocation49_spill]] %s5434_s4 }
  0x24   :  { %6233 = sst [smem:[#allocation50_spill]] %s5439_s21 }
  0x25   :  { %s5449_s30 = sld [smem:[%s6169_s0 + %s5314_s22]]   ;;  %s5318_s22 = smov 24  }
  0x26   :  { %s5454_s4 = sld [smem:[%s6169_s0 + %s5315_s28]]   ;;  %s5319_s28 = smov 25  }
  0x27   :  { %s5459_s21 = sld [smem:[%s6169_s0 + %s5316_s7]]   ;;  %s5320_s7 = smov 26  }
  0x28   :  { %6234 = sst [smem:[#allocation51_spill]] %s5444_s6 }
  0x29   :  { %s5464_s24 = sld [smem:[%s6169_s0 + %s5317_s15]]   ;;  %s5321_s15 = smov 27  }
  0x2b   :  { %6235 = sst [smem:[#allocation52_spill]] %s5449_s30 }
  0x2c   :  { %6236 = sst [smem:[#allocation53_spill]] %s5454_s4 }
  0x2d   :  { %6237 = sst [smem:[#allocation54_spill]] %s5459_s21 }
  0x2e   :  { %s5469_s30 = sld [smem:[%s6169_s0 + %s5318_s22]]   ;;  %s5322_s22 = smov 28  }
  0x2f   :  { %6238 = sst [smem:[#allocation55_spill]] %s5464_s24 }
  0x30   :  { %s5474_s4 = sld [smem:[%s6169_s0 + %s5319_s28]]   ;;  %s5323_s28 = smov 29  }
  0x31   :  { %s5479_s21 = sld [smem:[%s6169_s0 + %s5320_s7]]  }
  0x32   :  { %s5484_s24 = sld [smem:[%s6169_s0 + %s5321_s15]]  }
  0x34   :  { %6239 = sst [smem:[#allocation56_spill]] %s5469_s30 }
  0x35   :  { %s5489_s30 = sld [smem:[%s6169_s0 + %s5322_s22]]  }
  0x36   :  { %6240 = sst [smem:[#allocation57_spill]] %s5474_s4 }
  0x37   :  { %6241 = sst [smem:[#allocation58_spill]] %s5479_s21 }
  0x38   :  { %6242 = sst [smem:[#allocation59_spill]] %s5484_s24 }
  0x39   :  { %s5494_s4 = sld [smem:[%s6169_s0 + %s5323_s28]]  }
  0x3b   :  { %6243 = sst [smem:[#allocation60_spill]] %s5489_s30 }
  0x3f   :  { %6244 = sst [smem:[#allocation61_spill]] %s5494_s4 }
  0x40   :  { %65 = vsyncpa [#allocation3], 0 }
  0x41   :  { %67 = vsyncpa [#allocation3 + $0x1], 0 }
  0x42   :  { %68 = vsyncpa [#allocation6], 0 }
  0x43   :  { %70 = vsyncpa [#allocation6 + $0x1], 0 }
  0x44   :  { %71 = vsyncpa [#allocation9], 0 }
  0x45   :  { %73 = vsyncpa [#allocation9 + $0x1], 0 }
  0x46   :  { %74 = vsyncpa [#allocation12], 0 }
  0x47   :  { %76 = vsyncpa [#allocation12 + $0x1], 0 }
  0x48   :  { %77 = vsyncpa [#allocation15], 0 }
  0x49   :  { %78 = vsyncpa [#allocation18], 0 }
  0x4a   :  { %79 = vsyncpa [#allocation21], 0 }
  0x4b   :  { %80 = vsyncpa [#allocation4], 0 }
  0x4c   :  { %82 = vsyncpa [#allocation4 + $0x1], 0 }
  0x4d   :  { %83 = vsyncpa [#allocation24], 0 }
  0x4e   :  { %85 = vsyncpa [#allocation24 + $0x1], 0  ;;  %s5496_s7 = smov 0   ;;  %s5498_s10 = smov 0  }
  0x4f   :  { %s5500_s0 = smov 0   ;;  %s5502_s11 = smov 0  }
  0x50 LB: > { %s6245_s17 = sld [smem:[#allocation38_spill]]  ;;  %s5520_s16 = sadd.s32 4294967295, %s5293_s11   ;;  %s5281_s7 = sphi %s5496_s7, %s6313_s7   ;;  %s5293_s11 = sphi %s5502_s11, %s6310_s11   ;;  %s5289_s0 = sphi %s5500_s0, %s6312_s0   ;;  %s5285_s10 = sphi %s5498_s10, %s6314_s10  }
  0x51   : > { %s6246_s12 = sld [smem:[#allocation47_spill]]  ;;  %p3964_p0 = scmp.ge.s32.totalorder %s5293_s11, 1 }
  0x52   : > { %s6247_s6 = sld [smem:[#allocation51_spill]]  ;;  %p6201_p1 = scmp.eq.s32.totalorder %s5520_s16, 0 }
  0x53   : > { %s6248_s5 = sld [smem:[#allocation35_spill]]  ;;  %p776_p2 = scmp.lt.s32.totalorder %s5293_s11, 3 }
  0x54   : > { %s6249_s3 = sld [smem:[#allocation40_spill]]  ;;  %s5324_s22 = smov [#allocation13]  }
  0x55   : > { %s6250_s13 = sld [smem:[#allocation37_spill]]  ;;  %p5525_p3 = pnand %p3964_p0, %p776_p2 }
  0x56   : > { %s6251_s20 = sld [smem:[#allocation48_spill]]  ;;  %s789_s23 = sshll.u32 %s5324_s22, 4  ;;  %s790_s23 = int_to_ptr.vmem [resolvable:$true] %s789_s23 }
  0x57   : > { %s6252_s14 = sld [smem:[#allocation42_spill]]  ;;  %p4546_p4 = pneg %p5525_p3 }
  0x58   : > { %s6253_s8 = sld [smem:[#allocation41_spill]]  ;;  %s5325_s1 = smov [#allocation14]  }
  0x59   : > { %6254 = sst [smem:[#allocation62_spill]] %s5281_s7  ;;  %p5535_p6 = pnand %p4546_p4, %p6201_p1 }
  0x5a   : > { %6255 = sst [smem:[#allocation63_spill]] %s5289_s0  ;;  %s5541_s2 = sshll.u32 %s5325_s1, 4  ;;  %s804_s2 = int_to_ptr.vmem [resolvable:$true] %s5541_s2 }
  0x5b   : > { %6256 = sst [smem:[#allocation64_spill]] %s5520_s16  ;;  %p5546_p8 = pneg %p5535_p6 }
  0x5c   : > { %s6257_s18 = scalar_select %p5525_p3, 1, 0 }
  0x5d   : > { %s801_s26 = sshll.u32 %s6252_s14, 4  ;;  %s5539_s26 = int_to_ptr.hbm [resolvable:$true] %s801_s26 }
  0x5e   : > { %s787_s15 = sshll.u32 %s6253_s8, 4  ;;  %s4814_s24 = scalar_lea.hbm %s6253_s8, 8  ;;  %s5517_s15 = int_to_ptr.hbm [resolvable:$true] %s787_s15 }
  0x5f   : > { %s4807_s4 = sshra.s32 %s5517_s15, 4  ;;  %s4808_s4 = int_to_ptr.hbm [resolvable:$true] %s4807_s4 }
  0x60   : > { %s4809_s22 = scalar_lea.hbm %s4808_s4, 8  ;;  %p4815_p11 = scmp.lt.s32.totalorder %s4808_s4, %s6253_s8 }
  0x61   : > { %p4810_p7 = scmp.ne.s32.totalorder %s4808_s4, %s4809_s22  ;;  %p4816_p12 = scmp.lt.s32.totalorder %s4814_s24, %s4809_s22 }
  0x63   : > { %p4812_p9 = pnand %p5546_p8, %p4810_p7  ;;  %p4817_p13 = por %p4816_p12, %p4815_p11 }
  0x65   : > { %p4813_p10 = pneg %p4812_p9 }
  0x67   : > { %p4818_p0 = pnand %p4817_p13, %p4813_p10 }
  0x69   : > { %4821 = shalt.err (!%p4818_p0)
}
  0x6a   : > { %s6185_s1 = smov 64   ;;  %s6186_s21 = smov 4  }
  0x6b   : > { %4549 = dma.hbm_to_vmem [thread:$0]  (!%p5535_p6), %s5517_s15, 128, %s790_s23, [#allocation12], %s6185_s1, %s6185_s1, %s6186_s21  }
  0x6c   : > { %s4837_s4 = sshra.s32 %s5539_s26, 4  ;;  %s4844_s22 = scalar_lea.hbm %s6252_s14, 8  ;;  %s4838_s4 = int_to_ptr.hbm [resolvable:$true] %s4837_s4 }
  0x6d   : > { %s4839_s24 = scalar_lea.hbm %s4838_s4, 8  ;;  %p4845_p9 = scmp.lt.s32.totalorder %s4838_s4, %s6252_s14 }
  0x6e   : > { %p4840_p2 = scmp.ne.s32.totalorder %s4838_s4, %s4839_s24  ;;  %p4846_p10 = scmp.lt.s32.totalorder %s4844_s22, %s4839_s24 }
  0x70   : > { %p4842_p4 = pnand %p4840_p2, %p5546_p8  ;;  %p4847_p11 = por %p4846_p10, %p4845_p9 }
  0x72   : > { %p4843_p7 = pneg %p4842_p4 }
  0x74   : > { %p4848_p12 = pnand %p4847_p11, %p4843_p7 }
  0x76   : > { %4851 = shalt.err (!%p4848_p12)
}
  0x77   : > { %s6188_s8 = smov 16   ;;  %s6190_s15 = smov 1  }
  0x78   : > { %4552 = dma.hbm_to_vmem [thread:$0]  (!%p5535_p6), %s5539_s26, 128, %s804_s2, [#allocation15], %s6188_s8, %s6188_s8, %s6190_s15  }
  0x79   : > { %s841_s23 = sshll.u32 %s6251_s20, 4  ;;  %s5330_s4 = smov [#allocation17]   ;;  %s842_s23 = int_to_ptr.hbm [resolvable:$true] %s841_s23 }
  0x7a   : > { %s843_s24 = sshll.u32 %s5330_s4, 4  ;;  %s4867_s22 = sshra.s32 %s842_s23, 4  ;;  %s844_s24 = int_to_ptr.vmem [resolvable:$true] %s843_s24  ;;  %s4868_s22 = int_to_ptr.hbm [resolvable:$true] %s4867_s22 }
  0x7b   : > { %s4869_s1 = scalar_lea.hbm %s4868_s22, 2  ;;  %s4874_s21 = scalar_lea.hbm %s6251_s20, 2 }
  0x7c   : > { %p4870_p13 = scmp.ne.s32.totalorder %s4868_s22, %s4869_s1  ;;  %p4875_p4 = scmp.lt.s32.totalorder %s4868_s22, %s6251_s20 }
  0x7d   : > { %p4876_p7 = scmp.lt.s32.totalorder %s4874_s21, %s4869_s1 }
  0x7e   : > { %p4872_p0 = pnand %p4870_p13, %p5546_p8 }
  0x7f   : > { %p4877_p9 = por %p4876_p7, %p4875_p4 }
  0x80   : > { %p4873_p2 = pneg %p4872_p0 }
  0x82   : > { %p4878_p10 = pnand %p4877_p9, %p4873_p2 }
  0x84   : > { %4881 = shalt.err (!%p4878_p10)
}
  0x85   : > { %4558 = dma.hbm_to_vmem [thread:$0]  (!%p5535_p6), %s842_s23, 32, %s844_s24, [#allocation18], %s6188_s8, %s6188_s8, %s6190_s15  }
  0x86   : > { %s3963_s21 = sadd.s32 4294967294, %s5293_s11   ;;  %s5584_s26 = sadd.s32 1, %s5293_s11  }
  0x87   : > { %6260 = sst [smem:[#allocation65_spill]] %s5584_s26  ;;  %s98_s2 = sadd.s32 1, %s5289_s0 }
  0x88   : > { %s95_s1 = ssub.s32 %s5293_s11, %s5584_s26  ;;  %p105_p11 = scmp.ne.s32.totalorder %s5289_s0, %s5285_s10 }
  0x89   : > { %p96_p12 = scmp.eq.s32.totalorder %s95_s1, 0  ;;  %p106_p13 = scmp.eq.s32.totalorder %s5293_s11, 0 }
  0x8a   : > { %p111_p0 = scmp.ne.s32.totalorder %s5285_s10, %s5281_s7  ;;  %p737_p2 = scmp.eq.s32.totalorder %s5520_s16, 1 }
  0x8b   : > { %s5596_s4 = scalar_select %p96_p12, %s5289_s0, %s98_s2  }
  0x8c   : > { %p107_p4 = por %p106_p13, %p105_p11  ;;  %p5600_p7 = por %p6201_p1, %p111_p0 }
  0x8d   : > { %6261 = sst [smem:[#allocation66_spill]] %s5596_s4  ;;  %p5604_p9 = por %p737_p2, %p105_p11 }
  0x8e   : > { %p743_p10 = scmp.eq.s32.totalorder %s3963_s21, 1  ;;  %p4597_p5 = scmp.lt.s32.totalorder %s5293_s11, 2 }
  0x8f   : > { %s6263_s24 = scalar_select %p5604_p9, 1, 0 }
  0x90   : > { %s5610_s22 = sand.u32 1, %s5289_s0   ;;  %p5612_p3 = por %p743_p10, %p111_p0 }
  0x91   : > { %6264 = sst [smem:[#allocation67_spill]] %s6263_s24  ;;  %s5617_s2 = sshll.u32 %s5610_s22, 3 }
  0x92   : > { %s6265_s1 = scalar_select %p5612_p3, 1, 0 }
  0x93   : > { %p5619_p12 = pnand %p4597_p5, %p107_p4  ;;  %s5624_s15 = sand.u32 1, %s5293_s11  }
  0x94   : > { %6266 = sst [smem:[#allocation68_spill]] %s6265_s1  ;;  %s947_s21 = scalar_lea.hbm %s6250_s13, %s5293_s11 }
  0x95   : > { %s949_s14 = sshll.u32 %s947_s21, 4  ;;  %s944_s20 = scalar_lea.vmem [#allocation5], %s5610_s22  ;;  %s950_s14 = int_to_ptr.hbm [resolvable:$true] %s949_s14 }
  0x96   : > { %s951_s4 = sshll.u32 %s944_s20, 4  ;;  %s6207_s0 = scalar_lea.sflag [#allocation6], %s5624_s15  ;;  %s952_s4 = int_to_ptr.vmem [resolvable:$true] %s951_s4 }
  0x97   : > { %s4897_s26 = sshra.s32 %s950_s14, 4  ;;  %p5632_p11 = pneg %p5619_p12  ;;  %s4898_s26 = int_to_ptr.hbm [resolvable:$true] %s4897_s26 }
  0x98   : > { %s4899_s1 = scalar_lea.hbm %s4898_s26, 1  ;;  %s4904_s24 = scalar_lea.hbm %s6250_s13, 2 }
  0x99   : > { %p4900_p5 = scmp.ne.s32.totalorder %s4898_s26, %s4899_s1  ;;  %p4905_p2 = scmp.lt.s32.totalorder %s4898_s26, %s6250_s13 }
  0x9a   : > { %p4906_p4 = scmp.lt.s32.totalorder %s4904_s24, %s4899_s1 }
  0x9b   : > { %p4902_p13 = pnand %p5632_p11, %p4900_p5 }
  0x9c   : > { %p4907_p10 = por %p4906_p4, %p4905_p2 }
  0x9d   : > { %p4903_p0 = pneg %p4902_p13 }
  0x9f   : > { %p4908_p1 = pnand %p4907_p10, %p4903_p0 }
  0xa1   : > { %4911 = shalt.err (!%p4908_p1)
}
  0xa2   : > { %4571 = dma.hbm_to_vmem [thread:$0]  (!%p5619_p12), %s950_s14, 16, %s952_s4, %s6207_s0  }
  0xa3   : > { %s5645_s20 = sshll.u32 %s5293_s11, 3  ;;  %s988_s1 = scalar_lea.vmem [#allocation8], %s5617_s2 }
  0xa4   : > { %s992_s26 = scalar_lea.hbm %s5374_s25, %s5645_s20  ;;  %s996_s21 = sshll.u32 %s988_s1, 4  ;;  %s997_s21 = int_to_ptr.vmem [resolvable:$true] %s996_s21 }
  0xa5   : > { %s994_s24 = sshll.u32 %s992_s26, 4  ;;  %s6206_s13 = scalar_lea.sflag [#allocation9], %s5624_s15  ;;  %s995_s24 = int_to_ptr.hbm [resolvable:$true] %s994_s24 }
  0xa6   : > { %s4927_s19 = sshra.s32 %s995_s24, 4  ;;  %s4934_s16 = scalar_lea.hbm %s5374_s25, 16  ;;  %s4928_s19 = int_to_ptr.hbm [resolvable:$true] %s4927_s19 }
  0xa7   : > { %s4929_s9 = scalar_lea.hbm %s4928_s19, 8  ;;  %p4935_p0 = scmp.lt.s32.totalorder %s4928_s19, %s5374_s25 }
  0xa8   : > { %p4930_p1 = scmp.ne.s32.totalorder %s4928_s19, %s4929_s9  ;;  %p4936_p2 = scmp.lt.s32.totalorder %s4934_s16, %s4929_s9 }
  0xaa   : > { %p4932_p5 = pnand %p4930_p1, %p5632_p11  ;;  %p4937_p4 = por %p4936_p2, %p4935_p0 }
  0xac   : > { %p4933_p13 = pneg %p4932_p5 }
  0xae   : > { %p4938_p10 = pnand %p4937_p4, %p4933_p13 }
  0xb0   : > { %4941 = shalt.err (!%p4938_p10)
}
  0xb1   : > { %4577 = dma.hbm_to_vmem [thread:$0]  (!%p5619_p12), %s995_s24, 128, %s997_s21, %s6206_s13  }
  0xb2   : > { %s827_s14 = sshll.u32 %s6246_s12, 4  ;;  %s5331_s4 = smov [#allocation16]   ;;  %s828_s14 = int_to_ptr.hbm [resolvable:$true] %s827_s14 }
  0xb3   : > { %s829_s26 = sshll.u32 %s5331_s4, 4  ;;  %s855_s19 = sshll.u32 %s5429_s27, 4  ;;  %s830_s26 = int_to_ptr.vmem [resolvable:$true] %s829_s26  ;;  %s856_s19 = int_to_ptr.hbm [resolvable:$true] %s855_s19 }
  0xb4   : > { %s4957_s9 = sshra.s32 %s828_s14, 4  ;;  %s4964_s1 = scalar_lea.hbm %s6246_s12, 2  ;;  %s4958_s9 = int_to_ptr.hbm [resolvable:$true] %s4957_s9 }
  0xb5   : > { %s4959_s16 = scalar_lea.hbm %s4958_s9, 2  ;;  %p4965_p0 = scmp.lt.s32.totalorder %s4958_s9, %s6246_s12 }
  0xb6   : > { %p4960_p1 = scmp.ne.s32.totalorder %s4958_s9, %s4959_s16  ;;  %p4966_p2 = scmp.lt.s32.totalorder %s4964_s1, %s4959_s16 }
  0xb8   : > { %p4962_p5 = pnand %p4960_p1, %p5546_p8  ;;  %p4967_p4 = por %p4966_p2, %p4965_p0 }
  0xba   : > { %p4963_p13 = pneg %p4962_p5 }
  0xbc   : > { %p4968_p10 = pnand %p4967_p4, %p4963_p13 }
  0xbe   : > { %4971 = shalt.err (!%p4968_p10)
}
  0xbf   : > { %s6269_s24 = smov 1   ;;  %s6270_s21 = smov 16  }
  0xc0   : > { %4555 = dma.hbm_to_vmem [thread:$0]  (!%p5535_p6), %s828_s14, 32, %s830_s26, [#allocation15], %s6270_s21, %s6270_s21, %s6269_s24  }
  0xc1   : > { %s5332_s4 = smov [#allocation19]   ;;  %s875_s0 = sshll.u32 %s6247_s6, 4  ;;  %s5671_s0 = int_to_ptr.hbm [resolvable:$true] %s875_s0 }
  0xc2   : > { %s857_s13 = sshll.u32 %s5332_s4, 4  ;;  %s4987_s9 = sshra.s32 %s856_s19, 4  ;;  %s858_s13 = int_to_ptr.vmem [resolvable:$true] %s857_s13  ;;  %s4988_s9 = int_to_ptr.hbm [resolvable:$true] %s4987_s9 }
  0xc3   : > { %s4989_s16 = scalar_lea.hbm %s4988_s9, 12  ;;  %s4994_s1 = scalar_lea.hbm %s5429_s27, 12 }
  0xc4   : > { %p4990_p1 = scmp.ne.s32.totalorder %s4988_s9, %s4989_s16  ;;  %p4995_p0 = scmp.lt.s32.totalorder %s4988_s9, %s5429_s27 }
  0xc5   : > { %p4996_p2 = scmp.lt.s32.totalorder %s4994_s1, %s4989_s16 }
  0xc6   : > { %p4992_p5 = pnand %p4990_p1, %p5546_p8 }
  0xc7   : > { %p4997_p4 = por %p4996_p2, %p4995_p0 }
  0xc8   : > { %p4993_p13 = pneg %p4992_p5 }
  0xca   : > { %p4998_p10 = pnand %p4997_p4, %p4993_p13 }
  0xcc   : > { %5001 = shalt.err (!%p4998_p10)
}
  0xcd   : > { %4561 = dma.hbm_to_vmem [thread:$0]  (!%p5535_p6), %s856_s19, 192, %s858_s13, [#allocation18], %s6270_s21, %s6270_s21, %s6269_s24  }
  0xce   : > { %s5333_s14 = smov [#allocation20]   ;;  %s923_s4 = scalar_lea.hbm %s6248_s5, %s5645_s20 }
  0xcf   : > { %s877_s26 = sshll.u32 %s5333_s14, 4  ;;  %s5017_s9 = sshra.s32 %s5671_s0, 4  ;;  %s878_s26 = int_to_ptr.vmem [resolvable:$true] %s877_s26  ;;  %s5018_s9 = int_to_ptr.hbm [resolvable:$true] %s5017_s9 }
  0xd0   : > { %s5019_s16 = scalar_lea.hbm %s5018_s9, 16  ;;  %s5024_s1 = scalar_lea.hbm %s6247_s6, 16 }
  0xd1   : > { %p5020_p1 = scmp.ne.s32.totalorder %s5018_s9, %s5019_s16  ;;  %p5025_p0 = scmp.lt.s32.totalorder %s5018_s9, %s6247_s6 }
  0xd2   : > { %p5026_p2 = scmp.lt.s32.totalorder %s5024_s1, %s5019_s16 }
  0xd3   : > { %p5022_p5 = pnand %p5020_p1, %p5546_p8 }
  0xd4   : > { %p5027_p4 = por %p5026_p2, %p5025_p0 }
  0xd5   : > { %p5023_p13 = pneg %p5022_p5 }
  0xd7   : > { %p5028_p10 = pnand %p5027_p4, %p5023_p13 }
  0xd9   : > { %5031 = shalt.err (!%p5028_p10)
}
  0xda   : > { %s6271_s13 = smov 4   ;;  %s6272_s19 = smov 64  }
  0xdb   : > { %4564 = dma.hbm_to_vmem [thread:$0]  (!%p5535_p6), %s5671_s0, 256, %s878_s26, [#allocation21], %s6272_s19, %s6272_s19, %s6271_s13  }
  0xdc   : > { %s925_s30 = sshll.u32 %s923_s4, 4  ;;  %s919_s24 = scalar_lea.vmem [#allocation2], %s5617_s2  ;;  %s926_s30 = int_to_ptr.hbm [resolvable:$true] %s925_s30 }
  0xdd   : > { %s927_s21 = sshll.u32 %s919_s24, 4  ;;  %s916_s14 = scalar_lea.sflag [#allocation3], %s5610_s22  ;;  %s928_s21 = int_to_ptr.vmem [resolvable:$true] %s927_s21 }
  0xde   : > { %s5047_s9 = sshra.s32 %s926_s30, 4  ;;  %s5054_s28 = scalar_lea.hbm %s6248_s5, 16  ;;  %s5048_s9 = int_to_ptr.hbm [resolvable:$true] %s5047_s9 }
  0xdf   : > { %s5049_s16 = scalar_lea.hbm %s5048_s9, 8  ;;  %p5055_p13 = scmp.lt.s32.totalorder %s5048_s9, %s6248_s5 }
  0xe0   : > { %p5050_p8 = scmp.ne.s32.totalorder %s5048_s9, %s5049_s16  ;;  %p5056_p0 = scmp.lt.s32.totalorder %s5054_s28, %s5049_s16 }
  0xe2   : > { %p5052_p1 = pnand %p5050_p8, %p5632_p11  ;;  %p5057_p2 = por %p5056_p0, %p5055_p13 }
  0xe4   : > { %p5053_p5 = pneg %p5052_p1 }
  0xe6   : > { %p5058_p4 = pnand %p5057_p2, %p5053_p5 }
  0xe8   : > { %5061 = shalt.err (!%p5058_p4)
}
  0xe9   : > { %4568 = dma.hbm_to_vmem [thread:$0]  (!%p5619_p12), %s926_s30, 128, %s928_s21, %s916_s14  }
  0xea   : > { %s966_s0 = scalar_lea.hbm %s6245_s17, %s5645_s20  ;;  %s962_s26 = scalar_lea.vmem [#allocation7], %s5617_s2 }
  0xeb   : > { %s968_s22 = sshll.u32 %s966_s0, 4  ;;  %s970_s4 = sshll.u32 %s962_s26, 4  ;;  %s969_s22 = int_to_ptr.hbm [resolvable:$true] %s968_s22  ;;  %s971_s4 = int_to_ptr.vmem [resolvable:$true] %s970_s4 }
  0xec   : > { %s5077_s1 = sshra.s32 %s969_s22, 4  ;;  %s5084_s19 = scalar_lea.hbm %s6245_s17, 16  ;;  %s5078_s1 = int_to_ptr.hbm [resolvable:$true] %s5077_s1 }
  0xed   : > { %s5079_s13 = scalar_lea.hbm %s5078_s1, 8  ;;  %p5085_p1 = scmp.lt.s32.totalorder %s5078_s1, %s6245_s17 }
  0xee   : > { %p5080_p6 = scmp.ne.s32.totalorder %s5078_s1, %s5079_s13  ;;  %p5086_p5 = scmp.lt.s32.totalorder %s5084_s19, %s5079_s13 }
  0xf0   : > { %p5082_p10 = pnand %p5080_p6, %p5632_p11  ;;  %p5087_p13 = por %p5086_p5, %p5085_p1 }
  0xf2   : > { %p5083_p8 = pneg %p5082_p10 }
  0xf4   : > { %p5088_p0 = pnand %p5087_p13, %p5083_p8 }
  0xf6   : > { %5091 = shalt.err (!%p5088_p0)
}
  0xf7   : > { %s6273_s30 = scalar_lea.sflag [#allocation6], %s5624_s15  ;;  %s1011_s24 = scalar_lea.hbm %s5379_s29, %s5645_s20 }
  0xf8   : > { %4574 = dma.hbm_to_vmem [thread:$0]  (!%p5619_p12), %s969_s22, 128, %s971_s4, %s6273_s30  }
  0xf9   : > { %s1013_s21 = sshll.u32 %s1011_s24, 4  ;;  %s1007_s14 = scalar_lea.vmem [#allocation10], %s5617_s2  ;;  %s1014_s21 = int_to_ptr.hbm [resolvable:$true] %s1013_s21 }
  0xfa   : > { %s1015_s9 = sshll.u32 %s1007_s14, 4  ;;  %s5107_s16 = sshra.s32 %s1014_s21, 4  ;;  %s1016_s9 = int_to_ptr.vmem [resolvable:$true] %s1015_s9  ;;  %s5108_s16 = int_to_ptr.hbm [resolvable:$true] %s5107_s16 }
  0xfb   : > { %s5109_s28 = scalar_lea.hbm %s5108_s16, 8  ;;  %s5114_s0 = scalar_lea.hbm %s5379_s29, 16 }
  0xfc   : > { %p5110_p2 = scmp.ne.s32.totalorder %s5108_s16, %s5109_s28  ;;  %p5115_p10 = scmp.lt.s32.totalorder %s5108_s16, %s5379_s29 }
  0xfd   : > { %p5116_p8 = scmp.lt.s32.totalorder %s5114_s0, %s5109_s28 }
  0xfe   : > { %p5112_p4 = pnand %p5110_p2, %p5632_p11 }
  0xff   : > { %p5117_p1 = por %p5116_p8, %p5115_p10 }
 0x100   : > { %p5113_p6 = pneg %p5112_p4 }
 0x102   : > { %p5118_p5 = pnand %p5117_p1, %p5113_p6 }
 0x104   : > { %5121 = shalt.err (!%p5118_p5)
}
 0x105   : > { %s6274_s22 = scalar_lea.sflag [#allocation9], %s5624_s15  ;;  %s1030_s26 = scalar_lea.hbm %s6249_s3, %s5645_s20 }
 0x106   : > { %4580 = dma.hbm_to_vmem [thread:$0]  (!%p5619_p12), %s1014_s21, 128, %s1016_s9, %s6274_s22  }
 0x107   : > { %s1026_s4 = scalar_lea.vmem [#allocation11], %s5617_s2  ;;  %s1032_s13 = sshll.u32 %s1030_s26, 4  ;;  %s1033_s13 = int_to_ptr.hbm [resolvable:$true] %s1032_s13 }
 0x108   : > { %s1034_s1 = sshll.u32 %s1026_s4, 4  ;;  %s1023_s19 = scalar_lea.sflag [#allocation12], %s5624_s15  ;;  %s1035_s1 = int_to_ptr.vmem [resolvable:$true] %s1034_s1 }
 0x109   : > { %s5137_s30 = sshra.s32 %s1033_s13, 4  ;;  %s5144_s14 = scalar_lea.hbm %s6249_s3, 16  ;;  %s5138_s30 = int_to_ptr.hbm [resolvable:$true] %s5137_s30 }
 0x10a   : > { %s5139_s24 = scalar_lea.hbm %s5138_s30, 8  ;;  %p5145_p4 = scmp.lt.s32.totalorder %s5138_s30, %s6249_s3 }
 0x10b   : > { %p5140_p13 = scmp.ne.s32.totalorder %s5138_s30, %s5139_s24  ;;  %p5146_p6 = scmp.lt.s32.totalorder %s5144_s14, %s5139_s24 }
 0x10d   : > { %p5142_p0 = pnand %p5140_p13, %p5632_p11  ;;  %p5147_p10 = por %p5146_p6, %p5145_p4 }
 0x10f   : > { %p5143_p2 = pneg %p5142_p0 }
 0x111   : > { %p5148_p8 = pnand %p5147_p10, %p5143_p2 }
 0x113   : > { %5151 = shalt.err (!%p5148_p8)
}
 0x114   : > { %4583 = dma.hbm_to_vmem [thread:$0]  (!%p5619_p12), %s1033_s13, 128, %s1035_s1, %s1023_s19  }
 0x115   : > { %p6275_p1 = scmp.ne.s32.totalorder %s6257_s18, 0 }
 0x116   : > { %s5738_s15 = sand.u32 (!%p6275_p1), 1, %s5285_s10  }
 0x117   : > { %1043 = sbr.rel (%p6275_p1) target bundleno = 10584 (0x2958), region = 132  ;;  %s5741_s7 = sshll.u32 (!%p6275_p1), %s5738_s15, 3 }
 0x118   : > { %s1046_s2 = scalar_lea.sflag (!%p6275_p1), [#allocation3], %s5738_s15  ;;  %s1049_s20 = scalar_lea.vmem (!%p6275_p1), [#allocation2], %s5741_s7 }
 0x11c   : > { %5240 = dma.done.wait (%p5600_p7), %s1046_s2, 128  }
 0x11d   : > { %5242 = vsyncadd (%p5600_p7), %s1046_s2, 4294967168  ;;  %s6276_s8 = sld [smem:[#allocation64_spill]]  ;;  %s1058_s9 = scalar_lea.vmem [#allocation5], %s5738_s15 }
 0x123   : > { %s1055_s18 = sand.u32 1, %s6276_s8  }
 0x124   : > { %s1056_s21 = scalar_lea.sflag [#allocation6], %s1055_s18 }
 0x125   : > { %5244 = dma.done.wait (%p5600_p7), %s1056_s21, 144  }
 0x126   : > { %5246 = vsyncadd (%p5600_p7), %s1056_s21, 4294967152  ;;  %s1068_s16 = scalar_lea.vmem [#allocation7], %s5741_s7  ;;  %s1075_s28 = scalar_lea.sflag [#allocation9], %s1055_s18 }
 0x127   : > { %s1078_s0 = scalar_lea.vmem [#allocation8], %s5741_s7 }
 0x128   : > { %5248 = dma.done.wait (%p5600_p7), %s1075_s28, 256  }
 0x129   : > { %5250 = vsyncadd (%p5600_p7), %s1075_s28, 4294967040  ;;  %s1088_s22 = scalar_lea.vmem [#allocation10], %s5741_s7  ;;  %s1095_s26 = scalar_lea.sflag [#allocation12], %s1055_s18 }
 0x12a   : > { %s1098_s4 = scalar_lea.vmem [#allocation11], %s5741_s7 }
 0x12b   : > { %5252 = dma.done.wait (%p5600_p7), %s1095_s26, 128  }
 0x12c   : > { %5254 = vsyncadd (%p5600_p7), %s1095_s26, 4294967168  ;;  %p6277_p12 = scmp.eq.s32.totalorder %s6276_s8, 0 }
 0x12e   : > { %5256 = dma.done.wait (%p6277_p12), [#allocation12], 128   ;;  %p6278_p11 = pmov %p6277_p12 }
 0x130   : > { %5258 = vsyncadd (%p6278_p11), [#allocation12], 4294967168  ;;  %p6279_p5 = pmov %p6278_p11 }
 0x132   : > { %5260 = dma.done.wait (%p6279_p5), [#allocation15], 160   ;;  %p6280_p13 = pmov %p6279_p5 }
 0x133   : > { %p6281_p0 = pmov %p6279_p5 }
 0x134   : > { %5262 = vsyncadd (%p6280_p13), [#allocation15], 4294967136 }
 0x135   : > { %5264 = dma.done.wait (%p6281_p0), [#allocation18], 224   ;;  %p6282_p2 = pmov %p6281_p0 }
 0x136   : > { %p6283_p7 = pmov %p6281_p0 }
 0x137   : > { %5266 = vsyncadd (%p6282_p2), [#allocation18], 4294967072 }
 0x138   : > { %5268 = dma.done.wait (%p6283_p7), [#allocation21], 256   ;;  %p6284_p4 = pmov %p6281_p0 }
 0x139   : > { %s6285_s23 = sld [smem:[#allocation36_spill]]  ;;  %p1240_p6 = scmp.lt.s32.totalorder %s6276_s8, 1  ;;  %v5334_v0 = vmov 0   ;;  %vm1271_vm0 = vcmask 1043456   ;;  %v1265_v1 = vld [vmem:[#allocation13] sm:$0xf] }
 0x13a   : > { %5270 = vsyncadd (%p6284_p4), [#allocation21], 4294967040  ;;  %s6286_s1 = sld [smem:[#allocation43_spill]]  ;;  %4683 = vset.pattern.permute.xlu0 %v5334_v0  ;;  %v1264_v2 = vld [vmem:[%s1058_s9] sm:$0x1]  ;;  %v1273_v3 = vsel %vm1271_vm0, %v1265_v1, 0 }
 0x13b   : > { %s5785_s13 = scalar_select %p1240_p6, %s6276_s8, 1  ;;  %v1266_v4 = vpack.c.bf16 %v1264_v2, %v1264_v2  ;;  %vm1267_vm1 = vcmask 64512   ;;  %1282 = vmatpush.bf16.msra.mxu0 %v1273_v3  ;;  %v4684_v8 = vld [vmem:[#allocation14] ss:$0 sm:$0xff]  ;;  %v1288_v11 = vld [vmem:[%s1049_s20] sm:$0xff]  ;;  %vm1328_vm2 = vcmask 261120  }
 0x13c   : > { %v4685_v13 = vld [vmem:[#allocation14 + $0x1] ss:$0 sm:$0xff]  ;;  %v1253_v14 = vld [vmem:[#allocation14 + $0x2] sm:$0x1]  ;;  %v4686_v22 = vld [vmem:[#allocation16] ss:$0 sm:$0xff] }
 0x13d   : > { %s3995_s19 = sshll.u32 %s5785_s13, 3  ;;  %s5335_s24 = smov 112   ;;  %vm1350_vm3 = vcmask 130048   ;;  %v5812_v30 = vld [vmem:[%s1078_s0] sm:$0xff]  ;;  %v5339_v3 = vmov 32.0  }
 0x13e   : > { %3997 = vmatmul.msk.bf16.vlgmr.msra.gmra.mxu0 %vm1267_vm1, %v1266_v4  ;;  %s5336_s14 = smov 96   ;;  %s5337_s2 = smov 64   ;;  %v4687_v61 = vld [vmem:[#allocation19] ss:$0 sm:$0xff] }
 0x13f   : > { %s1243_s30 = scalar_lea.vmem %s6285_s23, %s3995_s19  ;;  %s6287_s20 = sld [smem:[#allocation44_spill]] }
 0x140   : > { %v1289_v5 = vld [vmem:[%s1243_s30] sm:$0xff]  ;;  %v4437_v6 = vld [vmem:[%s6286_s1 + $0x8] sm:$0xff]  ;;  %s5338_s18 = smov 16   ;;  %s6288_s21 = sld [smem:[#allocation45_spill]] }
 0x141   : > { %1292 = vperm.xlu0 %4683, %v1289_v5   ;;  %1338 = vmatpush.bf16.msra.mxu1 %v4437_v6  ;;  %v4436_v7 = vld [vmem:[%s6286_s1] sm:$0xff]  ;;  %s6289_s9 = sld [smem:[#allocation46_spill]]  ;;  %s6208_s30 = scalar_lea.vmem [#allocation22], %s5738_s15 }
 0x142   : > { %s6290_s28 = sld [smem:[#allocation39_spill]]  ;;  %s3618_s3 = scalar_lea.sflag [#allocation4], %s5738_s15 }
 0x143   : > { %s6291_s26 = sld [smem:[#allocation58_spill]] }
 0x144   : > { %s6292_s23 = sld [smem:[#allocation49_spill]] }
 0x145   : > { %1339 = vmatpush.bf16.msra.mxu1 %v4436_v7  ;;  %v4439_v48 = vld [vmem:[%s6287_s20 + $0x8] sm:$0xff]  ;;  %v4438_v53 = vld [vmem:[%s6287_s20] sm:$0xff]  ;;  %s6293_s13 = sld [smem:[#allocation59_spill]] }
 0x146   : > { %1510 = vmatpush.bf16.msrb.mxu0 %v4439_v48  ;;  %v4691_v48 = vld [vmem:[#allocation19 + $0x2] ss:$0 sm:$0xff] }
 0x148   : > { %s1247_s0 = scalar_lea.vmem %s6290_s28, %s3995_s19  ;;  %s6294_s19 = sld [smem:[#allocation54_spill]] }
 0x149   : > { %s6295_s28 = sld [smem:[#allocation55_spill]] }
 0x14a   : > { %1511 = vmatpush.bf16.msrb.mxu0 %v4438_v53 }
 0x1b3   : > { %v1293_v9 = vpop.permute.xlu0 %1292 }
 0x1b4   : > { %v1298_v10 = vmul.f32 %v4684_v8, %v1293_v9 }
 0x1b6   : > { %v1299_v12 = vadd.f32 %v1298_v10, %v1288_v11 }
 0x1b8   : > { %v1303_v16 = vadd.f32 %v4685_v13, %v1299_v12 }
 0x1bb   : > { %v1284_v15 = vpop.f32.mrf.mxu0 }
 0x1bc   : > { %v1285_v17 = vadd.f32 %v1284_v15, %v1253_v14  ;;  %v4441_v15 = vld [vmem:[%s6288_s21 + $0x8] sm:$0xff] }
 0x1be   : > { %v1304_v18 = vperm.slane %v1285_v17, 0  ;;  %v4449_v17 = vld [vmem:[%s6289_s9 + $0x38] sm:$0xff] }
 0x1bf   : > { %1667 = vmatpush.bf16.msrb.mxu1 %v4449_v17 }
 0x1c0   : > { %v5797_v19 = vadd.f32 %v1304_v18, %v1303_v16  ;;  %v4440_v16 = vld [vmem:[%s6288_s21] sm:$0xff] }
 0x1c2   : > { %v1311_v20 = vpack.c.bf16 %v5797_v19, %v5797_v19 }
 0x1c3   : > { %v1286_v21 = vpop.f32.mrf.mxu0 }
 0x1c4   : > { %4006 = vmatmul.msk.bf16.vlgmr.msra.gmra.mxu1 %vm1328_vm2, %v1311_v20  ;;  %v4448_v20 = vld [vmem:[%s6289_s9 + $0x30] sm:$0xff] }
 0x1c5   : > { %1668 = vmatpush.bf16.msrb.mxu1 %v4448_v20 }
 0x241   : > { %v1341_v23 = vpop.f32.mrf.mxu1 }
 0x242   : > { %v1342_v24 = vadd.f32 %v4686_v22, %v1341_v23  ;;  %v4447_v22 = vld [vmem:[%s6289_s9 + $0x28] sm:$0xff]  ;;  %v4446_v23 = vld [vmem:[%s6289_s9 + $0x20] sm:$0xff] }
 0x243   : > { %1669 = vmatpush.bf16.msrb.mxu1 %v4447_v22 }
 0x244   : > { %1346 = vrot.lane.b32.xlu0 %v1342_v24, %s5335_s24 }
 0x247   : > { %1670 = vmatpush.bf16.msrb.mxu1 %v4446_v23 }
 0x249   : > { %v1343_v25 = vpop.f32.mrf.mxu1 }
 0x2b6   : > { %v1347_v26 = vpop.permute.xlu0 %1346 }
 0x2b7   : > { %1375 = vrot.lane.b32.xlu1 %v1347_v26, %s5336_s14 }
 0x2bf   : > { %1348 = vrot.lane.b32.xlu1 %v1342_v24, %s5336_s14 }
 0x2c7   : > { %1419 = vrot.lane.b32.xlu1 %v1342_v24, %s5337_s2 }
 0x329   : > { %v1376_v27 = vpop.permute.xlu1 %1375 }
 0x32a   : > { %4009 = vmatpush.xpose.msk.msra.mxu3 %vm1350_vm3, %v1376_v27 }
 0x32d   : > { %4010 = vmatmul.msk.f32.vlgmr.msra.gmra.mxu3 %vm1350_vm3, %v1347_v26 }
 0x331   : > { %v1349_v28 = vpop.permute.xlu1 %1348 }
 0x332   : > { %4007 = vmatpush.xpose.msk.msra.mxu2 %vm1350_vm3, %v1349_v28 }
 0x335   : > { %4008 = vmatmul.msk.f32.vlgmr.msra.gmra.mxu2 %vm1350_vm3, %v1342_v24 }
 0x339   : > { %v1420_v29 = vpop.permute.xlu1 %1419 }
 0x33a   : > { %1440 = vmatpush.msrb.mxu2 %v1420_v29  ;;  %v4444_v29 = vld [vmem:[%s6289_s9 + $0x10] sm:$0xff] }
 0x33c   : > { %1589 = vmatpush.bf16.msra.mxu2 %v4441_v15 }
 0x340   : > { %1590 = vmatpush.bf16.msra.mxu2 %v4440_v16 }
 0x3b0   : > { %v1398_v31 = vpop.f32.mrf.mxu3 }
 0x3b1   : > { %v1399_v32 = vadd.f32 %v1398_v31, %v5812_v30 }
 0x3b3   : > { %v1404_v33 = vsel %vm1267_vm1, %v1399_v32, -inf }
 0x3b4   : > { %1405 = vmax.xlane.f32.xlu2 %v1404_v33  ;;  %v4688_v33 = vld [vmem:[#allocation19 + $0x4] ss:$0 sm:$0xff] }
 0x3b8   : > { %v1372_v34 = vpop.f32.mrf.mxu2 }
 0x3b9   : > { %v1373_v35 = vadd.f32 %v1372_v34, %v5812_v30 }
 0x3bb   : > { %v1401_v36 = vsel %vm1267_vm1, %v1373_v35, -inf }
 0x3bc   : > { %1402 = vmax.xlane.f32.xlu0 %v1401_v36 }
 0x3cc   : > { %1445 = vrot.lane.b32.xlu2 %v1347_v26, %s5337_s2  ;;  %v4445_v26 = vld [vmem:[%s6289_s9 + $0x18] sm:$0xff] }
 0x3cd   : > { %1671 = vmatpush.bf16.msrb.mxu1 %v4445_v26 }
 0x3d1   : > { %1672 = vmatpush.bf16.msrb.mxu1 %v4444_v29 }
 0x427   : > { %v1406_v37 = vpop.xlane.xlu2 %1405 }
 0x428   : > { %v1408_v38 = vsub.f32 %v1399_v32, %v1406_v37 }
 0x42a   : > { %v1411_v39 = vmul.f32 1.442695, %v1408_v38 }
 0x42c   : > { %4733 = vpow2.f32 %v1411_v39 }
 0x42f   : > { %v1446_v40 = vpop.permute.xlu2 %1445  ;;  %v1403_v41 = vpop.xlane.xlu0 %1402 }
 0x430   : > { %v1407_v42 = vsub.f32 %v1373_v35, %v1403_v41  ;;  %1466 = vmatpush.msrb.mxu3 %v1446_v40  ;;  %v4689_v35 = vld [vmem:[#allocation19 + $0x6] ss:$0 sm:$0xff]  ;;  %v4442_v41 = vld [vmem:[%s6289_s9] sm:$0xff] }
 0x431   : > { %v4443_v40 = vld [vmem:[%s6289_s9 + $0x8] sm:$0xff] }
 0x432   : > { %v4734_v43 = vpop.eup %4733  ;;  %v1409_v44 = vmul.f32 1.442695, %v1407_v42  ;;  %1673 = vmatpush.bf16.msrb.mxu1 %v4443_v40  ;;  %v4690_v42 = vld [vmem:[#allocation17] ss:$0 sm:$0xff] }
 0x433   : > { %4012 = vmatmul.msk.f32.vlgmr.msrb.gmra.mxu3 %vm1267_vm1, %v4734_v43  ;;  %v1416_v45 = vsel %vm1267_vm1, %v4734_v43, 0.0 }
 0x434   : > { %4735 = vpow2.f32 %v1409_v44  ;;  %1417 = vadd.xlane.f32.xlu1 %v1416_v45 }
 0x436   : > { %1674 = vmatpush.bf16.msrb.mxu1 %v4442_v41 }
 0x43a   : > { %v4736_v46 = vpop.eup %4735 }
 0x43b   : > { %4011 = vmatmul.msk.f32.vlgmr.msrb.gmra.mxu2 %vm1267_vm1, %v4736_v46  ;;  %v1413_v47 = vsel %vm1267_vm1, %v4736_v46, 0.0 }
 0x43c   : > { %1414 = vadd.xlane.f32.xlu2 %v1413_v47 }
 0x4a7   : > { %v1418_v49 = vpop.xlane.xlu1 %1417 }
 0x4a8   : > { %4737 = vrcp.f32 %v1418_v49 }
 0x4ae   : > { %v4738_v50 = vpop.eup %4737 }
 0x4af   : > { %v1415_v54 = vpop.xlane.xlu2 %1414 }
 0x4b0   : > { %4739 = vrcp.f32 %v1415_v54 }
 0x4b1   : > { %4741 = vrcp.f32 %v5339_v3 }
 0x4b6   : > { %v1468_v51 = vpop.f32.mrf.mxu3  ;;  %v4740_v56 = vpop.eup %4739 }
 0x4b7   : > { %v1474_v52 = vmul.f32 %v4738_v50, %v1468_v51  ;;  %v4742_v4 = vpop.eup %4741 }
 0x4b8   : > { %v1526_v5 = vmul.f32 32.0, %v4742_v4  ;;  %vm1530_vm4 = vweird.f32 %v4742_v4 }
 0x4b9   : > { %1476 = vrot.lane.b32.xlu0 %v1474_v52, %s5338_s18 }
 0x4ba   : > { %v1527_v6 = vsub.f32 1.0, %v1526_v5 }
 0x4bc   : > { %v1528_v7 = vmul.f32 %v4742_v4, %v1527_v6  ;;  %v4692_v6 = vld [vmem:[#allocation19 + $0x8] ss:$0 sm:$0xff] }
 0x4be   : > { %v1442_v55 = vpop.f32.mrf.mxu2  ;;  %v1529_v8 = vadd.f32 %v4742_v4, %v1528_v7 }
 0x4bf   : > { %v1473_v57 = vmul.f32 %v4740_v56, %v1442_v55 }
 0x4c0   : > { %v5830_v9 = vsel %vm1530_vm4, %v4742_v4, %v1529_v8  ;;  %v4693_v8 = vld [vmem:[#allocation19 + $0xa] ss:$0 sm:$0xff] }
 0x52b   : > { %v1477_v58 = vpop.permute.xlu0 %1476 }
 0x52c   : > { %v1479_v59 = vsel %vm1350_vm3, %v1473_v57, %v1477_v58 }
 0x52d   : > { %v1484_v60 = vpack.c.bf16 %v1479_v59, %v1479_v59  ;;  %v4451_v59 = vld [vmem:[%s6286_s1 + $0x18] sm:$0xff] }
 0x52e   : > { %1747 = vmatpush.bf16.msra.mxu3 %v4451_v59 }
 0x52f   : > { %4021 = vmatmul.msk.bf16.vlgmr.msrb.gmra.mxu0 %vm1328_vm2, %v1484_v60  ;;  %v4450_v60 = vld [vmem:[%s6286_s1 + $0x10] sm:$0xff] }
 0x532   : > { %1748 = vmatpush.bf16.msra.mxu3 %v4450_v60 }
 0x5ac   : > { %v1513_v62 = vpop.f32.mrf.mxu0 }
 0x5ad   : > { %v1514_v63 = vadd.f32 %v4687_v61, %v1513_v62 }
 0x5af   : > { %v1517_v0 = vadd.f32 %v1514_v63, %v5797_v19 }
 0x5b1   : > { %v1522_v1 = vsel %vm1328_vm2, %v1517_v0, 0.0 }
 0x5b2   : > { %1523 = vadd.xlane.f32.xlu1 %v1522_v1 }
 0x5b4   : > { %v1515_v2 = vpop.f32.mrf.mxu0 }
 0x625   : > { %v1524_v10 = vpop.xlane.xlu1 %1523 }
 0x626   : > { %v1532_v11 = vmul.f32 %v5830_v9, %v1524_v10 }
 0x628   : > { %v1533_v12 = vsub.f32 %v1517_v0, %v1532_v11 }
 0x62a   : > { %v1534_v13 = vmul.f32 %v1533_v12, %v1533_v12 }
 0x62c   : > { %v1535_v14 = vsel %vm1328_vm2, %v1534_v13, 0.0 }
 0x62d   : > { %1536 = vadd.xlane.f32.xlu2 %v1535_v14  ;;  %v4694_v14 = vld [vmem:[#allocation16 + $0x1] ss:$0 sm:$0xff] }
 0x6a0   : > { %v1537_v18 = vpop.xlane.xlu2 %1536 }
 0x6a1   : > { %v1538_v19 = vmul.f32 %v1537_v18, %v5830_v9 }
 0x6a3   : > { %v1539_v21 = vadd.f32 1e-05, %v1538_v19 }
 0x6a5   : > { %4743 = vrsqrt.f32 %v1539_v21  ;;  %vm1546_vm6 = vweird.f32 %v1539_v21 }
 0x6ab   : > { %v4744_v24 = vpop.eup %4743 }
 0x6ac   : > { %v1541_v25 = vmul.f32 %v4744_v24, %v1539_v21  ;;  %vm1547_vm5 = vweird.f32 %v4744_v24 }
 0x6ad   : > { %vm1548_vm7 = vmor %vm1546_vm6, %vm1547_vm5 }
 0x6ae   : > { %v1542_v27 = vmul.f32 %v4744_v24, %v1541_v25 }
 0x6b0   : > { %v1543_v28 = vmul.f32 0.5, %v1542_v27 }
 0x6b2   : > { %v1544_v31 = vsub.f32 1.5, %v1543_v28 }
 0x6b4   : > { %v1545_v32 = vmul.f32 %v4744_v24, %v1544_v31 }
 0x6b6   : > { %v1549_v34 = vsel %vm1548_vm7, %v4744_v24, %v1545_v32 }
 0x6b7   : > { %v1550_v36 = vmul.f32 %v1549_v34, %v1533_v12 }
 0x6b9   : > { %v1554_v37 = vmul.f32 %v4688_v33, %v1550_v36 }
 0x6bb   : > { %v1558_v38 = vadd.f32 %v4689_v35, %v1554_v37 }
 0x6bd   : > { %v1563_v39 = vpack.c.bf16 %v1558_v38, %v1558_v38 }
 0x6bf   : > { %4030 = vmatmul.msk.bf16.vlgmr.msra.gmra.mxu2 %vm1328_vm2, %v1563_v39  ;;  %v4453_v39 = vld [vmem:[%s6287_s20 + $0x18] sm:$0xff] }
 0x742   : > { %v1592_v43 = vpop.f32.mrf.mxu2 }
 0x743   : > { %v1593_v44 = vadd.f32 %v4690_v42, %v1592_v43 }
 0x745   : > { %v1596_v45 = vmax.f32 %v1593_v44, 0.0  ;;  %v4452_v44 = vld [vmem:[%s6287_s20 + $0x10] sm:$0xff] }
 0x747   : > { %v1613_v46 = vpack.c.bf16 %v1596_v45, %v1596_v45 }
 0x749   : > { %1675 = vmatmul.bf16.vlgmr.msrb.gmra.mxu1 %v1613_v46 }
 0x74a   : > { %v1594_v47 = vpop.f32.mrf.mxu2 }
 0x7c6   : > { %v1676_v49 = vpop.f32.mrf.mxu1 }
 0x7c7   : > { %v1677_v50 = vadd.f32 %v4691_v48, %v1676_v49 }
 0x7c9   : > { %v1680_v51 = vadd.f32 %v1677_v50, %v1558_v38 }
 0x7cb   : > { %v1685_v52 = vsel %vm1328_vm2, %v1680_v51, 0.0 }
 0x7cc   : > { %1686 = vadd.xlane.f32.xlu1 %v1685_v52  ;;  %v4695_v52 = vld [vmem:[#allocation19 + $0x1] ss:$0 sm:$0xff] }
 0x7ce   : > { %v1678_v53 = vpop.f32.mrf.mxu1 }
 0x83f   : > { %v1687_v54 = vpop.xlane.xlu1 %1686 }
 0x840   : > { %v1688_v55 = vmul.f32 %v1687_v54, %v5830_v9 }
 0x842   : > { %v1689_v56 = vsub.f32 %v1680_v51, %v1688_v55 }
 0x844   : > { %v1690_v57 = vmul.f32 %v1689_v56, %v1689_v56 }
 0x846   : > { %v1691_v58 = vsel %vm1328_vm2, %v1690_v57, 0.0 }
 0x847   : > { %1692 = vadd.xlane.f32.xlu0 %v1691_v58 }
 0x8ba   : > { %v1693_v61 = vpop.xlane.xlu0 %1692 }
 0x8bb   : > { %v1694_v62 = vmul.f32 %v1693_v61, %v5830_v9 }
 0x8bd   : > { %v1695_v63 = vadd.f32 1e-05, %v1694_v62 }
 0x8bf   : > { %4745 = vrsqrt.f32 %v1695_v63  ;;  %vm1702_vm9 = vweird.f32 %v1695_v63 }
 0x8c5   : > { %v4746_v0 = vpop.eup %4745 }
 0x8c6   : > { %v1697_v1 = vmul.f32 %v4746_v0, %v1695_v63  ;;  %vm1703_vm8 = vweird.f32 %v4746_v0  ;;  %v4455_v63 = vld [vmem:[%s6288_s21 + $0x18] sm:$0xff] }
 0x8c7   : > { %vm1704_vm10 = vmor %vm1702_vm9, %vm1703_vm8 }
 0x8c8   : > { %v1698_v2 = vmul.f32 %v4746_v0, %v1697_v1 }
 0x8ca   : > { %v1699_v3 = vmul.f32 0.5, %v1698_v2  ;;  %v4454_v2 = vld [vmem:[%s6288_s21 + $0x10] sm:$0xff] }
 0x8cc   : > { %v1700_v4 = vsub.f32 1.5, %v1699_v3  ;;  %v4463_v3 = vld [vmem:[%s6289_s9 + $0x78] sm:$0xff] }
 0x8cd   : > { %2073 = vmatpush.bf16.msra.mxu1 %v4463_v3 }
 0x8ce   : > { %v1701_v5 = vmul.f32 %v4746_v0, %v1700_v4 }
 0x8d0   : > { %v1705_v7 = vsel %vm1704_vm10, %v4746_v0, %v1701_v5  ;;  %v2221_v0 = vld [vmem:[#allocation13 + $0x4] sm:$0xf] }
 0x8d1   : > { %v1706_v10 = vmul.f32 %v1705_v7, %v1689_v56  ;;  %v2230_v1 = vsel %vm1271_vm0, %v2221_v0, 0 }
 0x8d3   : > { %v1710_v11 = vmul.f32 %v4692_v6, %v1706_v10  ;;  %v4462_v6 = vld [vmem:[%s6289_s9 + $0x70] sm:$0xff]  ;;  %v4460_v10 = vld [vmem:[%s6289_s9 + $0x60] sm:$0xff] }
 0x8d4   : > { %2074 = vmatpush.bf16.msra.mxu1 %v4462_v6  ;;  %v4464_v6 = vld [vmem:[%s6291_s26] sm:$0xff] }
 0x8d5   : > { %v5852_v12 = vadd.f32 %v4693_v8, %v1710_v11  ;;  %v4461_v8 = vld [vmem:[%s6289_s9 + $0x68] sm:$0xff] }
 0x8d7   : > { %v1720_v13 = vpack.c.bf16 %v5852_v12, %v5852_v12 }
 0x8d8   : > { %2075 = vmatpush.bf16.msra.mxu1 %v4461_v8 }
 0x8d9   : > { %4075 = vmatmul.msk.bf16.vlgmr.msra.gmra.mxu3 %vm1328_vm2, %v1720_v13  ;;  %v4459_v13 = vld [vmem:[%s6289_s9 + $0x58] sm:$0xff] }
 0x8dc   : > { %2076 = vmatpush.bf16.msra.mxu1 %v4460_v10  ;;  %v4469_v10 = vld [vmem:[%s6292_s23 + $0x8] sm:$0xff] }
 0x8e0   : > { %2077 = vmatpush.bf16.msra.mxu1 %v4459_v13  ;;  %v4468_v13 = vld [vmem:[%s6292_s23] sm:$0xff] }
 0x95c   : > { %v1750_v15 = vpop.f32.mrf.mxu3 }
 0x95d   : > { %v1751_v16 = vadd.f32 %v4694_v14, %v1750_v15 }
 0x95f   : > { %1755 = vrot.lane.b32.xlu2 %v1751_v16, %s5335_s24 }
 0x964   : > { %v1752_v17 = vpop.f32.mrf.mxu3 }
 0x967   : > { %1757 = vrot.lane.b32.xlu2 %v1751_v16, %s5336_s14 }
 0x9b9   : > { %v1756_v18 = vpop.permute.xlu2 %1755 }
 0x9ba   : > { %1853 = vrot.lane.b32.xlu2 %v1756_v18, %s5337_s2  ;;  %1783 = vrot.lane.b32.xlu1 %v1756_v18, %s5336_s14 }
 0x9c1   : > { %v1758_v19 = vpop.permute.xlu2 %1757 }
 0x9c2   : > { %1827 = vrot.lane.b32.xlu2 %v1751_v16, %s5337_s2  ;;  %4076 = vmatpush.xpose.msk.msra.mxu0 %vm1350_vm3, %v1758_v19  ;;  %v4696_v19 = vld [vmem:[#allocation19 + $0x5] ss:$0 sm:$0xff] }
 0x9c5   : > { %4077 = vmatmul.msk.f32.vlgmr.msra.gmra.mxu0 %vm1350_vm3, %v1751_v16  ;;  %v4458_v16 = vld [vmem:[%s6289_s9 + $0x50] sm:$0xff] }
 0x9c6   : > { %2078 = vmatpush.bf16.msra.mxu1 %v4458_v16 }
 0xa14   : > { %v1854_v20 = vpop.permute.xlu2 %1853 }
 0xa15   : > { %1874 = vmatpush.msrb.mxu0 %v1854_v20 }
 0xa1c   : > { %v1828_v21 = vpop.permute.xlu2 %1827 }
 0xa1d   : > { %1848 = vmatpush.msrb.mxu3 %v1828_v21  ;;  %v4697_v21 = vld [vmem:[#allocation19 + $0x7] ss:$0 sm:$0xff] }
 0xa1f   : > { %1994 = vmatpush.bf16.msra.mxu3 %v4455_v63 }
 0xa23   : > { %1995 = vmatpush.bf16.msra.mxu3 %v4454_v2 }
 0xa2c   : > { %v1784_v22 = vpop.permute.xlu1 %1783 }
 0xa2d   : > { %4078 = vmatpush.xpose.msk.msrb.mxu2 %vm1350_vm3, %v1784_v22 }
 0xa30   : > { %4079 = vmatmul.msk.f32.vlgmr.msrb.gmra.mxu2 %vm1350_vm3, %v1756_v18 }
 0xa31   : > { %1920 = vmatpush.bf16.msra.mxu2 %v4453_v39 }
 0xa35   : > { %1921 = vmatpush.bf16.msra.mxu2 %v4452_v44 }
 0xa42   : > { %v1780_v23 = vpop.f32.mrf.mxu0 }
 0xa43   : > { %v1781_v24 = vadd.f32 %v1780_v23, %v5812_v30 }
 0xa45   : > { %v1809_v25 = vsel %vm1267_vm1, %v1781_v24, -inf }
 0xa46   : > { %1810 = vmax.xlane.f32.xlu0 %v1809_v25 }
 0xab3   : > { %v1806_v26 = vpop.f32.mrf.mxu2 }
 0xab4   : > { %v1807_v27 = vadd.f32 %v1806_v26, %v5812_v30  ;;  %v2219_v26 = vld [vmem:[%s1247_s0] sm:$0xff]  ;;  %s6299_s0 = sld [smem:[#allocation53_spill]] }
 0xab6   : > { %v1812_v28 = vsel %vm1267_vm1, %v1807_v27, -inf }
 0xab7   : > { %1813 = vmax.xlane.f32.xlu1 %v1812_v28  ;;  %v4457_v28 = vld [vmem:[%s6289_s9 + $0x48] sm:$0xff] }
 0xab8   : > { %2079 = vmatpush.bf16.msra.mxu1 %v4457_v28 }
 0xab9   : > { %v1811_v29 = vpop.xlane.xlu0 %1810 }
 0xaba   : > { %v1815_v31 = vsub.f32 %v1781_v24, %v1811_v29  ;;  %v4456_v29 = vld [vmem:[%s6289_s9 + $0x40] sm:$0xff] }
 0xabc   : > { %v1817_v32 = vmul.f32 1.442695, %v1815_v31  ;;  %2080 = vmatpush.bf16.msra.mxu1 %v4456_v29  ;;  %v4698_v31 = vld [vmem:[#allocation17 + $0x1] ss:$0 sm:$0xff]  ;;  %v4704_v29 = vld [vmem:[#allocation14 + $0x3] ss:$0 sm:$0xff] }
 0xabe   : > { %4747 = vpow2.f32 %v1817_v32 }
 0xac4   : > { %v4748_v33 = vpop.eup %4747 }
 0xac5   : > { %4080 = vmatmul.msk.f32.vlgmr.msrb.gmra.mxu3 %vm1267_vm1, %v4748_v33  ;;  %v1821_v34 = vsel %vm1267_vm1, %v4748_v33, 0.0 }
 0xac6   : > { %1822 = vadd.xlane.f32.xlu2 %v1821_v34  ;;  %2239 = vmatpush.bf16.msrb.mxu3 %v2230_v1 }
 0xb2a   : > { %v1814_v35 = vpop.xlane.xlu1 %1813 }
 0xb2b   : > { %v1816_v36 = vsub.f32 %v1807_v27, %v1814_v35  ;;  %v2222_v27 = vpack.c.bf16 %v2219_v26, %v2219_v26 }
 0xb2d   : > { %v1819_v37 = vmul.f32 1.442695, %v1816_v36 }
 0xb2f   : > { %4749 = vpow2.f32 %v1819_v37  ;;  %v4699_v37 = vld [vmem:[#allocation19 + $0x3] ss:$0 sm:$0xff] }
 0xb35   : > { %v4750_v30 = vpop.eup %4749 }
 0xb36   : > { %4081 = vmatmul.msk.f32.vlgmr.msrb.gmra.mxu0 %vm1267_vm1, %v4750_v30  ;;  %v1824_v38 = vsel %vm1267_vm1, %v4750_v30, 0.0 }
 0xb37   : > { %1825 = vadd.xlane.f32.xlu0 %v1824_v38 }
 0xb39   : > { %v1823_v45 = vpop.xlane.xlu2 %1822 }
 0xb48   : > { %v1850_v46 = vpop.f32.mrf.mxu3 }
 0xbaa   : > { %v1826_v40 = vpop.xlane.xlu0 %1825 }
 0xbab   : > { %4751 = vrcp.f32 %v1826_v40 }
 0xbac   : > { %4753 = vrcp.f32 %v1823_v45 }
 0xbb1   : > { %v4752_v41 = vpop.eup %4751 }
 0xbb2   : > { %v4754_v47 = vpop.eup %4753 }
 0xbb3   : > { %v1876_v42 = vpop.f32.mrf.mxu0  ;;  %v1881_v48 = vmul.f32 %v4754_v47, %v1850_v46 }
 0xbb4   : > { %v1882_v43 = vmul.f32 %v4752_v41, %v1876_v42 }
 0xbb6   : > { %1884 = vrot.lane.b32.xlu0 %v1882_v43, %s5338_s18 }
 0xc28   : > { %v1885_v49 = vpop.permute.xlu0 %1884 }
 0xc29   : > { %v1887_v50 = vsel %vm1350_vm3, %v1881_v48, %v1885_v49 }
 0xc2a   : > { %v1893_v51 = vpack.c.bf16 %v1887_v50, %v1887_v50 }
 0xc2c   : > { %4094 = vmatmul.msk.bf16.vlgmr.msra.gmra.mxu2 %vm1328_vm2, %v1893_v51 }
 0xcaf   : > { %v1923_v53 = vpop.f32.mrf.mxu2 }
 0xcb0   : > { %v1924_v54 = vadd.f32 %v4695_v52, %v1923_v53 }
 0xcb2   : > { %v1927_v55 = vadd.f32 %v1924_v54, %v5852_v12 }
 0xcb4   : > { %v1932_v56 = vsel %vm1328_vm2, %v1927_v55, 0.0 }
 0xcb5   : > { %1933 = vadd.xlane.f32.xlu1 %v1932_v56  ;;  %v4700_v56 = vld [vmem:[#allocation19 + $0x9] ss:$0 sm:$0xff] }
 0xcb7   : > { %v1925_v57 = vpop.f32.mrf.mxu2 }
 0xd28   : > { %v1934_v58 = vpop.xlane.xlu1 %1933 }
 0xd29   : > { %v1935_v59 = vmul.f32 %v1934_v58, %v5830_v9 }
 0xd2b   : > { %v1936_v60 = vsub.f32 %v1927_v55, %v1935_v59  ;;  %v4701_v59 = vld [vmem:[#allocation19 + $0xb] ss:$0 sm:$0xff] }
 0xd2d   : > { %v1937_v61 = vmul.f32 %v1936_v60, %v1936_v60 }
 0xd2f   : > { %v1938_v62 = vsel %vm1328_vm2, %v1937_v61, 0.0 }
 0xd30   : > { %1939 = vadd.xlane.f32.xlu0 %v1938_v62 }
 0xda3   : > { %v1940_v4 = vpop.xlane.xlu0 %1939 }
 0xda4   : > { %v1941_v5 = vmul.f32 %v1940_v4, %v5830_v9  ;;  %v4465_v4 = vld [vmem:[%s6291_s26 + $0x8] sm:$0xff] }
 0xda5   : > { %2178 = vmatpush.bf16.msra.mxu0 %v4465_v4 }
 0xda6   : > { %v1942_v7 = vadd.f32 1e-05, %v1941_v5  ;;  %v4467_v5 = vld [vmem:[#allocation20 + $0x8] sm:$0xff] }
 0xda7   : > { %2212 = vmatpush.bf16.msrb.mxu2 %v4467_v5 }
 0xda8   : > { %4755 = vrsqrt.f32 %v1942_v7  ;;  %vm1949_vm12 = vweird.f32 %v1942_v7 }
 0xda9   : > { %2179 = vmatpush.bf16.msra.mxu0 %v4464_v6 }
 0xdad   : > { %2279 = vmatpush.bf16.msrb.mxu0 %v4469_v10 }
 0xdae   : > { %v4756_v11 = vpop.eup %4755 }
 0xdaf   : > { %v1944_v12 = vmul.f32 %v4756_v11, %v1942_v7  ;;  %vm1950_vm11 = vweird.f32 %v4756_v11  ;;  %v4466_v7 = vld [vmem:[#allocation20] sm:$0xff] }
 0xdb0   : > { %vm1951_vm13 = vmor %vm1949_vm12, %vm1950_vm11  ;;  %2213 = vmatpush.bf16.msrb.mxu2 %v4466_v7 }
 0xdb1   : > { %v1945_v14 = vmul.f32 %v4756_v11, %v1944_v12  ;;  %2280 = vmatpush.bf16.msrb.mxu0 %v4468_v13 }
 0xdb3   : > { %v1946_v15 = vmul.f32 0.5, %v1945_v14 }
 0xdb5   : > { %v1947_v17 = vsub.f32 1.5, %v1946_v15 }
 0xdb7   : > { %v1948_v18 = vmul.f32 %v4756_v11, %v1947_v17 }
 0xdb9   : > { %v1952_v20 = vsel %vm1951_vm13, %v4756_v11, %v1948_v18 }
 0xdba   : > { %v1953_v22 = vmul.f32 %v1952_v20, %v1936_v60 }
 0xdbc   : > { %v1957_v23 = vmul.f32 %v4696_v19, %v1953_v22  ;;  %v4702_v22 = vld [vmem:[#allocation14 + $0x4] ss:$0 sm:$0xff] }
 0xdbe   : > { %v1961_v24 = vadd.f32 %v4697_v21, %v1957_v23 }
 0xdc0   : > { %v1967_v25 = vpack.c.bf16 %v1961_v24, %v1961_v24 }
 0xdc2   : > { %4107 = vmatmul.msk.bf16.vlgmr.msra.gmra.mxu3 %vm1328_vm2, %v1967_v25  ;;  %v4703_v25 = vld [vmem:[#allocation14 + $0x5] ss:$0 sm:$0xff] }
 0xdd2   : > { %4174 = vmatmul.msk.bf16.vlgmr.msrb.gmra.mxu3 %vm1267_vm1, %v2222_v27 }
 0xe45   : > { %v1997_v32 = vpop.f32.mrf.mxu3 }
 0xe46   : > { %v1998_v33 = vadd.f32 %v4698_v31, %v1997_v32  ;;  %v2245_v32 = vld [vmem:[%s1068_s16] sm:$0xff]  ;;  %s6296_s16 = sld [smem:[#allocation50_spill]] }
 0xe48   : > { %v2001_v34 = vmax.f32 %v1998_v33, 0.0 }
 0xe4a   : > { %v2019_v35 = vpack.c.bf16 %v2001_v34, %v2001_v34 }
 0xe4c   : > { %2081 = vmatmul.bf16.vlgmr.msra.gmra.mxu1 %v2019_v35  ;;  %v2156_v35 = vld [vmem:[%s6293_s13] sm:$0x1]  ;;  %v4471_v4 = vld [vmem:[%s6296_s16 + $0x8] sm:$0xff] }
 0xe4d   : > { %v1999_v36 = vpop.f32.mrf.mxu3 }
 0xe55   : > { %v2241_v8 = vpop.f32.mrf.mxu3 }
 0xe56   : > { %v2242_v31 = vadd.f32 %v4704_v29, %v2241_v8 }
 0xe58   : > { %v5916_v33 = vadd.f32 %v2245_v32, %v2242_v31  ;;  %v4473_v32 = vld [vmem:[%s6296_s16 + $0x28] sm:$0xff] }
 0xe59   : > { %2524 = vmatpush.bf16.msrb.mxu1 %v4473_v32 }
 0xe5a   : > { %v2253_v34 = vpack.c.bf16 %v5916_v33, %v5916_v33 }
 0xe5d   : > { %v2243_v15 = vpop.f32.mrf.mxu3 }
 0xec9   : > { %v2082_v30 = vpop.f32.mrf.mxu1 }
 0xeca   : > { %v2083_v38 = vadd.f32 %v4699_v37, %v2082_v30 }
 0xecc   : > { %v2086_v39 = vadd.f32 %v2083_v38, %v1961_v24 }
 0xece   : > { %v2091_v40 = vsel %vm1328_vm2, %v2086_v39, 0.0 }
 0xecf   : > { %2092 = vadd.xlane.f32.xlu1 %v2091_v40 }
 0xed1   : > { %v2084_v41 = vpop.f32.mrf.mxu1 }
 0xf42   : > { %v2093_v42 = vpop.xlane.xlu1 %2092 }
 0xf43   : > { %v2094_v43 = vmul.f32 %v2093_v42, %v5830_v9 }
 0xf45   : > { %v2095_v44 = vsub.f32 %v2086_v39, %v2094_v43  ;;  %v4706_v39 = vld [vmem:[%s6294_s19] ss:$0 sm:$0xff] }
 0xf47   : > { %v2096_v45 = vmul.f32 %v2095_v44, %v2095_v44 }
 0xf49   : > { %v2097_v46 = vsel %vm1328_vm2, %v2096_v45, 0.0 }
 0xf4a   : > { %2098 = vadd.xlane.f32.xlu1 %v2097_v46  ;;  %v4705_v46 = vld [vmem:[%s6295_s28] ss:$0 sm:$0xff]  ;;  %s6300_s28 = smov %s6299_s0 }
 0xfbd   : > { %v2099_v47 = vpop.xlane.xlu1 %2098 }
 0xfbe   : > { %v2100_v48 = vmul.f32 %v2099_v47, %v5830_v9 }
 0xfc0   : > { %v2101_v49 = vadd.f32 1e-05, %v2100_v48 }
 0xfc2   : > { %4757 = vrsqrt.f32 %v2101_v49  ;;  %vm2108_vm15 = vweird.f32 %v2101_v49 }
 0xfc8   : > { %v4758_v50 = vpop.eup %4757 }
 0xfc9   : > { %v2103_v51 = vmul.f32 %v4758_v50, %v2101_v49  ;;  %vm2109_vm14 = vweird.f32 %v4758_v50 }
 0xfca   : > { %vm2110_vm0 = vmor %vm2108_vm15, %vm2109_vm14 }
 0xfcb   : > { %v2104_v52 = vmul.f32 %v4758_v50, %v2103_v51  ;;  %v5942_v51 = vld [vmem:[%s1088_s22] sm:$0xff]  ;;  %s6297_s22 = sld [smem:[#allocation57_spill]] }
 0xfcd   : > { %v2105_v53 = vmul.f32 0.5, %v2104_v52 }
 0xfcf   : > { %v2106_v54 = vsub.f32 1.5, %v2105_v53 }
 0xfd1   : > { %v2107_v55 = vmul.f32 %v4758_v50, %v2106_v54 }
 0xfd3   : > { %v2111_v57 = vsel %vm2110_vm0, %v4758_v50, %v2107_v55 }
 0xfd4   : > { %v2112_v58 = vmul.f32 %v2111_v57, %v2095_v44 }
 0xfd6   : > { %v2116_v60 = vmul.f32 %v4700_v56, %v2112_v58 }
 0xfd8   : > { %v2120_v61 = vadd.f32 %v4701_v59, %v2116_v60 }
 0xfda   : > { %v2121_v62 = vsel %vm1328_vm2, %v2120_v61, 0.0 }
 0xfdb   : > { %2122 = vadd.xlane.f32.xlu2 %v2121_v62 }
0x104e   : > { %v2123_v63 = vpop.xlane.xlu2 %2122 }
0x104f   : > { %v2124_v0 = vmul.f32 %v2123_v63, %v5830_v9 }
0x1051   : > { %v2125_v1 = vsub.f32 %v2120_v61, %v2124_v0 }
0x1053   : > { %v2126_v2 = vmul.f32 %v2125_v1, %v2125_v1 }
0x1055   : > { %v2127_v3 = vsel %vm1328_vm2, %v2126_v2, 0.0 }
0x1056   : > { %2128 = vadd.xlane.f32.xlu1 %v2127_v3 }
0x10c9   : > { %v2129_v11 = vpop.xlane.xlu1 %2128 }
0x10ca   : > { %v2130_v12 = vmul.f32 %v2129_v11, %v5830_v9  ;;  %v4470_v11 = vld [vmem:[%s6296_s16] sm:$0xff] }
0x10cc   : > { %v2131_v14 = vadd.f32 1e-05, %v2130_v12 }
0x10ce   : > { %4759 = vrsqrt.f32 %v2131_v14  ;;  %vm2138_vm5 = vweird.f32 %v2131_v14 }
0x10d4   : > { %v4760_v16 = vpop.eup %4759 }
0x10d5   : > { %v2133_v17 = vmul.f32 %v4760_v16, %v2131_v14  ;;  %vm2139_vm4 = vweird.f32 %v4760_v16 }
0x10d6   : > { %vm2140_vm6 = vmor %vm2138_vm5, %vm2139_vm4 }
0x10d7   : > { %v2134_v18 = vmul.f32 %v4760_v16, %v2133_v17 }
0x10d9   : > { %v2135_v19 = vmul.f32 0.5, %v2134_v18 }
0x10db   : > { %v2136_v20 = vsub.f32 1.5, %v2135_v19 }
0x10dd   : > { %v2137_v21 = vmul.f32 %v4760_v16, %v2136_v20  ;;  %v4707_v20 = vld [vmem:[%s6297_s22] ss:$0 sm:$0xff] }
0x10df   : > { %v2141_v23 = vsel %vm2140_vm6, %v4760_v16, %v2137_v21 }
0x10e0   : > { %v2142_v24 = vmul.f32 %v2141_v23, %v2125_v1 }
0x10e2   : > { %v2146_v26 = vmul.f32 %v4702_v22, %v2142_v24 }
0x10e4   : > { %v2150_v27 = vadd.f32 %v4703_v25, %v2146_v26 }
0x10e6   : > { %v2155_v28 = vpack.c.bf16 %v2150_v27, %v2150_v27 }
0x10e8   : > { %4164 = vmatmul.msk.bf16.vlgmr.msra.gmra.mxu0 %vm1328_vm2, %v2155_v28  ;;  %4173 = vmatmul.msk.bf16.vlgmr.msrb.gmra.mxu2 %vm1328_vm2, %v2155_v28 }
0x10f8   : > { %4183 = vmatmul.msk.bf16.vlgmr.msrb.gmra.mxu0 %vm1328_vm2, %v2253_v34  ;;  %v4472_v34 = vld [vmem:[%s6296_s16 + $0x20] sm:$0xff] }
0x10f9   : > { %2525 = vmatpush.bf16.msrb.mxu1 %v4472_v34 }
0x1165   : > { %v2181_v36 = vpop.f32.mrf.mxu0 }
0x1166   : > { %v2182_v37 = vadd.f32 %v2181_v36, %v2156_v35 }
0x1168   : > { %2185 = vst [vmem:[%s6208_s30] sm:$0x1] %v2182_v37 }
0x116b   : > { %v2215_v30 = vpop.f32.mrf.mxu2 }
0x116c   : > { %v5934_v47 = vadd.f32 %v4705_v46, %v2215_v30 }
0x116d   : > { %v2183_v38 = vpop.f32.mrf.mxu0 }
0x1173   : > { %v2217_v40 = vpop.f32.mrf.mxu2 }
0x1175   : > { %v2282_v41 = vpop.f32.mrf.mxu0 }
0x1176   : > { %v2283_v42 = vadd.f32 %v4706_v39, %v2282_v41 }
0x1178   : > { %2289 = vrot.lane.b32.xlu0 %v2283_v42, %s5336_s14  ;;  %2287 = vrot.lane.b32.xlu2 %v2283_v42, %s5335_s24 }
0x117d   : > { %v2284_v43 = vpop.f32.mrf.mxu0 }
0x1180   : > { %2359 = vrot.lane.b32.xlu0 %v2283_v42, %s5337_s2 }
0x11d2   : > { %v2288_v44 = vpop.permute.xlu2 %2287 }
0x11d3   : > { %2315 = vrot.lane.b32.xlu1 %v2288_v44, %s5336_s14 }
0x11db   : > { %2385 = vrot.lane.b32.xlu1 %v2288_v44, %s5337_s2 }
0x11ea   : > { %v2290_v45 = vpop.permute.xlu0 %2289 }
0x11eb   : > { %4184 = vmatpush.xpose.msk.msra.mxu2 %vm1350_vm3, %v2290_v45 }
0x11ee   : > { %4185 = vmatmul.msk.f32.vlgmr.msra.gmra.mxu2 %vm1350_vm3, %v2283_v42  ;;  %v4708_v42 = vld [vmem:[%s6297_s22 + $0x8] ss:$0 sm:$0xff] }
0x11f2   : > { %v2360_v48 = vpop.permute.xlu0 %2359 }
0x11f3   : > { %2380 = vmatpush.msra.mxu0 %v2360_v48 }
0x11f5   : > { %4215 = vmatpush.xpose.msk.msrb.mxu0 %vm1350_vm3, %v5934_v47 }
0x1245   : > { %v2316_v49 = vpop.permute.xlu1 %2315 }
0x1246   : > { %4186 = vmatpush.xpose.msk.msra.mxu3 %vm1350_vm3, %v2316_v49 }
0x1249   : > { %4187 = vmatmul.msk.f32.vlgmr.msra.gmra.mxu3 %vm1350_vm3, %v2288_v44  ;;  %v4709_v44 = vld [vmem:[%s6297_s22 + $0xa] ss:$0 sm:$0xff] }
0x124a   : > { %2450 = vmatpush.bf16.msrb.mxu3 %v4471_v4 }
0x124d   : > { %v2386_v50 = vpop.permute.xlu1 %2385 }
0x124e   : > { %2406 = vmatpush.msrb.mxu2 %v2386_v50  ;;  %2451 = vmatpush.bf16.msrb.mxu3 %v4470_v11  ;;  %v4710_v50 = vld [vmem:[%s6297_s22 + $0x2] ss:$0 sm:$0xff] }
0x1271   : > { %v2312_v52 = vpop.f32.mrf.mxu2 }
0x1272   : > { %v2313_v53 = vadd.f32 %v2312_v52, %v5942_v51 }
0x1274   : > { %v2341_v54 = vsel %vm1267_vm1, %v2313_v53, -inf }
0x1275   : > { %2342 = vmax.xlane.f32.xlu1 %v2341_v54 }
0x12cc   : > { %v2338_v55 = vpop.f32.mrf.mxu3 }
0x12cd   : > { %v2339_v56 = vadd.f32 %v2338_v55, %v5942_v51 }
0x12cf   : > { %v2344_v57 = vsel %vm1267_vm1, %v2339_v56, -inf }
0x12d0   : > { %2345 = vmax.xlane.f32.xlu2 %v2344_v57  ;;  %v5984_v57 = vld [vmem:[%s1098_s4] sm:$0xff]  ;;  %s6298_s4 = sld [smem:[#allocation52_spill]] }
0x12e8   : > { %v2343_v58 = vpop.xlane.xlu1 %2342 }
0x12e9   : > { %v2347_v59 = vsub.f32 %v2313_v53, %v2343_v58 }
0x12eb   : > { %v2349_v60 = vmul.f32 1.442695, %v2347_v59 }
0x12ed   : > { %4761 = vpow2.f32 %v2349_v60 }
0x12f3   : > { %v4762_v61 = vpop.eup %4761 }
0x12f4   : > { %4188 = vmatmul.msk.f32.vlgmr.msra.gmra.mxu0 %vm1267_vm1, %v4762_v61  ;;  %v2353_v62 = vsel %vm1267_vm1, %v4762_v61, 0.0 }
0x12f5   : > { %2354 = vadd.xlane.f32.xlu2 %v2353_v62 }
0x1343   : > { %v2346_v63 = vpop.xlane.xlu2 %2345 }
0x1344   : > { %v2348_v0 = vsub.f32 %v2339_v56, %v2346_v63 }
0x1346   : > { %v2351_v1 = vmul.f32 1.442695, %v2348_v0 }
0x1348   : > { %4763 = vpow2.f32 %v2351_v1 }
0x134e   : > { %v4764_v2 = vpop.eup %4763 }
0x134f   : > { %4189 = vmatmul.msk.f32.vlgmr.msrb.gmra.mxu2 %vm1267_vm1, %v4764_v2  ;;  %v2356_v3 = vsel %vm1267_vm1, %v4764_v2, 0.0 }
0x1350   : > { %2357 = vadd.xlane.f32.xlu0 %v2356_v3 }
0x1364   : > { %2535 = vrot.lane.b32.xlu0 %v5934_v47, %s5335_s24 }
0x1368   : > { %v2355_v12 = vpop.xlane.xlu2 %2354 }
0x1371   : > { %v2382_v13 = vpop.f32.mrf.mxu0 }
0x13c3   : > { %v2358_v5 = vpop.xlane.xlu0 %2357 }
0x13c4   : > { %4765 = vrcp.f32 %v2358_v5 }
0x13c5   : > { %4767 = vrcp.f32 %v2355_v12  ;;  %v4475_v12 = vld [vmem:[%s6296_s16 + $0x48] sm:$0xff] }
0x13c6   : > { %2696 = vmatpush.bf16.msra.mxu3 %v4475_v12 }
0x13ca   : > { %v4766_v6 = vpop.eup %4765 }
0x13cb   : > { %v4768_v14 = vpop.eup %4767 }
0x13cc   : > { %v2413_v15 = vmul.f32 %v4768_v14, %v2382_v13 }
0x13d2   : > { %v2408_v7 = vpop.f32.mrf.mxu2 }
0x13d3   : > { %v2414_v8 = vmul.f32 %v4766_v6, %v2408_v7 }
0x13d5   : > { %2416 = vrot.lane.b32.xlu2 %v2414_v8, %s5338_s18 }
0x13d6   : > { %v5956_v10 = vpop.permute.xlu0 %2535 }
0x13d7   : > { %2629 = vrot.lane.b32.xlu0 %v5956_v10, %s5336_s14  ;;  %4217 = vmatpush.xpose.msk.msra.mxu2 %vm1350_vm3, %v5956_v10 }
0x142f   : > { %v2417_v16 = vpop.permute.xlu2 %2416 }
0x1430   : > { %v2419_v17 = vsel %vm1350_vm3, %v2413_v15, %v2417_v16 }
0x1431   : > { %v2424_v18 = vpack.c.bf16 %v2419_v17, %v2419_v17  ;;  %v4474_v17 = vld [vmem:[%s6296_s16 + $0x40] sm:$0xff] }
0x1432   : > { %2697 = vmatpush.bf16.msra.mxu3 %v4474_v17 }
0x1433   : > { %4198 = vmatmul.msk.bf16.vlgmr.msrb.gmra.mxu3 %vm1328_vm2, %v2424_v18 }
0x1449   : > { %v2630_v19 = vpop.permute.xlu0 %2629 }
0x144a   : > { %2650 = vmatpush.msrb.mxu2 %v2630_v19 }
0x14b6   : > { %v2453_v21 = vpop.f32.mrf.mxu3 }
0x14b7   : > { %v2454_v22 = vadd.f32 %v4707_v20, %v2453_v21 }
0x14b9   : > { %v2457_v23 = vadd.f32 %v2454_v22, %v5916_v33 }
0x14bb   : > { %v2462_v24 = vsel %vm1328_vm2, %v2457_v23, 0.0 }
0x14bc   : > { %2463 = vadd.xlane.f32.xlu1 %v2462_v24 }
0x14be   : > { %v2455_v25 = vpop.f32.mrf.mxu3 }
0x14bf   : > { %v4711_v25 = vld [vmem:[%s6297_s22 + $0x4] ss:$0 sm:$0xff] }
0x152f   : > { %v2464_v26 = vpop.xlane.xlu1 %2463 }
0x1530   : > { %v2465_v27 = vmul.f32 %v2464_v26, %v5830_v9 }
0x1532   : > { %v2466_v28 = vsub.f32 %v2457_v23, %v2465_v27 }
0x1534   : > { %v2467_v29 = vmul.f32 %v2466_v28, %v2466_v28 }
0x1536   : > { %v2468_v31 = vsel %vm1328_vm2, %v2467_v29, 0.0 }
0x1537   : > { %2469 = vadd.xlane.f32.xlu1 %v2468_v31 }
0x15aa   : > { %v2470_v35 = vpop.xlane.xlu1 %2469 }
0x15ab   : > { %v2471_v33 = vmul.f32 %v2470_v35, %v5830_v9 }
0x15ad   : > { %v2472_v36 = vadd.f32 1e-05, %v2471_v33 }
0x15af   : > { %4769 = vrsqrt.f32 %v2472_v36  ;;  %vm2479_vm8 = vweird.f32 %v2472_v36 }
0x15b5   : > { %v4770_v37 = vpop.eup %4769 }
0x15b6   : > { %v2474_v30 = vmul.f32 %v4770_v37, %v2472_v36  ;;  %vm2480_vm7 = vweird.f32 %v4770_v37 }
0x15b7   : > { %vm2481_vm9 = vmor %vm2479_vm8, %vm2480_vm7 }
0x15b8   : > { %v2475_v38 = vmul.f32 %v4770_v37, %v2474_v30  ;;  %v4476_v30 = vld [vmem:[%s6298_s4] sm:$0xff] }
0x15ba   : > { %v2476_v39 = vmul.f32 0.5, %v2475_v38  ;;  %v4485_v38 = vld [vmem:[%s6299_s0 + $0x38] sm:$0xff]  ;;  %s6301_s0 = sld [smem:[#allocation56_spill]] }
0x15bc   : > { %v2477_v40 = vsub.f32 1.5, %v2476_v39 }
0x15be   : > { %v2478_v41 = vmul.f32 %v4770_v37, %v2477_v40 }
0x15c0   : > { %v2482_v43 = vsel %vm2481_vm9, %v4770_v37, %v2478_v41  ;;  %v4477_v37 = vld [vmem:[%s6298_s4 + $0x8] sm:$0xff]  ;;  %v4484_v41 = vld [vmem:[%s6300_s28 + $0x30] sm:$0xff]  ;;  %s6302_s30 = smov %s6301_s0 }
0x15c1   : > { %v2483_v45 = vmul.f32 %v2482_v43, %v2466_v28  ;;  %2768 = vmatpush.bf16.msra.mxu1 %v4477_v37  ;;  %v4483_v43 = vld [vmem:[%s6300_s28 + $0x28] sm:$0xff] }
0x15c3   : > { %v2487_v46 = vmul.f32 %v4708_v42, %v2483_v45 }
0x15c5   : > { %v2491_v48 = vadd.f32 %v4709_v44, %v2487_v46  ;;  %2769 = vmatpush.bf16.msra.mxu1 %v4476_v30  ;;  %v4482_v44 = vld [vmem:[%s6300_s28 + $0x20] sm:$0xff] }
0x15c7   : > { %v2497_v49 = vpack.c.bf16 %v2491_v48, %v2491_v48 }
0x15c9   : > { %4214 = vmatmul.msk.bf16.vlgmr.msrb.gmra.mxu1 %vm1328_vm2, %v2497_v49 }
0x1646   : > { %v2527_v52 = vpop.f32.mrf.mxu1 }
0x1647   : > { %v2528_v53 = vadd.f32 %v4710_v50, %v2527_v52  ;;  %v4480_v52 = vld [vmem:[%s6300_s28 + $0x10] sm:$0xff] }
0x1649   : > { %2532 = vrot.lane.b32.xlu1 %v2528_v53, %s5335_s24  ;;  %4216 = vmatmul.msk.f32.vlgmr.msrb.gmra.mxu0 %vm1350_vm3, %v2528_v53 }
0x164e   : > { %v2529_v54 = vpop.f32.mrf.mxu1 }
0x1651   : > { %2603 = vrot.lane.b32.xlu1 %v5934_v47, %s5336_s14 }
0x16bb   : > { %v2533_v55 = vpop.permute.xlu1 %2532 }
0x16bc   : > { %4218 = vmatmul.msk.f32.vlgmr.msra.gmra.mxu2 %vm1350_vm3, %v2533_v55  ;;  %v4712_v55 = vld [vmem:[%s6297_s22 + $0xc] ss:$0 sm:$0xff] }
0x16c3   : > { %v2604_v56 = vpop.permute.xlu1 %2603 }
0x16c4   : > { %2624 = vmatpush.msra.mxu0 %v2604_v56 }
0x16c6   : > { %v2558_v58 = vpop.f32.mrf.mxu0  ;;  %2846 = vmatpush.bf16.msrb.mxu0 %v4485_v38  ;;  %v4718_v38 = vld [vmem:[%s6294_s19 + $0x1] ss:$0 sm:$0xff] }
0x16c7   : > { %v2559_v59 = vadd.f32 %v2558_v58, %v5984_v57  ;;  %v4713_v58 = vld [vmem:[%s6297_s22 + $0xe] ss:$0 sm:$0xff] }
0x16c9   : > { %v2585_v60 = vsel %vm1267_vm1, %v2559_v59, -inf }
0x16ca   : > { %2586 = vmax.xlane.f32.xlu0 %v2585_v60  ;;  %2847 = vmatpush.bf16.msrb.mxu0 %v4484_v41 }
0x16ce   : > { %2848 = vmatpush.bf16.msrb.mxu0 %v4483_v43 }
0x16d2   : > { %2849 = vmatpush.bf16.msrb.mxu0 %v4482_v44 }
0x173d   : > { %v2587_v61 = vpop.xlane.xlu0 %2586 }
0x173e   : > { %v2591_v62 = vsub.f32 %v2559_v59, %v2587_v61 }
0x173f   : > { %v2582_v63 = vpop.f32.mrf.mxu2 }
0x1740   : > { %v2593_v0 = vmul.f32 1.442695, %v2591_v62  ;;  %v2583_v1 = vadd.f32 %v2582_v63, %v5984_v57  ;;  %v4479_v63 = vld [vmem:[%s6300_s28 + $0x8] sm:$0xff] }
0x1742   : > { %4771 = vpow2.f32 %v2593_v0  ;;  %v2588_v2 = vsel %vm1267_vm1, %v2583_v1, -inf  ;;  %v4478_v0 = vld [vmem:[%s6300_s28] sm:$0xff] }
0x1743   : > { %2589 = vmax.xlane.f32.xlu2 %v2588_v2 }
0x1748   : > { %v4772_v3 = vpop.eup %4771 }
0x1749   : > { %4219 = vmatmul.msk.f32.vlgmr.msra.gmra.mxu0 %vm1267_vm1, %v4772_v3  ;;  %v2597_v4 = vsel %vm1267_vm1, %v4772_v3, 0.0 }
0x174b   : > { %2598 = vadd.xlane.f32.xlu2 %v2597_v4 }
0x17b6   : > { %v2590_v5 = vpop.xlane.xlu2 %2589 }
0x17b7   : > { %v2592_v6 = vsub.f32 %v2583_v1, %v2590_v5  ;;  %v4714_v1 = vld [vmem:[%s6301_s0] ss:$0 sm:$0xff]  ;;  %s6305_s0 = scalar_lea.vmem [#allocation22], %s5738_s15 }
0x17b9   : > { %v2595_v7 = vmul.f32 1.442695, %v2592_v6 }
0x17bb   : > { %4773 = vpow2.f32 %v2595_v7  ;;  %v4715_v7 = vld [vmem:[%s6297_s22 + $0x6] ss:$0 sm:$0xff] }
0x17be   : > { %v2599_v18 = vpop.xlane.xlu2 %2598 }
0x17c1   : > { %v4774_v8 = vpop.eup %4773 }
0x17c2   : > { %4220 = vmatmul.msk.f32.vlgmr.msrb.gmra.mxu2 %vm1267_vm1, %v4774_v8  ;;  %v2600_v11 = vsel %vm1267_vm1, %v4774_v8, 0.0 }
0x17c3   : > { %2601 = vadd.xlane.f32.xlu1 %v2600_v11 }
0x17c6   : > { %v2626_v20 = vpop.f32.mrf.mxu0 }
0x1836   : > { %v2602_v13 = vpop.xlane.xlu1 %2601 }
0x1837   : > { %4775 = vrcp.f32 %v2602_v13 }
0x1838   : > { %4777 = vrcp.f32 %v2599_v18 }
0x183d   : > { %v4776_v14 = vpop.eup %4775 }
0x183e   : > { %v4778_v19 = vpop.eup %4777 }
0x183f   : > { %v2657_v21 = vmul.f32 %v4778_v19, %v2626_v20  ;;  %v4487_v20 = vld [vmem:[%s6292_s23 + $0x18] sm:$0xff] }
0x1840   : > { %2926 = vmatpush.bf16.msra.mxu2 %v4487_v20 }
0x1845   : > { %v2652_v15 = vpop.f32.mrf.mxu2 }
0x1846   : > { %v2658_v16 = vmul.f32 %v4776_v14, %v2652_v15 }
0x1848   : > { %2660 = vrot.lane.b32.xlu2 %v2658_v16, %s5338_s18 }
0x18a2   : > { %v2661_v22 = vpop.permute.xlu2 %2660 }
0x18a3   : > { %v2663_v23 = vsel %vm1350_vm3, %v2657_v21, %v2661_v22  ;;  %v4486_v21 = vld [vmem:[%s6292_s23 + $0x10] sm:$0xff] }
0x18a4   : > { %v2669_v24 = vpack.c.bf16 %v2663_v23, %v2663_v23  ;;  %2927 = vmatpush.bf16.msra.mxu2 %v4486_v21 }
0x18a6   : > { %4234 = vmatmul.msk.bf16.vlgmr.msra.gmra.mxu3 %vm1328_vm2, %v2669_v24 }
0x1929   : > { %v2699_v26 = vpop.f32.mrf.mxu3 }
0x192a   : > { %v2700_v27 = vadd.f32 %v4711_v25, %v2699_v26 }
0x192c   : > { %v2703_v28 = vadd.f32 %v2700_v27, %v2491_v48  ;;  %v4481_v48 = vld [vmem:[%s6300_s28 + $0x18] sm:$0xff] }
0x192d   : > { %2850 = vmatpush.bf16.msrb.mxu0 %v4481_v48 }
0x192e   : > { %v2708_v29 = vsel %vm1328_vm2, %v2703_v28, 0.0 }
0x192f   : > { %2709 = vadd.xlane.f32.xlu0 %v2708_v29 }
0x1931   : > { %v2701_v31 = vpop.f32.mrf.mxu3  ;;  %2851 = vmatpush.bf16.msrb.mxu0 %v4480_v52 }
0x1935   : > { %2852 = vmatpush.bf16.msrb.mxu0 %v4479_v63 }
0x1939   : > { %2853 = vmatpush.bf16.msrb.mxu0 %v4478_v0 }
0x19a2   : > { %v2710_v32 = vpop.xlane.xlu0 %2709 }
0x19a3   : > { %v2711_v34 = vmul.f32 %v2710_v32, %v5830_v9  ;;  %v4716_v32 = vld [vmem:[%s6297_s22 + $0x10] ss:$0 sm:$0xff] }
0x19a5   : > { %v2712_v35 = vsub.f32 %v2703_v28, %v2711_v34 }
0x19a7   : > { %v2713_v33 = vmul.f32 %v2712_v35, %v2712_v35 }
0x19a9   : > { %v2714_v36 = vsel %vm1328_vm2, %v2713_v33, 0.0 }
0x19aa   : > { %2715 = vadd.xlane.f32.xlu0 %v2714_v36 }
0x1a1d   : > { %v2716_v39 = vpop.xlane.xlu0 %2715 }
0x1a1e   : > { %v2717_v40 = vmul.f32 %v2716_v39, %v5830_v9 }
0x1a20   : > { %v2718_v42 = vadd.f32 1e-05, %v2717_v40 }
0x1a22   : > { %4779 = vrsqrt.f32 %v2718_v42  ;;  %vm2725_vm11 = vweird.f32 %v2718_v42 }
0x1a28   : > { %v4780_v45 = vpop.eup %4779 }
0x1a29   : > { %v2720_v46 = vmul.f32 %v4780_v45, %v2718_v42  ;;  %vm2726_vm10 = vweird.f32 %v4780_v45 }
0x1a2a   : > { %vm2727_vm12 = vmor %vm2725_vm11, %vm2726_vm10 }
0x1a2b   : > { %v2721_v49 = vmul.f32 %v4780_v45, %v2720_v46 }
0x1a2d   : > { %v2722_v50 = vmul.f32 0.5, %v2721_v49 }
0x1a2f   : > { %v2723_v53 = vsub.f32 1.5, %v2722_v50 }
0x1a31   : > { %v2724_v54 = vmul.f32 %v4780_v45, %v2723_v53 }
0x1a33   : > { %v2728_v56 = vsel %vm2727_vm12, %v4780_v45, %v2724_v54 }
0x1a34   : > { %v2729_v59 = vmul.f32 %v2728_v56, %v2712_v35  ;;  %v4717_v35 = vld [vmem:[%s6297_s22 + $0x12] ss:$0 sm:$0xff] }
0x1a36   : > { %v2733_v60 = vmul.f32 %v4712_v55, %v2729_v59 }
0x1a38   : > { %v2737_v61 = vadd.f32 %v4713_v58, %v2733_v60 }
0x1a3a   : > { %v2742_v62 = vpack.c.bf16 %v2737_v61, %v2737_v61 }
0x1a3c   : > { %4245 = vmatmul.msk.bf16.vlgmr.msra.gmra.mxu1 %vm1328_vm2, %v2742_v62 }
0x1ab9   : > { %v2771_v2 = vpop.f32.mrf.mxu1 }
0x1aba   : > { %v2772_v3 = vadd.f32 %v4714_v1, %v2771_v2  ;;  %v4489_v1 = vld [vmem:[%s6296_s16 + $0x18] sm:$0xff] }
0x1abb   : > { %3099 = vmatpush.bf16.msrb.mxu1 %v4489_v1 }
0x1abc   : > { %v2775_v4 = vmax.f32 %v2772_v3, 0.0 }
0x1abe   : > { %v2792_v5 = vpack.c.bf16 %v2775_v4, %v2775_v4 }
0x1ac0   : > { %2854 = vmatmul.bf16.vlgmr.msrb.gmra.mxu0 %v2792_v5 }
0x1ac1   : > { %v2773_v6 = vpop.f32.mrf.mxu1 }
0x1ac2   : > { %v4488_v6 = vld [vmem:[%s6296_s16 + $0x10] sm:$0xff] }
0x1ac3   : > { %3100 = vmatpush.bf16.msrb.mxu1 %v4488_v6 }
0x1b3d   : > { %v2855_v8 = vpop.f32.mrf.mxu0 }
0x1b3e   : > { %v2856_v11 = vadd.f32 %v4715_v7, %v2855_v8 }
0x1b40   : > { %v2859_v12 = vadd.f32 %v2856_v11, %v2737_v61 }
0x1b42   : > { %v2864_v13 = vsel %vm1328_vm2, %v2859_v12, 0.0 }
0x1b43   : > { %2865 = vadd.xlane.f32.xlu1 %v2864_v13 }
0x1b45   : > { %v2857_v14 = vpop.f32.mrf.mxu0 }
0x1bb6   : > { %v2866_v15 = vpop.xlane.xlu1 %2865 }
0x1bb7   : > { %v2867_v16 = vmul.f32 %v2866_v15, %v5830_v9 }
0x1bb9   : > { %v2868_v17 = vsub.f32 %v2859_v12, %v2867_v16  ;;  %v4719_v16 = vld [vmem:[%s6297_s22 + $0x1] ss:$0 sm:$0xff] }
0x1bbb   : > { %v2869_v18 = vmul.f32 %v2868_v17, %v2868_v17 }
0x1bbd   : > { %v2870_v19 = vsel %vm1328_vm2, %v2869_v18, 0.0 }
0x1bbe   : > { %2871 = vadd.xlane.f32.xlu2 %v2870_v19 }
0x1c31   : > { %v2872_v22 = vpop.xlane.xlu2 %2871 }
0x1c32   : > { %v2873_v23 = vmul.f32 %v2872_v22, %v5830_v9 }
0x1c34   : > { %v2874_v24 = vadd.f32 1e-05, %v2873_v23 }
0x1c36   : > { %4781 = vrsqrt.f32 %v2874_v24  ;;  %vm2881_vm14 = vweird.f32 %v2874_v24 }
0x1c3c   : > { %v4782_v25 = vpop.eup %4781 }
0x1c3d   : > { %v2876_v26 = vmul.f32 %v4782_v25, %v2874_v24  ;;  %vm2882_vm13 = vweird.f32 %v4782_v25 }
0x1c3e   : > { %vm2883_vm15 = vmor %vm2881_vm14, %vm2882_vm13 }
0x1c3f   : > { %v2877_v27 = vmul.f32 %v4782_v25, %v2876_v26 }
0x1c41   : > { %v2878_v28 = vmul.f32 0.5, %v2877_v27 }
0x1c43   : > { %v2879_v29 = vsub.f32 1.5, %v2878_v28 }
0x1c45   : > { %v2880_v31 = vmul.f32 %v4782_v25, %v2879_v29  ;;  %v4491_v29 = vld [vmem:[%s6296_s16 + $0x38] sm:$0xff] }
0x1c47   : > { %v2884_v34 = vsel %vm2883_vm15, %v4782_v25, %v2880_v31  ;;  %v4490_v31 = vld [vmem:[%s6296_s16 + $0x30] sm:$0xff] }
0x1c48   : > { %v2885_v33 = vmul.f32 %v2884_v34, %v2868_v17 }
0x1c4a   : > { %v2889_v36 = vmul.f32 %v4716_v32, %v2885_v33 }
0x1c4c   : > { %v6027_v37 = vadd.f32 %v4717_v35, %v2889_v36 }
0x1c4e   : > { %v2899_v30 = vpack.c.bf16 %v6027_v37, %v6027_v37 }
0x1c50   : > { %4294 = vmatmul.msk.bf16.vlgmr.msra.gmra.mxu2 %vm1328_vm2, %v2899_v30 }
0x1cd3   : > { %v2929_v39 = vpop.f32.mrf.mxu2 }
0x1cd4   : > { %v2930_v40 = vadd.f32 %v4718_v38, %v2929_v39 }
0x1cd6   : > { %2936 = vrot.lane.b32.xlu1 %v2930_v40, %s5336_s14  ;;  %2934 = vrot.lane.b32.xlu0 %v2930_v40, %s5335_s24 }
0x1cdb   : > { %v2931_v41 = vpop.f32.mrf.mxu2 }
0x1d48   : > { %v2937_v42 = vpop.permute.xlu1 %2936  ;;  %v2935_v43 = vpop.permute.xlu0 %2934 }
0x1d49   : > { %4295 = vmatpush.xpose.msk.msrb.mxu3 %vm1350_vm3, %v2937_v42  ;;  %2962 = vrot.lane.b32.xlu0 %v2935_v43, %s5336_s14  ;;  %v4721_v42 = vld [vmem:[%s6297_s22 + $0xb] ss:$0 sm:$0xff]  ;;  %s5340_s14 = smov 32  }
0x1d4c   : > { %4296 = vmatmul.msk.f32.vlgmr.msrb.gmra.mxu3 %vm1350_vm3, %v2930_v40 }
0x1d51   : > { %3032 = vrot.lane.b32.xlu0 %v2935_v43, %s5337_s2 }
0x1d59   : > { %3006 = vrot.lane.b32.xlu0 %v2930_v40, %s5337_s2  ;;  %v4720_v40 = vld [vmem:[%s6297_s22 + $0x9] ss:$0 sm:$0xff] }
0x1dbb   : > { %v2963_v44 = vpop.permute.xlu0 %2962 }
0x1dbc   : > { %4297 = vmatpush.xpose.msk.msra.mxu3 %vm1350_vm3, %v2963_v44 }
0x1dbf   : > { %4298 = vmatmul.msk.f32.vlgmr.msra.gmra.mxu3 %vm1350_vm3, %v2935_v43 }
0x1dc3   : > { %v3033_v45 = vpop.permute.xlu0 %3032 }
0x1dc4   : > { %3053 = vmatpush.msrb.mxu3 %v3033_v45 }
0x1dcb   : > { %v3007_v46 = vpop.permute.xlu0 %3006 }
0x1dcc   : > { %3027 = vmatpush.msrb.mxu2 %v3007_v46 }
0x1dce   : > { %3173 = vmatpush.bf16.msra.mxu2 %v4491_v29 }
0x1dcf   : > { %v2959_v48 = vpop.f32.mrf.mxu3 }
0x1dd0   : > { %v2960_v49 = vadd.f32 %v2959_v48, %v5942_v51  ;;  %v4722_v48 = vld [vmem:[%s6297_s22 + $0x3] ss:$0 sm:$0xff] }
0x1dd2   : > { %v2988_v50 = vsel %vm1267_vm1, %v2960_v49, -inf  ;;  %3174 = vmatpush.bf16.msra.mxu2 %v4490_v31 }
0x1dd3   : > { %2989 = vmax.xlane.f32.xlu2 %v2988_v50 }
0x1e42   : > { %v2985_v52 = vpop.f32.mrf.mxu3 }
0x1e43   : > { %v2986_v53 = vadd.f32 %v2985_v52, %v5942_v51 }
0x1e45   : > { %v2991_v54 = vsel %vm1267_vm1, %v2986_v53, -inf }
0x1e46   : > { %v2990_v55 = vpop.xlane.xlu2 %2989  ;;  %2992 = vmax.xlane.f32.xlu1 %v2991_v54 }
0x1e47   : > { %v2994_v56 = vsub.f32 %v2960_v49, %v2990_v55 }
0x1e49   : > { %v2996_v58 = vmul.f32 1.442695, %v2994_v56 }
0x1e4b   : > { %4783 = vpow2.f32 %v2996_v58 }
0x1e51   : > { %v4784_v59 = vpop.eup %4783 }
0x1e52   : > { %4299 = vmatmul.msk.f32.vlgmr.msrb.gmra.mxu2 %vm1267_vm1, %v4784_v59  ;;  %v3000_v60 = vsel %vm1267_vm1, %v4784_v59, 0.0 }
0x1e53   : > { %3001 = vadd.xlane.f32.xlu0 %v3000_v60 }
0x1e67   : > { %3209 = vrot.lane.b32.xlu0 %v5956_v10, %s5337_s2 }
0x1eb9   : > { %v2993_v61 = vpop.xlane.xlu1 %2992 }
0x1eba   : > { %v2995_v51 = vsub.f32 %v2986_v53, %v2993_v61 }
0x1ebc   : > { %v2998_v62 = vmul.f32 1.442695, %v2995_v51 }
0x1ebe   : > { %4785 = vpow2.f32 %v2998_v62 }
0x1ec4   : > { %v4786_v63 = vpop.eup %4785 }
0x1ec5   : > { %4300 = vmatmul.msk.f32.vlgmr.msrb.gmra.mxu3 %vm1267_vm1, %v4786_v63  ;;  %v3003_v0 = vsel %vm1267_vm1, %v4786_v63, 0.0 }
0x1ec6   : > { %3004 = vadd.xlane.f32.xlu2 %v3003_v0  ;;  %v3002_v7 = vpop.xlane.xlu0 %3001 }
0x1ed5   : > { %v3029_v8 = vpop.f32.mrf.mxu2 }
0x1ed9   : > { %v3210_v28 = vpop.permute.xlu0 %3209 }
0x1f39   : > { %v3005_v2 = vpop.xlane.xlu2 %3004 }
0x1f3a   : > { %4787 = vrcp.f32 %v3005_v2 }
0x1f3b   : > { %4789 = vrcp.f32 %v3002_v7 }
0x1f40   : > { %v4788_v3 = vpop.eup %4787 }
0x1f41   : > { %v4790_v11 = vpop.eup %4789 }
0x1f42   : > { %v3060_v12 = vmul.f32 %v4790_v11, %v3029_v8 }
0x1f48   : > { %v3055_v4 = vpop.f32.mrf.mxu3 }
0x1f49   : > { %v3061_v5 = vmul.f32 %v4788_v3, %v3055_v4 }
0x1f4b   : > { %3063 = vrot.lane.b32.xlu2 %v3061_v5, %s5338_s18  ;;  %v4493_v5 = vld [vmem:[%s6296_s16 + $0x58] sm:$0xff] }
0x1fa5   : > { %v3064_v13 = vpop.permute.xlu2 %3063 }
0x1fa6   : > { %v3066_v14 = vsel %vm1350_vm3, %v3060_v12, %v3064_v13  ;;  %v4492_v12 = vld [vmem:[%s6296_s16 + $0x50] sm:$0xff] }
0x1fa7   : > { %v3072_v15 = vpack.c.bf16 %v3066_v14, %v3066_v14 }
0x1fa9   : > { %4314 = vmatmul.msk.bf16.vlgmr.msrb.gmra.mxu1 %vm1328_vm2, %v3072_v15 }
0x2026   : > { %v3102_v17 = vpop.f32.mrf.mxu1 }
0x2027   : > { %v3103_v18 = vadd.f32 %v4719_v16, %v3102_v17 }
0x2029   : > { %v3106_v19 = vadd.f32 %v3103_v18, %v6027_v37 }
0x202b   : > { %v3111_v20 = vsel %vm1328_vm2, %v3106_v19, 0.0 }
0x202c   : > { %3112 = vadd.xlane.f32.xlu1 %v3111_v20  ;;  %v4723_v20 = vld [vmem:[%s6297_s22 + $0x5] ss:$0 sm:$0xff] }
0x202e   : > { %v3104_v21 = vpop.f32.mrf.mxu1 }
0x2045   : > { %3183 = vrot.lane.b32.xlu1 %v5934_v47, %s5337_s2 }
0x209f   : > { %v3113_v22 = vpop.xlane.xlu1 %3112 }
0x20a0   : > { %v3114_v23 = vmul.f32 %v3113_v22, %v5830_v9 }
0x20a2   : > { %v3115_v24 = vsub.f32 %v3106_v19, %v3114_v23 }
0x20a4   : > { %v3116_v25 = vmul.f32 %v3115_v24, %v3115_v24 }
0x20a6   : > { %v3117_v26 = vsel %vm1328_vm2, %v3116_v25, 0.0 }
0x20a7   : > { %3118 = vadd.xlane.f32.xlu2 %v3117_v26 }
0x20b7   : > { %v3184_v27 = vpop.permute.xlu1 %3183 }
0x20b8   : > { %4331 = vmatpush.xpose.msk.msra.mxu3 %vm1350_vm3, %v3184_v27 }
0x20bc   : > { %4333 = vmatpush.xpose.msk.msrb.mxu3 %vm1350_vm3, %v3210_v28 }
0x211a   : > { %v3119_v32 = vpop.xlane.xlu2 %3118 }
0x211b   : > { %v3120_v34 = vmul.f32 %v3119_v32, %v5830_v9  ;;  %v4495_v32 = vld [vmem:[%s6298_s4 + $0x18] sm:$0xff] }
0x211d   : > { %v3121_v35 = vadd.f32 1e-05, %v3120_v34  ;;  %v4494_v34 = vld [vmem:[%s6298_s4 + $0x10] sm:$0xff] }
0x211f   : > { %4791 = vrsqrt.f32 %v3121_v35  ;;  %vm3128_vm4 = vweird.f32 %v3121_v35 }
0x2125   : > { %v4792_v33 = vpop.eup %4791 }
0x2126   : > { %v3123_v36 = vmul.f32 %v4792_v33, %v3121_v35  ;;  %vm3129_vm0 = vweird.f32 %v4792_v33  ;;  %v4503_v35 = vld [vmem:[%s6300_s28 + $0x78] sm:$0xff] }
0x2127   : > { %vm3130_vm5 = vmor %vm3128_vm4, %vm3129_vm0  ;;  %3499 = vmatpush.bf16.msra.mxu1 %v4503_v35  ;;  %v4504_v35 = vld [vmem:[%s6291_s26 + $0x10] sm:$0xff] }
0x2128   : > { %v3124_v37 = vmul.f32 %v4792_v33, %v3123_v36 }
0x212a   : > { %v3125_v30 = vmul.f32 0.5, %v3124_v37  ;;  %v4502_v37 = vld [vmem:[%s6300_s28 + $0x70] sm:$0xff] }
0x212b   : > { %3500 = vmatpush.bf16.msra.mxu1 %v4502_v37 }
0x212c   : > { %v3126_v38 = vsub.f32 1.5, %v3125_v30 }
0x212e   : > { %v3127_v39 = vmul.f32 %v4792_v33, %v3126_v38  ;;  %v4501_v38 = vld [vmem:[%s6300_s28 + $0x68] sm:$0xff] }
0x212f   : > { %3501 = vmatpush.bf16.msra.mxu1 %v4501_v38 }
0x2130   : > { %v3131_v41 = vsel %vm3130_vm5, %v4792_v33, %v3127_v39  ;;  %v4500_v39 = vld [vmem:[%s6300_s28 + $0x60] sm:$0xff] }
0x2131   : > { %v3132_v43 = vmul.f32 %v3131_v41, %v3115_v24 }
0x2133   : > { %v3136_v44 = vmul.f32 %v4720_v40, %v3132_v43  ;;  %3502 = vmatpush.bf16.msra.mxu1 %v4500_v39 }
0x2135   : > { %v6071_v45 = vadd.f32 %v4721_v42, %v3136_v44  ;;  %v4499_v42 = vld [vmem:[%s6300_s28 + $0x58] sm:$0xff] }
0x2137   : > { %v3146_v46 = vpack.c.bf16 %v6071_v45, %v6071_v45  ;;  %3503 = vmatpush.bf16.msra.mxu1 %v4499_v42 }
0x2139   : > { %4330 = vmatmul.msk.bf16.vlgmr.msra.gmra.mxu2 %vm1328_vm2, %v3146_v46 }
0x21bc   : > { %v3176_v49 = vpop.f32.mrf.mxu2 }
0x21bd   : > { %v3177_v50 = vadd.f32 %v4722_v48, %v3176_v49  ;;  %v4724_v49 = vld [vmem:[%s6297_s22 + $0xd] ss:$0 sm:$0xff] }
0x21bf   : > { %3181 = vrot.lane.b32.xlu1 %v3177_v50, %s5335_s24  ;;  %4332 = vmatmul.msk.f32.vlgmr.msra.gmra.mxu3 %vm1350_vm3, %v3177_v50  ;;  %s6303_s24 = sld [smem:[#allocation60_spill]] }
0x21c0   : > { %3420 = vmatpush.bf16.msra.mxu3 %v4495_v32 }
0x21c4   : > { %v3178_v52 = vpop.f32.mrf.mxu2  ;;  %3421 = vmatpush.bf16.msra.mxu3 %v4494_v34  ;;  %v4505_v34 = vld [vmem:[%s6291_s26 + $0x18] sm:$0xff] }
0x21c5   : > { %v4725_v52 = vld [vmem:[%s6297_s22 + $0xf] ss:$0 sm:$0xff]  ;;  %s5187_s6 = scalar_lea.hbm %s6303_s24, 2 }
0x21c7   : > { %3279 = vrot.lane.b32.xlu1 %v5956_v10, %s5340_s14 }
0x21cf   : > { %3253 = vrot.lane.b32.xlu1 %v5934_v47, %s5340_s14  ;;  %s3633_s14 = sshll.u32 %s6305_s0, 4  ;;  %s3634_s14 = int_to_ptr.vmem [resolvable:$true] %s3633_s14 }
0x2231   : > { %v3182_v53 = vpop.permute.xlu1 %3181 }
0x2232   : > { %4334 = vmatmul.msk.f32.vlgmr.msrb.gmra.mxu3 %vm1350_vm3, %v3182_v53 }
0x2239   : > { %v3280_v54 = vpop.permute.xlu1 %3279 }
0x223a   : > { %3300 = vmatpush.msra.mxu0 %v3280_v54 }
0x223c   : > { %3609 = vmatpush.bf16.msrb.mxu0 %v4505_v34 }
0x2240   : > { %3610 = vmatpush.bf16.msrb.mxu0 %v4504_v35 }
0x2241   : > { %v3254_v55 = vpop.permute.xlu1 %3253 }
0x2242   : > { %v3206_v56 = vpop.f32.mrf.mxu3  ;;  %3274 = vmatpush.msrb.mxu2 %v3254_v55 }
0x2243   : > { %v3207_v58 = vadd.f32 %v3206_v56, %v5984_v57 }
0x2244   : > { %3346 = vmatpush.bf16.msra.mxu2 %v4493_v5 }
0x2245   : > { %v3235_v59 = vsel %vm1267_vm1, %v3207_v58, -inf }
0x2246   : > { %3236 = vmax.xlane.f32.xlu2 %v3235_v59  ;;  %v4496_v59 = vld [vmem:[%s6300_s28 + $0x40] sm:$0xff] }
0x2248   : > { %3347 = vmatpush.bf16.msra.mxu2 %v4492_v12 }
0x22b5   : > { %v3232_v60 = vpop.f32.mrf.mxu3 }
0x22b6   : > { %v3233_v61 = vadd.f32 %v3232_v60, %v5984_v57  ;;  %v4726_v60 = vld [vmem:[%s6302_s30 + $0x1] ss:$0 sm:$0xff] }
0x22b8   : > { %v3238_v10 = vsel %vm1267_vm1, %v3233_v61, -inf }
0x22b9   : > { %v3237_v51 = vpop.xlane.xlu2 %3236  ;;  %3239 = vmax.xlane.f32.xlu0 %v3238_v10 }
0x22ba   : > { %v3241_v47 = vsub.f32 %v3207_v58, %v3237_v51  ;;  %v4497_v58 = vld [vmem:[%s6300_s28 + $0x48] sm:$0xff] }
0x22bc   : > { %v3243_v62 = vmul.f32 1.442695, %v3241_v47 }
0x22be   : > { %4793 = vpow2.f32 %v3243_v62 }
0x22c4   : > { %v4794_v63 = vpop.eup %4793 }
0x22c5   : > { %4335 = vmatmul.msk.f32.vlgmr.msrb.gmra.mxu2 %vm1267_vm1, %v4794_v63  ;;  %v3247_v0 = vsel %vm1267_vm1, %v4794_v63, 0.0  ;;  %v4727_v63 = vld [vmem:[%s6297_s22 + $0x7] ss:$0 sm:$0xff] }
0x22c6   : > { %3248 = vadd.xlane.f32.xlu1 %v3247_v0 }
0x232c   : > { %v3240_v1 = vpop.xlane.xlu0 %3239 }
0x232d   : > { %v3242_v2 = vsub.f32 %v3233_v61, %v3240_v1 }
0x232f   : > { %v3245_v3 = vmul.f32 1.442695, %v3242_v2 }
0x2331   : > { %4795 = vpow2.f32 %v3245_v3 }
0x2337   : > { %v4796_v57 = vpop.eup %4795 }
0x2338   : > { %4336 = vmatmul.msk.f32.vlgmr.msra.gmra.mxu0 %vm1267_vm1, %v4796_v57  ;;  %v3250_v4 = vsel %vm1267_vm1, %v4796_v57, 0.0 }
0x2339   : > { %3251 = vadd.xlane.f32.xlu2 %v3250_v4  ;;  %v3249_v13 = vpop.xlane.xlu1 %3248 }
0x2348   : > { %v3276_v14 = vpop.f32.mrf.mxu2 }
0x23ac   : > { %v3252_v6 = vpop.xlane.xlu2 %3251 }
0x23ad   : > { %4797 = vrcp.f32 %v3252_v6 }
0x23ae   : > { %4799 = vrcp.f32 %v3249_v13 }
0x23b3   : > { %v4798_v7 = vpop.eup %4797 }
0x23b4   : > { %v4800_v15 = vpop.eup %4799 }
0x23b5   : > { %v3302_v8 = vpop.f32.mrf.mxu0  ;;  %v3307_v16 = vmul.f32 %v4800_v15, %v3276_v14 }
0x23b6   : > { %v3308_v11 = vmul.f32 %v4798_v7, %v3302_v8 }
0x23b8   : > { %3310 = vrot.lane.b32.xlu2 %v3308_v11, %s5338_s18  ;;  %s3631_s18 = scalar_lea.hbm %s6303_s24, %s6276_s8 }
0x23b9   : > { %s3635_s1 = sshll.u32 %s3631_s18, 4  ;;  %s3636_s1 = int_to_ptr.hbm [resolvable:$true] %s3635_s1 }
0x23ba   : > { %s5181_s4 = sshra.s32 %s3636_s1, 4  ;;  %s5182_s4 = int_to_ptr.hbm [resolvable:$true] %s5181_s4 }
0x23bb   : > { %s5183_s5 = scalar_lea.hbm %s5182_s4, 1  ;;  %p5188_p12 = scmp.lt.s32.totalorder %s5182_s4, %s6303_s24 }
0x23bc   : > { %p5184_p10 = scmp.ne.s32.totalorder %s5182_s4, %s5183_s5  ;;  %p5189_p11 = scmp.lt.s32.totalorder %s5187_s6, %s5183_s5 }
0x23be   : > { %p5185_p8 = pnand %p5184_p10, %p5604_p9  ;;  %p5190_p5 = por %p5189_p11, %p5188_p12 }
0x23c0   : > { %p5186_p1 = pneg %p5185_p8 }
0x23c2   : > { %p5191_p13 = pnand %p5190_p5, %p5186_p1 }
0x2412   : > { %v3311_v17 = vpop.permute.xlu2 %3310 }
0x2413   : > { %v3313_v18 = vsel %vm1350_vm3, %v3307_v16, %v3311_v17 }
0x2414   : > { %v3319_v19 = vpack.c.bf16 %v3313_v18, %v3313_v18 }
0x2416   : > { %4350 = vmatmul.msk.bf16.vlgmr.msra.gmra.mxu2 %vm1328_vm2, %v3319_v19 }
0x2499   : > { %v3349_v21 = vpop.f32.mrf.mxu2 }
0x249a   : > { %v3350_v22 = vadd.f32 %v4723_v20, %v3349_v21  ;;  %v4728_v20 = vld [vmem:[%s6297_s22 + $0x11] ss:$0 sm:$0xff] }
0x249c   : > { %v3353_v23 = vadd.f32 %v3350_v22, %v6071_v45  ;;  %v4498_v45 = vld [vmem:[%s6300_s28 + $0x50] sm:$0xff] }
0x249d   : > { %3504 = vmatpush.bf16.msra.mxu1 %v4498_v45 }
0x249e   : > { %v3358_v24 = vsel %vm1328_vm2, %v3353_v23, 0.0 }
0x249f   : > { %3359 = vadd.xlane.f32.xlu0 %v3358_v24 }
0x24a1   : > { %v3351_v25 = vpop.f32.mrf.mxu2  ;;  %3505 = vmatpush.bf16.msra.mxu1 %v4497_v58 }
0x24a5   : > { %3506 = vmatpush.bf16.msra.mxu1 %v4496_v59 }
0x2512   : > { %v3360_v26 = vpop.xlane.xlu0 %3359 }
0x2513   : > { %v3361_v27 = vmul.f32 %v3360_v26, %v5830_v9 }
0x2515   : > { %v3362_v28 = vsub.f32 %v3353_v23, %v3361_v27  ;;  %v4729_v23 = vld [vmem:[%s6297_s22 + $0x13] ss:$0 sm:$0xff] }
0x2517   : > { %v3363_v29 = vmul.f32 %v3362_v28, %v3362_v28 }
0x2519   : > { %v3364_v31 = vsel %vm1328_vm2, %v3363_v29, 0.0 }
0x251a   : > { %3365 = vadd.xlane.f32.xlu0 %v3364_v31 }
0x258d   : > { %v3366_v33 = vpop.xlane.xlu0 %3365 }
0x258e   : > { %v3367_v36 = vmul.f32 %v3366_v33, %v5830_v9 }
0x2590   : > { %v3368_v30 = vadd.f32 1e-05, %v3367_v36 }
0x2592   : > { %4801 = vrsqrt.f32 %v3368_v30  ;;  %vm3375_vm3 = vweird.f32 %v3368_v30 }
0x2598   : > { %v4802_v40 = vpop.eup %4801 }
0x2599   : > { %v3370_v41 = vmul.f32 %v4802_v40, %v3368_v30  ;;  %vm3376_vm1 = vweird.f32 %v4802_v40 }
0x259a   : > { %vm3377_vm6 = vmor %vm3375_vm3, %vm3376_vm1 }
0x259b   : > { %v3371_v43 = vmul.f32 %v4802_v40, %v3370_v41 }
0x259d   : > { %v3372_v44 = vmul.f32 0.5, %v3371_v43  ;;  %v4730_v43 = vld [vmem:[#allocation14 + $0x6] ss:$0 sm:$0xff] }
0x259f   : > { %v3373_v46 = vsub.f32 1.5, %v3372_v44 }
0x25a1   : > { %v3374_v48 = vmul.f32 %v4802_v40, %v3373_v46 }
0x25a3   : > { %v3378_v50 = vsel %vm3377_vm6, %v4802_v40, %v3374_v48 }
0x25a4   : > { %v3379_v53 = vmul.f32 %v3378_v50, %v3362_v28 }
0x25a6   : > { %v3383_v54 = vmul.f32 %v4724_v49, %v3379_v53 }
0x25a8   : > { %v3387_v55 = vadd.f32 %v4725_v52, %v3383_v54 }
0x25aa   : > { %v3393_v56 = vpack.c.bf16 %v3387_v55, %v3387_v55 }
0x25ac   : > { %4366 = vmatmul.msk.bf16.vlgmr.msra.gmra.mxu3 %vm1328_vm2, %v3393_v56 }
0x262f   : > { %v3423_v61 = vpop.f32.mrf.mxu3 }
0x2630   : > { %v3424_v10 = vadd.f32 %v4726_v60, %v3423_v61 }
0x2632   : > { %v3427_v51 = vmax.f32 %v3424_v10, 0.0 }
0x2634   : > { %v3445_v47 = vpack.c.bf16 %v3427_v51, %v3427_v51 }
0x2636   : > { %3507 = vmatmul.bf16.vlgmr.msra.gmra.mxu1 %v3445_v47 }
0x2637   : > { %v3425_v62 = vpop.f32.mrf.mxu3 }
0x26b3   : > { %v3508_v0 = vpop.f32.mrf.mxu1 }
0x26b4   : > { %v3509_v1 = vadd.f32 %v4727_v63, %v3508_v0 }
0x26b6   : > { %v3512_v2 = vadd.f32 %v3509_v1, %v3387_v55 }
0x26b8   : > { %v3517_v3 = vsel %vm1328_vm2, %v3512_v2, 0.0 }
0x26b9   : > { %3518 = vadd.xlane.f32.xlu2 %v3517_v3 }
0x26bb   : > { %v3510_v57 = vpop.f32.mrf.mxu1 }
0x272c   : > { %v3519_v4 = vpop.xlane.xlu2 %3518 }
0x272d   : > { %v3520_v5 = vmul.f32 %v3519_v4, %v5830_v9 }
0x272f   : > { %v3521_v6 = vsub.f32 %v3512_v2, %v3520_v5 }
0x2731   : > { %v3522_v7 = vmul.f32 %v3521_v6, %v3521_v6 }
0x2733   : > { %v3523_v8 = vsel %vm1328_vm2, %v3522_v7, 0.0 }
0x2734   : > { %3524 = vadd.xlane.f32.xlu0 %v3523_v8 }
0x27a7   : > { %v3525_v11 = vpop.xlane.xlu0 %3524 }
0x27a8   : > { %v3526_v12 = vmul.f32 %v3525_v11, %v5830_v9 }
0x27aa   : > { %v3527_v13 = vadd.f32 1e-05, %v3526_v12 }
0x27ac   : > { %4803 = vrsqrt.f32 %v3527_v13  ;;  %vm3534_vm8 = vweird.f32 %v3527_v13 }
0x27b2   : > { %v4804_v14 = vpop.eup %4803 }
0x27b3   : > { %v3529_v15 = vmul.f32 %v4804_v14, %v3527_v13  ;;  %vm3535_vm7 = vweird.f32 %v4804_v14 }
0x27b4   : > { %vm3536_vm9 = vmor %vm3534_vm8, %vm3535_vm7 }
0x27b5   : > { %v3530_v16 = vmul.f32 %v4804_v14, %v3529_v15 }
0x27b7   : > { %v3531_v17 = vmul.f32 0.5, %v3530_v16 }
0x27b9   : > { %v3532_v18 = vsub.f32 1.5, %v3531_v17 }
0x27bb   : > { %v3533_v19 = vmul.f32 %v4804_v14, %v3532_v18 }
0x27bd   : > { %v3537_v21 = vsel %vm3536_vm9, %v4804_v14, %v3533_v19 }
0x27be   : > { %v3538_v22 = vmul.f32 %v3537_v21, %v3521_v6 }
0x27c0   : > { %v3542_v24 = vmul.f32 %v4728_v20, %v3538_v22 }
0x27c2   : > { %v3546_v25 = vadd.f32 %v4729_v23, %v3542_v24 }
0x27c4   : > { %v3547_v26 = vsel %vm1328_vm2, %v3546_v25, 0.0 }
0x27c5   : > { %3548 = vadd.xlane.f32.xlu1 %v3547_v26 }
0x2838   : > { %v3549_v27 = vpop.xlane.xlu1 %3548 }
0x2839   : > { %v3550_v28 = vmul.f32 %v3549_v27, %v5830_v9 }
0x283b   : > { %v3551_v29 = vsub.f32 %v3546_v25, %v3550_v28 }
0x283d   : > { %v3552_v31 = vmul.f32 %v3551_v29, %v3551_v29 }
0x283f   : > { %v3553_v32 = vsel %vm1328_vm2, %v3552_v31, 0.0 }
0x2840   : > { %3554 = vadd.xlane.f32.xlu0 %v3553_v32 }
0x28b3   : > { %v3555_v33 = vpop.xlane.xlu0 %3554 }
0x28b4   : > { %v3556_v36 = vmul.f32 %v3555_v33, %v5830_v9  ;;  %v4731_v9 = vld [vmem:[#allocation14 + $0x7] ss:$0 sm:$0xff] }
0x28b6   : > { %v3557_v37 = vadd.f32 1e-05, %v3556_v36 }
0x28b8   : > { %4805 = vrsqrt.f32 %v3557_v37  ;;  %vm3564_vm11 = vweird.f32 %v3557_v37 }
0x28be   : > { %v4806_v30 = vpop.eup %4805 }
0x28bf   : > { %v3559_v38 = vmul.f32 %v4806_v30, %v3557_v37  ;;  %vm3565_vm10 = vweird.f32 %v4806_v30 }
0x28c0   : > { %vm3566_vm12 = vmor %vm3564_vm11, %vm3565_vm10 }
0x28c1   : > { %v3560_v39 = vmul.f32 %v4806_v30, %v3559_v38 }
0x28c3   : > { %v3561_v40 = vmul.f32 0.5, %v3560_v39 }
0x28c5   : > { %v3562_v41 = vsub.f32 1.5, %v3561_v40 }
0x28c7   : > { %v3563_v42 = vmul.f32 %v4806_v30, %v3562_v41 }
0x28c9   : > { %v3567_v44 = vsel %vm3566_vm12, %v4806_v30, %v3563_v42 }
0x28ca   : > { %v3568_v45 = vmul.f32 %v3567_v44, %v3551_v29 }
0x28cc   : > { %v3572_v46 = vmul.f32 %v4730_v43, %v3568_v45 }
0x28ce   : > { %v3576_v48 = vadd.f32 %v4731_v9, %v3572_v46 }
0x28d0   : > { %v3582_v49 = vpack.c.bf16 %v3576_v48, %v3576_v48 }
0x28d2   : > { %4431 = vmatmul.msk.bf16.vlgmr.msrb.gmra.mxu0 %vm1328_vm2, %v3582_v49 }
0x28d3   : > { %5194 = shalt.err (!%p5191_p13)
}
0x28d4   : > { %s6306_s18 = sld [smem:[#allocation61_spill]]  ;;  %s4433_s0 = sshll.u32 %s6276_s8, 3  ;;  %v4732_v50 = vld [vmem:[%s6293_s13 + $0x1] ss:$0 sm:$0xff] }
0x28d5   : > { %4542 = dma.vmem_to_hbm [thread:$0]  (%p5604_p9), %s3634_s14, 16, %s3636_s1, %s3618_s3  }
0x28d6   : > { %s1239_s12 = scalar_lea.vmem [#allocation23], %s5741_s7  ;;  %s3622_s6 = scalar_lea.sflag [#allocation24], %s5738_s15 }
0x28d7   : > { %s3647_s4 = sshll.u32 %s1239_s12, 4  ;;  %s3648_s4 = int_to_ptr.vmem [resolvable:$true] %s3647_s4 }
0x28da   : > { %s3645_s9 = scalar_lea.hbm %s6306_s18, %s4433_s0  ;;  %s5215_s3 = scalar_lea.hbm %s6306_s18, 16 }
0x28db   : > { %s3649_s5 = sshll.u32 %s3645_s9, 4  ;;  %s3650_s5 = int_to_ptr.hbm [resolvable:$true] %s3649_s5 }
0x28dc   : > { %s5209_s16 = sshra.s32 %s3650_s5, 4  ;;  %s5210_s16 = int_to_ptr.hbm [resolvable:$true] %s5209_s16 }
0x28dd   : > { %s5211_s17 = scalar_lea.hbm %s5210_s16, 8  ;;  %p5216_p4 = scmp.lt.s32.totalorder %s5210_s16, %s6306_s18 }
0x28de   : > { %p5212_p0 = scmp.ne.s32.totalorder %s5210_s16, %s5211_s17  ;;  %p5217_p6 = scmp.lt.s32.totalorder %s5215_s3, %s5211_s17 }
0x28e0   : > { %p5213_p2 = pnand %p5212_p0, %p5604_p9  ;;  %p5218_p10 = por %p5217_p6, %p5216_p4 }
0x28e2   : > { %p5214_p7 = pneg %p5213_p2 }
0x28e4   : > { %p5219_p8 = pnand %p5218_p10, %p5214_p7 }
0x294f   : > { %v3612_v52 = vpop.f32.mrf.mxu0 }
0x2950   : > { %v3613_v53 = vadd.f32 %v4732_v50, %v3612_v52 }
0x2952   : > { %3616 = vst [vmem:[%s1239_s12] sm:$0xff] %v3613_v53 }
0x2953   : > { %5222 = shalt.err (!%p5219_p8)
}
0x2954   : > { %4543 = dma.vmem_to_hbm [thread:$0]  (%p5604_p9), %s3648_s4, 128, %s3650_s5, %s3622_s6  }
0x2957   : > { %v3614_v54 = vpop.f32.mrf.mxu0 }
0x2958 PF: > { %s6307_s12 = sld [smem:[#allocation62_spill]]  ;;  %p6309_p1 = scmp.ge.s32.totalorder %s5293_s11, 2 }
0x295a   : > { %p4585_p12 = pnand %p6309_p1, %p5612_p3 }
0x295c   : > { %p4586_p11 = pneg %p4585_p12 }
0x295e   : > { %s3661_s7 = sand.u32 1, %s6307_s12  }
0x295f   : > { %s3662_s8 = scalar_lea.sflag [#allocation4], %s3661_s7 }
0x2960   : > { %5272 = dma.done.wait (%p4586_p11), %s3662_s8, 16  }
0x2961   : > { %5274 = vsyncadd (%p4586_p11), %s3662_s8, 4294967280  ;;  %s3671_s17 = scalar_lea.sflag [#allocation24], %s3661_s7 }
0x2962   : > { %5276 = dma.done.wait (%p4586_p11), %s3671_s17, 128  }
0x2963   : > { %5278 = vsyncadd (%p4586_p11), %s3671_s17, 4294967168  ;;  %s6310_s11 = sld [smem:[#allocation65_spill]]  ;;  %s6313_s7 = smov %s5285_s10 }
0x2964   : > { %s6311_s1 = sld [smem:[#allocation63_spill]] }
0x2965   : > { %s6312_s0 = sld [smem:[#allocation66_spill]] }
0x2969   : > { %p88_p9 = scmp.ge.s32.totalorder %s6310_s11, 4  }
0x296a   : > { %s6314_s10 = smov %s6311_s1 }
0x296b   :  { %90 = sbr.rel (!%p88_p9) target bundleno = 80 (0x50), region = 370 }
0x2970   :  { %3677 = vsyncpa [#allocation3], 1 }
0x2971   :  { %3679 = vsyncpa [#allocation3 + $0x1], 1 }
0x2972   :  { %3680 = vsyncpa [#allocation6], 1 }
0x2973   :  { %3682 = vsyncpa [#allocation6 + $0x1], 1 }
0x2974   :  { %3683 = vsyncpa [#allocation9], 1 }
0x2975   :  { %3685 = vsyncpa [#allocation9 + $0x1], 1 }
0x2976   :  { %3686 = vsyncpa [#allocation12], 1 }
0x2977   :  { %3688 = vsyncpa [#allocation12 + $0x1], 1 }
0x2978   :  { %3689 = vsyncpa [#allocation15], 1 }
0x2979   :  { %3690 = vsyncpa [#allocation18], 1 }
0x297a   :  { %3691 = vsyncpa [#allocation21], 1 }
0x297b   :  { %3692 = vsyncpa [#allocation4], 1 }
0x297c   :  { %3694 = vsyncpa [#allocation4 + $0x1], 1 }
0x297d   :  { %3695 = vsyncpa [#allocation24], 1 }
0x297e   :  { %3697 = vsyncpa [#allocation24 + $0x1], 1 }

</bundles_post_ra>
